<compile_context>
chip_gen: v7x
topology: tpu7x:2x2x1
jax: 0.10.0
libtpu: 0.0.40
codegen_flags: <defaults>
</compile_context>

<pallas_src>
import jax
import jax.numpy as jnp
from jax.experimental import pallas as pl
from jax.experimental.pallas import tpu as pltpu


LANE = 128


def _round_up(n, m):
    return ((n + m - 1) // m) * m


# ----------------------------------------------------------------------------
# Pallas kernel
# ----------------------------------------------------------------------------
def joint_grc_kernel(
    # data
    xflat_ref,    # (Rb, T*D)     rows [0:B] = x0.flatten(1), [B:2B] = x1.flatten(1)
    # fused LSTM params (gate-major blocks, each GW lanes wide: [i | f | 2*g | o])
    wblk_ref,     # (T*D, T*4GW)  time-block-diagonal fused+padded W_ih
    bblk_ref,     # (1, T*4GW)    fused bias, tiled over T
    whh_ref,      # (GW, 4GW)     fused+padded block-diagonal W_hh
    # fused FC heads
    whead1_ref,   # (GW, HEADW)   block-diag(w01, w11), zero padded
    bhead1_ref,   # (1, HEADW)
    whead2_ref,   # (HEADW, 2)    block-diag(w02, w12), zero padded
    bhead2_ref,   # (1, 2)
    # fm MLP (lane padded)
    wfm1_ref, bfm1_ref, wfm2_ref, bfm2_ref, wfm3_ref, bfm3_ref,
    # output
    out_ref,      # (Rb, 2)       col 0 = fm, col 1 = y
    # scratch
    xw_ref,       # (Rb, T*4GW)   precomputed input projection (+bias)
):
    rows = xflat_ref.shape[0]
    gates_w = whh_ref.shape[1]          # 4*GW, lane aligned
    gw = gates_w // 4
    t_steps = xw_ref.shape[1] // gates_w

    xflat = xflat_ref[...]

    # ---- input projection for all timesteps / all 4 chains: one matmul ------
    # wblk is time-block-diagonal, so columns [t*4GW:(t+1)*4GW] hold
    # x_t @ W_ih + b for the fused (lstm0 | lstm1) gate slab of step t.
    xw_ref[...] = (
        jnp.dot(xflat, wblk_ref[...], preferred_element_type=jnp.float32)
        + bblk_ref[...]
    )

    # ---- single fused recurrence (T serial steps) ----------------------------
    # whh_ref is read at its point of use so Mosaic streams the weight tiles
    # into the MXU instead of pinning (GW x 4GW) f32 in vregs.
    # TODO(synk): for very large H, keep the RHS resident across steps with
    # pltpu.matmul_push_rhs / matmul_acc_lhs / matmul_pop.
    # TODO(synk): on v6e/v7x, store whh/wblk as bf16 (f32 accumulate) to halve
    # weight bandwidth; keep f32 elementwise math on v5e.
    h = jnp.zeros((rows, gw), jnp.float32)
    c = jnp.zeros((rows, gw), jnp.float32)
    for t in range(t_steps):  # T is small & static -> fully unrolled
        # TODO(synk): switch to lax.fori_loop carrying (h, c) if T grows > ~16.
        gates = (
            xw_ref[:, t * gates_w:(t + 1) * gates_w]
            + jnp.dot(h, whh_ref[...], preferred_element_type=jnp.float32)
        )  # (Rb, 4GW) — every gate block starts on a 128-lane boundary.
        sg = jax.nn.sigmoid(gates)               # one full-width sigmoid/step
        i_g = sg[:, 0 * gw:1 * gw]
        f_g = sg[:, 1 * gw:2 * gw]
        g_g = 2.0 * sg[:, 2 * gw:3 * gw] - 1.0   # tanh(x) = 2*sigmoid(2x) - 1
        o_g = sg[:, 3 * gw:4 * gw]
        c = f_g * c + i_g * g_g
        h = o_g * jnp.tanh(c)
    # Padded columns of h/c stay exactly zero (zero weights/bias => g == 0).

    # ---- fm gate MLP on both inputs at once ----------------------------------
    z = jnp.maximum(
        jnp.dot(xflat, wfm1_ref[...], preferred_element_type=jnp.float32)
        + bfm1_ref[...], 0.0)
    z = jnp.maximum(
        jnp.dot(z, wfm2_ref[...], preferred_element_type=jnp.float32)
        + bfm2_ref[...], 0.0)
    fm = jax.nn.sigmoid(
        jnp.dot(z, wfm3_ref[...], preferred_element_type=jnp.float32)
        + bfm3_ref[...])                                   # (Rb, 1)

    # ---- fused FC heads (block-diagonal, both heads in two matmuls) ----------
    zh = jnp.maximum(
        jnp.dot(h, whead1_ref[...], preferred_element_type=jnp.float32)
        + bhead1_ref[...], 0.0)
    oh = (jnp.dot(zh, whead2_ref[...], preferred_element_type=jnp.float32)
          + bhead2_ref[...])   # (Rb, 2): col0 = lstm0/head0, col1 = lstm1/head1

    y = (1.0 - fm) * oh[:, 0:1] + fm * oh[:, 1:2]

    out_ref[...] = jnp.concatenate([fm, y], axis=1)   # single merged store


# ----------------------------------------------------------------------------
# One-time parameter preparation (hoisted OUT of the per-call forward)
# ----------------------------------------------------------------------------
def _fuse_gate_blocks(w0, w1, H, gw):
    """(in, 4H) x2 (PyTorch gate order [i,f,g,o]) -> (in, 4*gw).
    Each gw-wide block is [w0_k | w1_k | 0 pad]; the g block is pre-scaled by 2
    so the kernel can use tanh(x) = 2*sigmoid(2x) - 1."""
    blocks = []
    for k in range(4):
        s = 2.0 if k == 2 else 1.0
        blk = jnp.concatenate(
            [w0[:, k * H:(k + 1) * H] * s, w1[:, k * H:(k + 1) * H] * s], axis=1)
        blocks.append(jnp.pad(blk, ((0, 0), (0, gw - 2 * H))))
    return jnp.concatenate(blocks, axis=1)


def _fuse_hh_blocks(w0, w1, H, gw):
    """(H, 4H) x2 -> (gw, 4*gw): per gate block-diag(w0_k, w1_k), zero padded."""
    z = jnp.zeros((H, H), jnp.float32)
    blocks = []
    for k in range(4):
        s = 2.0 if k == 2 else 1.0
        top = jnp.concatenate([w0[:, k * H:(k + 1) * H] * s, z], axis=1)
        bot = jnp.concatenate([z, w1[:, k * H:(k + 1) * H] * s], axis=1)
        blk = jnp.concatenate([top, bot], axis=0)                  # (2H, 2H)
        blocks.append(jnp.pad(blk, ((0, gw - 2 * H), (0, gw - 2 * H))))
    return jnp.concatenate(blocks, axis=1)                          # (gw, 4gw)


def _block_diag2(a, b):
    ra, ca = a.shape
    rb, cb = b.shape
    top = jnp.concatenate([a, jnp.zeros((ra, cb), a.dtype)], axis=1)
    bot = jnp.concatenate([jnp.zeros((rb, ca), b.dtype), b], axis=1)
    return jnp.concatenate([top, bot], axis=0)


def _pad2(a, rows, cols):
    r, c = a.shape
    return jnp.pad(a, ((0, rows - r), (0, cols - c)))


def prepare_params(params, input_size, window_size, hidden1, hidden2):
    """One-time weight fusion / lane padding; call once, cache the result."""
    T = window_size - 1
    D = input_size
    H = hidden1
    H2 = hidden2
    gw = _round_up(2 * H, LANE)        # lane-aligned fused gate-block width
    headw = _round_up(2 * H2, LANE)
    fmw1 = _round_up(H, LANE)
    fmw2 = _round_up(H2, LANE)

    wih = _fuse_gate_blocks(params["wih0"], params["wih1"], H, gw)   # (D, 4gw)
    b = _fuse_gate_blocks(params["b0"], params["b1"], H, gw)         # (1, 4gw)
    whh = _fuse_hh_blocks(params["whh0"], params["whh1"], H, gw)     # (gw, 4gw)

    # Time-block-diagonal input-projection weight: one (T*D, T*4gw) matmul on
    # the stacked flatten replaces the per-step x_t @ W_ih and the time-major
    # transpose of x that the previous version shipped through HBM.
    wblk = jnp.zeros((T * D, T * 4 * gw), jnp.float32)
    for t in range(T):
        wblk = wblk.at[t * D:(t + 1) * D, t * 4 * gw:(t + 1) * 4 * gw].set(wih)
    bblk = jnp.tile(b, (1, T))

    whead1 = _pad2(_block_diag2(params["w01"], params["w11"]), gw, headw)
    bhead1 = _pad2(jnp.concatenate([params["b01"], params["b11"]], axis=1),
                   1, headw)
    whead2 = _pad2(_block_diag2(params["w02"], params["w12"]), headw, 2)
    bhead2 = jnp.concatenate([params["b02"], params["b12"]], axis=1)

    wfm1 = _pad2(params["wfm1"], T * D, fmw1)
    bfm1 = _pad2(params["bfm1"], 1, fmw1)
    wfm2 = _pad2(params["wfm2"], fmw1, fmw2)
    bfm2 = _pad2(params["bfm2"], 1, fmw2)
    wfm3 = _pad2(params["wfm3"], fmw2, 1)
    bfm3 = params["bfm3"]

    return dict(wblk=wblk, bblk=bblk, whh=whh,
                whead1=whead1, bhead1=bhead1, whead2=whead2, bhead2=bhead2,
                wfm1=wfm1, bfm1=bfm1, wfm2=wfm2, bfm2=bfm2,
                wfm3=wfm3, bfm3=bfm3)


# ----------------------------------------------------------------------------
# Per-call forward (activations only; fused weights are prebuilt & cached)
# ----------------------------------------------------------------------------
_WEIGHT_NAMES = ("wblk", "bblk", "whh", "whead1", "bhead1", "whead2", "bhead2",
                 "wfm1", "bfm1", "wfm2", "bfm2", "wfm3", "bfm3")


@jax.jit
def lstm_joint_grc_forward(x0, x1, fused):
    B, T, D = x0.shape
    two_b = 2 * B
    gates_w = fused["whh"].shape[1]      # 4*GW

    # Stack x0/x1 along batch and flatten time*feature (torch .flatten(1)).
    xflat = jnp.concatenate([x0.reshape(B, T * D), x1.reshape(B, T * D)], axis=0)

    # Row-block grid: every stacked-batch row is independent, so "parallel"
    # lets v7x shard the grid across its two TensorCores.  At small batch this
    # is a single program; tile sized well under v7x's 64 MiB VMEM.
    row_block = two_b if two_b <= 256 else 256
    grid = (pl.cdiv(two_b, row_block),)

    rows_map = lambda i: (i, 0)
    const_map = lambda i: (0, 0)

    weights = [fused[n] for n in _WEIGHT_NAMES]
    in_specs = [pl.BlockSpec((row_block, T * D), rows_map)]
    in_specs += [pl.BlockSpec(w.shape, const_map) for w in weights]

    out = pl.pallas_call(
        joint_grc_kernel,
        out_shape=jax.ShapeDtypeStruct((two_b, 2), jnp.float32),
        grid=grid,
        in_specs=in_specs,
        out_specs=pl.BlockSpec((row_block, 2), rows_map),
        scratch_shapes=[pltpu.VMEM((row_block, T * gates_w), jnp.float32)],
        compiler_params=pltpu.CompilerParams(
            dimension_semantics=("parallel",)),
    )(xflat, *weights)

    fm0, fm1 = out[:B, 0], out[B:, 0]
    y0, y1 = out[:B, 1], out[B:, 1]
    return fm0, fm1, y0, y1


# ----------------------------------------------------------------------------
# Pure-JAX reference (for correctness check only) — faithful module math.
# ----------------------------------------------------------------------------
def reference_forward(x0, x1, params):
    B, T, D = x0.shape
    H1 = params["whh0"].shape[0]

    def lstm_last_h(x, wih, whh, b):
        h = jnp.zeros((B, H1), jnp.float32)
        c = jnp.zeros((B, H1), jnp.float32)
        for t in range(T):
            g = x[:, t, :] @ wih + h @ whh + b
            i = jax.nn.sigmoid(g[:, 0 * H1:1 * H1])
            f = jax.nn.sigmoid(g[:, 1 * H1:2 * H1])
            gg = jnp.tanh(g[:, 2 * H1:3 * H1])
            o = jax.nn.sigmoid(g[:, 3 * H1:4 * H1])
            c = f * c + i * gg
            h = o * jnp.tanh(c)
        return h

    def fm_branch(xf):
        z = jax.nn.relu(xf @ params["wfm1"] + params["bfm1"])
        z = jax.nn.relu(z @ params["wfm2"] + params["bfm2"])
        return jax.nn.sigmoid(z @ params["wfm3"] + params["bfm3"])

    def head(h, wa, ba, wb, bb):
        return jax.nn.relu(h @ wa + ba) @ wb + bb

    fm0 = fm_branch(x0.reshape(B, -1))
    fm1 = fm_branch(x1.reshape(B, -1))
    h00 = lstm_last_h(x0, params["wih0"], params["whh0"], params["b0"])
    h01 = lstm_last_h(x1, params["wih0"], params["whh0"], params["b0"])
    h10 = lstm_last_h(x0, params["wih1"], params["whh1"], params["b1"])
    h11 = lstm_last_h(x1, params["wih1"], params["whh1"], params["b1"])
    out00 = head(h00, params["w01"], params["b01"], params["w02"], params["b02"])
    out01 = head(h01, params["w01"], params["b01"], params["w02"], params["b02"])
    out10 = head(h10, params["w11"], params["b11"], params["w12"], params["b12"])
    out11 = head(h11, params["w11"], params["b11"], params["w12"], params["b12"])
    y0 = (1.0 - fm0) * out00 + fm0 * out10
    y1 = (1.0 - fm1) * out01 + fm1 * out11
    return fm0[:, 0], fm1[:, 0], y0[:, 0], y1[:, 0]


# ----------------------------------------------------------------------------
# Deterministic parameter init (synthetic — mimics PyTorch uniform scales)
# ----------------------------------------------------------------------------
def init_params(key, input_size, window_size, hidden1, hidden2):
    T = window_size - 1
    keys = jax.random.split(key, 20)
    ki = iter(keys)

    def uni(k, shape, scale):
        return jax.random.uniform(k, shape, jnp.float32, -scale, scale)

    k_lstm = 1.0 / jnp.sqrt(hidden1)
    params = {
        # LSTM layer-0 weights, stored as (in, 4*H); bias = b_ih + b_hh folded.
        "wih0": uni(next(ki), (input_size, 4 * hidden1), k_lstm),
        "whh0": uni(next(ki), (hidden1, 4 * hidden1), k_lstm),
        "b0":   uni(next(ki), (1, 4 * hidden1), k_lstm),
        "wih1": uni(next(ki), (input_size, 4 * hidden1), k_lstm),
        "whh1": uni(next(ki), (hidden1, 4 * hidden1), k_lstm),
        "b1":   uni(next(ki), (1, 4 * hidden1), k_lstm),
        # fc_branch01 / 02
        "w01": uni(next(ki), (hidden1, hidden2), 1.0 / jnp.sqrt(hidden1)),
        "b01": uni(next(ki), (1, hidden2), 1.0 / jnp.sqrt(hidden1)),
        "w02": uni(next(ki), (hidden2, 1), 1.0 / jnp.sqrt(hidden2)),
        "b02": uni(next(ki), (1, 1), 1.0 / jnp.sqrt(hidden2)),
        # fc_branch11 / 12
        "w11": uni(next(ki), (hidden1, hidden2), 1.0 / jnp.sqrt(hidden1)),
        "b11": uni(next(ki), (1, hidden2), 1.0 / jnp.sqrt(hidden1)),
        "w12": uni(next(ki), (hidden2, 1), 1.0 / jnp.sqrt(hidden2)),
        "b12": uni(next(ki), (1, 1), 1.0 / jnp.sqrt(hidden2)),
        # fm_lin1 / 2 / 3
        "wfm1": uni(next(ki), (input_size * T, hidden1),
                    1.0 / jnp.sqrt(input_size * T)),
        "bfm1": uni(next(ki), (1, hidden1), 1.0 / jnp.sqrt(input_size * T)),
        "wfm2": uni(next(ki), (hidden1, hidden2), 1.0 / jnp.sqrt(hidden1)),
        "bfm2": uni(next(ki), (1, hidden2), 1.0 / jnp.sqrt(hidden1)),
        "wfm3": uni(next(ki), (hidden2, 1), 1.0 / jnp.sqrt(hidden2)),
        "bfm3": uni(next(ki), (1, 1), 1.0 / jnp.sqrt(hidden2)),
    }
    return params


if __name__ == "__main__":
    # Small, module-consistent shapes.
    B = 8
    input_size = 4
    window_size = 8          # => sequence length T = 7
    num_layers = 1           # hn[0] semantics => layer-0 only
    hidden1 = 32
    hidden2 = 16
    T = window_size - 1

    key = jax.random.PRNGKey(0)
    kx0, kx1, kp = jax.random.split(key, 3)
    x0 = jax.random.normal(kx0, (B, T, input_size), jnp.float32)
    x1 = jax.random.normal(kx1, (B, T, input_size), jnp.float32)
    params = init_params(kp, input_size, window_size, hidden1, hidden2)

    # One-time weight fusion / padding (would be cached alongside the model).
    fused = prepare_params(params, input_size, window_size, hidden1, hidden2)
    fused = jax.tree_util.tree_map(jax.block_until_ready, fused)

    fm0, fm1, y0, y1 = lstm_joint_grc_forward(x0, x1, fused)
    jax.block_until_ready((fm0, fm1, y0, y1))

    # Correctness check against pure-JAX reference.  The tanh = 2*sigmoid(2x)-1
    # rewrite, the zero-padded block-diagonal fusions, and matmul summation
    # order shift results by a few ulp only; structural bugs would be orders
    # of magnitude larger.
    r_fm0, r_fm1, r_y0, r_y1 = reference_forward(x0, x1, params)
    assert jnp.allclose(fm0, r_fm0, atol=1e-4, rtol=1e-4), "fm0 mismatch"
    assert jnp.allclose(fm1, r_fm1, atol=1e-4, rtol=1e-4), "fm1 mismatch"
    assert jnp.allclose(y0, r_y0, atol=1e-4, rtol=1e-4), "y0 mismatch"
    assert jnp.allclose(y1, r_y1, atol=1e-4, rtol=1e-4), "y1 mismatch"

    print("KERNEL_OK")
</pallas_src>

<mosaic_0001>
module attributes {stable_mosaic.version = 11 : i64} {
  func.func @joint_grc_kernel(%arg0: i32, %arg1: memref<16x28xf32, #tpu.memory_space<vmem>>, %arg2: memref<28x3584xf32, #tpu.memory_space<vmem>>, %arg3: memref<1x3584xf32, #tpu.memory_space<vmem>>, %arg4: memref<128x512xf32, #tpu.memory_space<vmem>>, %arg5: memref<128x128xf32, #tpu.memory_space<vmem>>, %arg6: memref<1x128xf32, #tpu.memory_space<vmem>>, %arg7: memref<128x2xf32, #tpu.memory_space<vmem>>, %arg8: memref<1x2xf32, #tpu.memory_space<vmem>>, %arg9: memref<28x128xf32, #tpu.memory_space<vmem>>, %arg10: memref<1x128xf32, #tpu.memory_space<vmem>>, %arg11: memref<128x128xf32, #tpu.memory_space<vmem>>, %arg12: memref<1x128xf32, #tpu.memory_space<vmem>>, %arg13: memref<128x1xf32, #tpu.memory_space<vmem>>, %arg14: memref<1x1xf32, #tpu.memory_space<vmem>>, %arg15: memref<16x2xf32, #tpu.memory_space<vmem>>, %arg16: memref<16x3584xf32, #tpu.memory_space<vmem>>) attributes {dimension_semantics = [#tpu.dimension_semantics<parallel>], iteration_bounds = array<i64: 1>, scalar_prefetch = 0 : i64, scratch_operands = 1 : i64, tpu.core_type = #tpu.core_type<tc>, window_params = [{transform_indices = @transform_0, window_bounds = array<i64: 16, 28>}, {pipeline_mode = #tpu.pipeline_mode<synchronous>, transform_indices = @transform_1, window_bounds = array<i64: 28, 3584>}, {pipeline_mode = #tpu.pipeline_mode<synchronous>, transform_indices = @transform_2, window_bounds = array<i64: 1, 3584>}, {pipeline_mode = #tpu.pipeline_mode<synchronous>, transform_indices = @transform_3, window_bounds = array<i64: 128, 512>}, {pipeline_mode = #tpu.pipeline_mode<synchronous>, transform_indices = @transform_4, window_bounds = array<i64: 128, 128>}, {pipeline_mode = #tpu.pipeline_mode<synchronous>, transform_indices = @transform_5, window_bounds = array<i64: 1, 128>}, {pipeline_mode = #tpu.pipeline_mode<synchronous>, transform_indices = @transform_6, window_bounds = array<i64: 128, 2>}, {pipeline_mode = #tpu.pipeline_mode<synchronous>, transform_indices = @transform_7, window_bounds = array<i64: 1, 2>}, {pipeline_mode = #tpu.pipeline_mode<synchronous>, transform_indices = @transform_8, window_bounds = array<i64: 28, 128>}, {pipeline_mode = #tpu.pipeline_mode<synchronous>, transform_indices = @transform_9, window_bounds = array<i64: 1, 128>}, {pipeline_mode = #tpu.pipeline_mode<synchronous>, transform_indices = @transform_10, window_bounds = array<i64: 128, 128>}, {pipeline_mode = #tpu.pipeline_mode<synchronous>, transform_indices = @transform_11, window_bounds = array<i64: 1, 128>}, {pipeline_mode = #tpu.pipeline_mode<synchronous>, transform_indices = @transform_12, window_bounds = array<i64: 128, 1>}, {pipeline_mode = #tpu.pipeline_mode<synchronous>, transform_indices = @transform_13, window_bounds = array<i64: 1, 1>}, {transform_indices = @transform_14, window_bounds = array<i64: 16, 2>}]} {
    %c0 = arith.constant 0 : index
    %c0_0 = arith.constant 0 : index
    %0 = vector.load %arg1[%c0, %c0_0] : memref<16x28xf32, #tpu.memory_space<vmem>>, vector<16x28xf32>
    %c0_1 = arith.constant 0 : index
    %c0_2 = arith.constant 0 : index
    %1 = vector.load %arg2[%c0_1, %c0_2] : memref<28x3584xf32, #tpu.memory_space<vmem>>, vector<28x3584xf32>
    %cst = arith.constant dense<0.000000e+00> : vector<16x3584xf32>
    %2 = tpu.matmul %0, %1, %cst {dimension_numbers = #tpu.dot_dimension_numbers<[1], [0], [0], [1], [0, 0, 1, 1], [], []>} : vector<16x28xf32>, vector<28x3584xf32>, vector<16x3584xf32> -> vector<16x3584xf32>
    %c0_3 = arith.constant 0 : index
    %c0_4 = arith.constant 0 : index
    %3 = vector.load %arg3[%c0_3, %c0_4] : memref<1x3584xf32, #tpu.memory_space<vmem>>, vector<1x3584xf32>
    %4 = vector.broadcast %3 : vector<1x3584xf32> to vector<16x3584xf32>
    %5 = arith.addf %2, %4 : vector<16x3584xf32>
    %c0_5 = arith.constant 0 : index
    %c0_6 = arith.constant 0 : index
    %6 = vector.load %arg16[%c0_5, %c0_6] : memref<16x3584xf32, #tpu.memory_space<vmem>>, vector<16x3584xf32>
    tpu.vector_store %arg16[%c0_5, %c0_6], %5 {strides = array<i32>} : memref<16x3584xf32, #tpu.memory_space<vmem>>, vector<16x3584xf32>,
    %cst_7 = arith.constant 0.000000e+00 : f32
    %7 = vector.broadcast %cst_7 : f32 to vector<16x128xf32>
    %cst_8 = arith.constant 0.000000e+00 : f32
    %8 = vector.broadcast %cst_8 : f32 to vector<16x128xf32>
    %c0_9 = arith.constant 0 : index
    %c0_10 = arith.constant 0 : index
    %9 = vector.load %arg16[%c0_9, %c0_10] : memref<16x3584xf32, #tpu.memory_space<vmem>>, vector<16x512xf32>
    %c0_11 = arith.constant 0 : index
    %c0_12 = arith.constant 0 : index
    %10 = vector.load %arg4[%c0_11, %c0_12] : memref<128x512xf32, #tpu.memory_space<vmem>>, vector<128x512xf32>
    %cst_13 = arith.constant dense<0.000000e+00> : vector<16x512xf32>
    %11 = tpu.matmul %7, %10, %cst_13 {dimension_numbers = #tpu.dot_dimension_numbers<[1], [0], [0], [1], [0, 0, 1, 1], [], []>} : vector<16x128xf32>, vector<128x512xf32>, vector<16x512xf32> -> vector<16x512xf32>
    %12 = arith.addf %9, %11 : vector<16x512xf32>
    %13 = arith.negf %12 : vector<16x512xf32>
    %14 = math.exp %13 : vector<16x512xf32>
    %cst_14 = arith.constant 1.000000e+00 : f32
    %15 = vector.broadcast %cst_14 : f32 to vector<16x512xf32>
    %16 = arith.addf %15, %14 : vector<16x512xf32>
    %17 = arith.divf %15, %16 : vector<16x512xf32>
    %18 = vector.extract_strided_slice %17 {offsets = [0, 0], sizes = [16, 128], strides = [1, 1]} : vector<16x512xf32> to vector<16x128xf32>
    %19 = vector.extract_strided_slice %17 {offsets = [0, 128], sizes = [16, 128], strides = [1, 1]} : vector<16x512xf32> to vector<16x128xf32>
    %20 = vector.extract_strided_slice %17 {offsets = [0, 256], sizes = [16, 128], strides = [1, 1]} : vector<16x512xf32> to vector<16x128xf32>
    %cst_15 = arith.constant 2.000000e+00 : f32
    %21 = vector.broadcast %cst_15 : f32 to vector<16x128xf32>
    %22 = arith.mulf %21, %20 : vector<16x128xf32>
    %cst_16 = arith.constant 1.000000e+00 : f32
    %23 = vector.broadcast %cst_16 : f32 to vector<16x128xf32>
    %24 = arith.subf %22, %23 : vector<16x128xf32>
    %25 = vector.extract_strided_slice %17 {offsets = [0, 384], sizes = [16, 128], strides = [1, 1]} : vector<16x512xf32> to vector<16x128xf32>
    %26 = arith.mulf %19, %8 : vector<16x128xf32>
    %27 = arith.mulf %18, %24 : vector<16x128xf32>
    %28 = arith.addf %26, %27 : vector<16x128xf32>
    %29 = math.tanh %28 : vector<16x128xf32>
    %30 = arith.mulf %25, %29 : vector<16x128xf32>
    %c0_17 = arith.constant 0 : index
    %c512 = arith.constant 512 : index
    %31 = vector.load %arg16[%c0_17, %c512] : memref<16x3584xf32, #tpu.memory_space<vmem>>, vector<16x512xf32>
    %c0_18 = arith.constant 0 : index
    %c0_19 = arith.constant 0 : index
    %32 = vector.load %arg4[%c0_18, %c0_19] : memref<128x512xf32, #tpu.memory_space<vmem>>, vector<128x512xf32>
    %cst_20 = arith.constant dense<0.000000e+00> : vector<16x512xf32>
    %33 = tpu.matmul %30, %32, %cst_20 {dimension_numbers = #tpu.dot_dimension_numbers<[1], [0], [0], [1], [0, 0, 1, 1], [], []>} : vector<16x128xf32>, vector<128x512xf32>, vector<16x512xf32> -> vector<16x512xf32>
    %34 = arith.addf %31, %33 : vector<16x512xf32>
    %35 = arith.negf %34 : vector<16x512xf32>
    %36 = math.exp %35 : vector<16x512xf32>
    %cst_21 = arith.constant 1.000000e+00 : f32
    %37 = vector.broadcast %cst_21 : f32 to vector<16x512xf32>
    %38 = arith.addf %37, %36 : vector<16x512xf32>
    %39 = arith.divf %37, %38 : vector<16x512xf32>
    %40 = vector.extract_strided_slice %39 {offsets = [0, 0], sizes = [16, 128], strides = [1, 1]} : vector<16x512xf32> to vector<16x128xf32>
    %41 = vector.extract_strided_slice %39 {offsets = [0, 128], sizes = [16, 128], strides = [1, 1]} : vector<16x512xf32> to vector<16x128xf32>
    %42 = vector.extract_strided_slice %39 {offsets = [0, 256], sizes = [16, 128], strides = [1, 1]} : vector<16x512xf32> to vector<16x128xf32>
    %cst_22 = arith.constant 2.000000e+00 : f32
    %43 = vector.broadcast %cst_22 : f32 to vector<16x128xf32>
    %44 = arith.mulf %43, %42 : vector<16x128xf32>
    %cst_23 = arith.constant 1.000000e+00 : f32
    %45 = vector.broadcast %cst_23 : f32 to vector<16x128xf32>
    %46 = arith.subf %44, %45 : vector<16x128xf32>
    %47 = vector.extract_strided_slice %39 {offsets = [0, 384], sizes = [16, 128], strides = [1, 1]} : vector<16x512xf32> to vector<16x128xf32>
    %48 = arith.mulf %41, %28 : vector<16x128xf32>
    %49 = arith.mulf %40, %46 : vector<16x128xf32>
    %50 = arith.addf %48, %49 : vector<16x128xf32>
    %51 = math.tanh %50 : vector<16x128xf32>
    %52 = arith.mulf %47, %51 : vector<16x128xf32>
    %c0_24 = arith.constant 0 : index
    %c1024 = arith.constant 1024 : index
    %53 = vector.load %arg16[%c0_24, %c1024] : memref<16x3584xf32, #tpu.memory_space<vmem>>, vector<16x512xf32>
    %c0_25 = arith.constant 0 : index
    %c0_26 = arith.constant 0 : index
    %54 = vector.load %arg4[%c0_25, %c0_26] : memref<128x512xf32, #tpu.memory_space<vmem>>, vector<128x512xf32>
    %cst_27 = arith.constant dense<0.000000e+00> : vector<16x512xf32>
    %55 = tpu.matmul %52, %54, %cst_27 {dimension_numbers = #tpu.dot_dimension_numbers<[1], [0], [0], [1], [0, 0, 1, 1], [], []>} : vector<16x128xf32>, vector<128x512xf32>, vector<16x512xf32> -> vector<16x512xf32>
    %56 = arith.addf %53, %55 : vector<16x512xf32>
    %57 = arith.negf %56 : vector<16x512xf32>
    %58 = math.exp %57 : vector<16x512xf32>
    %cst_28 = arith.constant 1.000000e+00 : f32
    %59 = vector.broadcast %cst_28 : f32 to vector<16x512xf32>
    %60 = arith.addf %59, %58 : vector<16x512xf32>
    %61 = arith.divf %59, %60 : vector<16x512xf32>
    %62 = vector.extract_strided_slice %61 {offsets = [0, 0], sizes = [16, 128], strides = [1, 1]} : vector<16x512xf32> to vector<16x128xf32>
    %63 = vector.extract_strided_slice %61 {offsets = [0, 128], sizes = [16, 128], strides = [1, 1]} : vector<16x512xf32> to vector<16x128xf32>
    %64 = vector.extract_strided_slice %61 {offsets = [0, 256], sizes = [16, 128], strides = [1, 1]} : vector<16x512xf32> to vector<16x128xf32>
    %cst_29 = arith.constant 2.000000e+00 : f32
    %65 = vector.broadcast %cst_29 : f32 to vector<16x128xf32>
    %66 = arith.mulf %65, %64 : vector<16x128xf32>
    %cst_30 = arith.constant 1.000000e+00 : f32
    %67 = vector.broadcast %cst_30 : f32 to vector<16x128xf32>
    %68 = arith.subf %66, %67 : vector<16x128xf32>
    %69 = vector.extract_strided_slice %61 {offsets = [0, 384], sizes = [16, 128], strides = [1, 1]} : vector<16x512xf32> to vector<16x128xf32>
    %70 = arith.mulf %63, %50 : vector<16x128xf32>
    %71 = arith.mulf %62, %68 : vector<16x128xf32>
    %72 = arith.addf %70, %71 : vector<16x128xf32>
    %73 = math.tanh %72 : vector<16x128xf32>
    %74 = arith.mulf %69, %73 : vector<16x128xf32>
    %c0_31 = arith.constant 0 : index
    %c1536 = arith.constant 1536 : index
    %75 = vector.load %arg16[%c0_31, %c1536] : memref<16x3584xf32, #tpu.memory_space<vmem>>, vector<16x512xf32>
    %c0_32 = arith.constant 0 : index
    %c0_33 = arith.constant 0 : index
    %76 = vector.load %arg4[%c0_32, %c0_33] : memref<128x512xf32, #tpu.memory_space<vmem>>, vector<128x512xf32>
    %cst_34 = arith.constant dense<0.000000e+00> : vector<16x512xf32>
    %77 = tpu.matmul %74, %76, %cst_34 {dimension_numbers = #tpu.dot_dimension_numbers<[1], [0], [0], [1], [0, 0, 1, 1], [], []>} : vector<16x128xf32>, vector<128x512xf32>, vector<16x512xf32> -> vector<16x512xf32>
    %78 = arith.addf %75, %77 : vector<16x512xf32>
    %79 = arith.negf %78 : vector<16x512xf32>
    %80 = math.exp %79 : vector<16x512xf32>
    %cst_35 = arith.constant 1.000000e+00 : f32
    %81 = vector.broadcast %cst_35 : f32 to vector<16x512xf32>
    %82 = arith.addf %81, %80 : vector<16x512xf32>
    %83 = arith.divf %81, %82 : vector<16x512xf32>
    %84 = vector.extract_strided_slice %83 {offsets = [0, 0], sizes = [16, 128], strides = [1, 1]} : vector<16x512xf32> to vector<16x128xf32>
    %85 = vector.extract_strided_slice %83 {offsets = [0, 128], sizes = [16, 128], strides = [1, 1]} : vector<16x512xf32> to vector<16x128xf32>
    %86 = vector.extract_strided_slice %83 {offsets = [0, 256], sizes = [16, 128], strides = [1, 1]} : vector<16x512xf32> to vector<16x128xf32>
    %cst_36 = arith.constant 2.000000e+00 : f32
    %87 = vector.broadcast %cst_36 : f32 to vector<16x128xf32>
    %88 = arith.mulf %87, %86 : vector<16x128xf32>
    %cst_37 = arith.constant 1.000000e+00 : f32
    %89 = vector.broadcast %cst_37 : f32 to vector<16x128xf32>
    %90 = arith.subf %88, %89 : vector<16x128xf32>
    %91 = vector.extract_strided_slice %83 {offsets = [0, 384], sizes = [16, 128], strides = [1, 1]} : vector<16x512xf32> to vector<16x128xf32>
    %92 = arith.mulf %85, %72 : vector<16x128xf32>
    %93 = arith.mulf %84, %90 : vector<16x128xf32>
    %94 = arith.addf %92, %93 : vector<16x128xf32>
    %95 = math.tanh %94 : vector<16x128xf32>
    %96 = arith.mulf %91, %95 : vector<16x128xf32>
    %c0_38 = arith.constant 0 : index
    %c2048 = arith.constant 2048 : index
    %97 = vector.load %arg16[%c0_38, %c2048] : memref<16x3584xf32, #tpu.memory_space<vmem>>, vector<16x512xf32>
    %c0_39 = arith.constant 0 : index
    %c0_40 = arith.constant 0 : index
    %98 = vector.load %arg4[%c0_39, %c0_40] : memref<128x512xf32, #tpu.memory_space<vmem>>, vector<128x512xf32>
    %cst_41 = arith.constant dense<0.000000e+00> : vector<16x512xf32>
    %99 = tpu.matmul %96, %98, %cst_41 {dimension_numbers = #tpu.dot_dimension_numbers<[1], [0], [0], [1], [0, 0, 1, 1], [], []>} : vector<16x128xf32>, vector<128x512xf32>, vector<16x512xf32> -> vector<16x512xf32>
    %100 = arith.addf %97, %99 : vector<16x512xf32>
    %101 = arith.negf %100 : vector<16x512xf32>
    %102 = math.exp %101 : vector<16x512xf32>
    %cst_42 = arith.constant 1.000000e+00 : f32
    %103 = vector.broadcast %cst_42 : f32 to vector<16x512xf32>
    %104 = arith.addf %103, %102 : vector<16x512xf32>
    %105 = arith.divf %103, %104 : vector<16x512xf32>
    %106 = vector.extract_strided_slice %105 {offsets = [0, 0], sizes = [16, 128], strides = [1, 1]} : vector<16x512xf32> to vector<16x128xf32>
    %107 = vector.extract_strided_slice %105 {offsets = [0, 128], sizes = [16, 128], strides = [1, 1]} : vector<16x512xf32> to vector<16x128xf32>
    %108 = vector.extract_strided_slice %105 {offsets = [0, 256], sizes = [16, 128], strides = [1, 1]} : vector<16x512xf32> to vector<16x128xf32>
    %cst_43 = arith.constant 2.000000e+00 : f32
    %109 = vector.broadcast %cst_43 : f32 to vector<16x128xf32>
    %110 = arith.mulf %109, %108 : vector<16x128xf32>
    %cst_44 = arith.constant 1.000000e+00 : f32
    %111 = vector.broadcast %cst_44 : f32 to vector<16x128xf32>
    %112 = arith.subf %110, %111 : vector<16x128xf32>
    %113 = vector.extract_strided_slice %105 {offsets = [0, 384], sizes = [16, 128], strides = [1, 1]} : vector<16x512xf32> to vector<16x128xf32>
    %114 = arith.mulf %107, %94 : vector<16x128xf32>
    %115 = arith.mulf %106, %112 : vector<16x128xf32>
    %116 = arith.addf %114, %115 : vector<16x128xf32>
    %117 = math.tanh %116 : vector<16x128xf32>
    %118 = arith.mulf %113, %117 : vector<16x128xf32>
    %c0_45 = arith.constant 0 : index
    %c2560 = arith.constant 2560 : index
    %119 = vector.load %arg16[%c0_45, %c2560] : memref<16x3584xf32, #tpu.memory_space<vmem>>, vector<16x512xf32>
    %c0_46 = arith.constant 0 : index
    %c0_47 = arith.constant 0 : index
    %120 = vector.load %arg4[%c0_46, %c0_47] : memref<128x512xf32, #tpu.memory_space<vmem>>, vector<128x512xf32>
    %cst_48 = arith.constant dense<0.000000e+00> : vector<16x512xf32>
    %121 = tpu.matmul %118, %120, %cst_48 {dimension_numbers = #tpu.dot_dimension_numbers<[1], [0], [0], [1], [0, 0, 1, 1], [], []>} : vector<16x128xf32>, vector<128x512xf32>, vector<16x512xf32> -> vector<16x512xf32>
    %122 = arith.addf %119, %121 : vector<16x512xf32>
    %123 = arith.negf %122 : vector<16x512xf32>
    %124 = math.exp %123 : vector<16x512xf32>
    %cst_49 = arith.constant 1.000000e+00 : f32
    %125 = vector.broadcast %cst_49 : f32 to vector<16x512xf32>
    %126 = arith.addf %125, %124 : vector<16x512xf32>
    %127 = arith.divf %125, %126 : vector<16x512xf32>
    %128 = vector.extract_strided_slice %127 {offsets = [0, 0], sizes = [16, 128], strides = [1, 1]} : vector<16x512xf32> to vector<16x128xf32>
    %129 = vector.extract_strided_slice %127 {offsets = [0, 128], sizes = [16, 128], strides = [1, 1]} : vector<16x512xf32> to vector<16x128xf32>
    %130 = vector.extract_strided_slice %127 {offsets = [0, 256], sizes = [16, 128], strides = [1, 1]} : vector<16x512xf32> to vector<16x128xf32>
    %cst_50 = arith.constant 2.000000e+00 : f32
    %131 = vector.broadcast %cst_50 : f32 to vector<16x128xf32>
    %132 = arith.mulf %131, %130 : vector<16x128xf32>
    %cst_51 = arith.constant 1.000000e+00 : f32
    %133 = vector.broadcast %cst_51 : f32 to vector<16x128xf32>
    %134 = arith.subf %132, %133 : vector<16x128xf32>
    %135 = vector.extract_strided_slice %127 {offsets = [0, 384], sizes = [16, 128], strides = [1, 1]} : vector<16x512xf32> to vector<16x128xf32>
    %136 = arith.mulf %129, %116 : vector<16x128xf32>
    %137 = arith.mulf %128, %134 : vector<16x128xf32>
    %138 = arith.addf %136, %137 : vector<16x128xf32>
    %139 = math.tanh %138 : vector<16x128xf32>
    %140 = arith.mulf %135, %139 : vector<16x128xf32>
    %c0_52 = arith.constant 0 : index
    %c3072 = arith.constant 3072 : index
    %141 = vector.load %arg16[%c0_52, %c3072] : memref<16x3584xf32, #tpu.memory_space<vmem>>, vector<16x512xf32>
    %c0_53 = arith.constant 0 : index
    %c0_54 = arith.constant 0 : index
    %142 = vector.load %arg4[%c0_53, %c0_54] : memref<128x512xf32, #tpu.memory_space<vmem>>, vector<128x512xf32>
    %cst_55 = arith.constant dense<0.000000e+00> : vector<16x512xf32>
    %143 = tpu.matmul %140, %142, %cst_55 {dimension_numbers = #tpu.dot_dimension_numbers<[1], [0], [0], [1], [0, 0, 1, 1], [], []>} : vector<16x128xf32>, vector<128x512xf32>, vector<16x512xf32> -> vector<16x512xf32>
    %144 = arith.addf %141, %143 : vector<16x512xf32>
    %145 = arith.negf %144 : vector<16x512xf32>
    %146 = math.exp %145 : vector<16x512xf32>
    %cst_56 = arith.constant 1.000000e+00 : f32
    %147 = vector.broadcast %cst_56 : f32 to vector<16x512xf32>
    %148 = arith.addf %147, %146 : vector<16x512xf32>
    %149 = arith.divf %147, %148 : vector<16x512xf32>
    %150 = vector.extract_strided_slice %149 {offsets = [0, 0], sizes = [16, 128], strides = [1, 1]} : vector<16x512xf32> to vector<16x128xf32>
    %151 = vector.extract_strided_slice %149 {offsets = [0, 128], sizes = [16, 128], strides = [1, 1]} : vector<16x512xf32> to vector<16x128xf32>
    %152 = vector.extract_strided_slice %149 {offsets = [0, 256], sizes = [16, 128], strides = [1, 1]} : vector<16x512xf32> to vector<16x128xf32>
    %cst_57 = arith.constant 2.000000e+00 : f32
    %153 = vector.broadcast %cst_57 : f32 to vector<16x128xf32>
    %154 = arith.mulf %153, %152 : vector<16x128xf32>
    %cst_58 = arith.constant 1.000000e+00 : f32
    %155 = vector.broadcast %cst_58 : f32 to vector<16x128xf32>
    %156 = arith.subf %154, %155 : vector<16x128xf32>
    %157 = vector.extract_strided_slice %149 {offsets = [0, 384], sizes = [16, 128], strides = [1, 1]} : vector<16x512xf32> to vector<16x128xf32>
    %158 = arith.mulf %151, %138 : vector<16x128xf32>
    %159 = arith.mulf %150, %156 : vector<16x128xf32>
    %160 = arith.addf %158, %159 : vector<16x128xf32>
    %161 = math.tanh %160 : vector<16x128xf32>
    %162 = arith.mulf %157, %161 : vector<16x128xf32>
    %c0_59 = arith.constant 0 : index
    %c0_60 = arith.constant 0 : index
    %163 = vector.load %arg9[%c0_59, %c0_60] : memref<28x128xf32, #tpu.memory_space<vmem>>, vector<28x128xf32>
    %cst_61 = arith.constant dense<0.000000e+00> : vector<16x128xf32>
    %164 = tpu.matmul %0, %163, %cst_61 {dimension_numbers = #tpu.dot_dimension_numbers<[1], [0], [0], [1], [0, 0, 1, 1], [], []>} : vector<16x28xf32>, vector<28x128xf32>, vector<16x128xf32> -> vector<16x128xf32>
    %c0_62 = arith.constant 0 : index
    %c0_63 = arith.constant 0 : index
    %165 = vector.load %arg10[%c0_62, %c0_63] : memref<1x128xf32, #tpu.memory_space<vmem>>, vector<1x128xf32>
    %166 = vector.broadcast %165 : vector<1x128xf32> to vector<16x128xf32>
    %167 = arith.addf %164, %166 : vector<16x128xf32>
    %cst_64 = arith.constant 0.000000e+00 : f32
    %168 = vector.broadcast %cst_64 : f32 to vector<16x128xf32>
    %169 = arith.maximumf %167, %168 : vector<16x128xf32>
    %c0_65 = arith.constant 0 : index
    %c0_66 = arith.constant 0 : index
    %170 = vector.load %arg11[%c0_65, %c0_66] : memref<128x128xf32, #tpu.memory_space<vmem>>, vector<128x128xf32>
    %cst_67 = arith.constant dense<0.000000e+00> : vector<16x128xf32>
    %171 = tpu.matmul %169, %170, %cst_67 {dimension_numbers = #tpu.dot_dimension_numbers<[1], [0], [0], [1], [0, 0, 1, 1], [], []>} : vector<16x128xf32>, vector<128x128xf32>, vector<16x128xf32> -> vector<16x128xf32>
    %c0_68 = arith.constant 0 : index
    %c0_69 = arith.constant 0 : index
    %172 = vector.load %arg12[%c0_68, %c0_69] : memref<1x128xf32, #tpu.memory_space<vmem>>, vector<1x128xf32>
    %173 = vector.broadcast %172 : vector<1x128xf32> to vector<16x128xf32>
    %174 = arith.addf %171, %173 : vector<16x128xf32>
    %cst_70 = arith.constant 0.000000e+00 : f32
    %175 = vector.broadcast %cst_70 : f32 to vector<16x128xf32>
    %176 = arith.maximumf %174, %175 : vector<16x128xf32>
    %c0_71 = arith.constant 0 : index
    %c0_72 = arith.constant 0 : index
    %177 = vector.load %arg13[%c0_71, %c0_72] : memref<128x1xf32, #tpu.memory_space<vmem>>, vector<128x1xf32>
    %cst_73 = arith.constant dense<0.000000e+00> : vector<16x1xf32>
    %178 = tpu.matmul %176, %177, %cst_73 {dimension_numbers = #tpu.dot_dimension_numbers<[1], [0], [0], [1], [0, 0, 1, 1], [], []>} : vector<16x128xf32>, vector<128x1xf32>, vector<16x1xf32> -> vector<16x1xf32>
    %c0_74 = arith.constant 0 : index
    %c0_75 = arith.constant 0 : index
    %179 = vector.load %arg14[%c0_74, %c0_75] : memref<1x1xf32, #tpu.memory_space<vmem>>, vector<1x1xf32>
    %180 = vector.broadcast %179 : vector<1x1xf32> to vector<16x1xf32>
    %181 = arith.addf %178, %180 : vector<16x1xf32>
    %182 = arith.negf %181 : vector<16x1xf32>
    %183 = math.exp %182 : vector<16x1xf32>
    %cst_76 = arith.constant 1.000000e+00 : f32
    %184 = vector.broadcast %cst_76 : f32 to vector<16x1xf32>
    %185 = arith.addf %184, %183 : vector<16x1xf32>
    %186 = arith.divf %184, %185 : vector<16x1xf32>
    %c0_77 = arith.constant 0 : index
    %c0_78 = arith.constant 0 : index
    %187 = vector.load %arg5[%c0_77, %c0_78] : memref<128x128xf32, #tpu.memory_space<vmem>>, vector<128x128xf32>
    %cst_79 = arith.constant dense<0.000000e+00> : vector<16x128xf32>
    %188 = tpu.matmul %162, %187, %cst_79 {dimension_numbers = #tpu.dot_dimension_numbers<[1], [0], [0], [1], [0, 0, 1, 1], [], []>} : vector<16x128xf32>, vector<128x128xf32>, vector<16x128xf32> -> vector<16x128xf32>
    %c0_80 = arith.constant 0 : index
    %c0_81 = arith.constant 0 : index
    %189 = vector.load %arg6[%c0_80, %c0_81] : memref<1x128xf32, #tpu.memory_space<vmem>>, vector<1x128xf32>
    %190 = vector.broadcast %189 : vector<1x128xf32> to vector<16x128xf32>
    %191 = arith.addf %188, %190 : vector<16x128xf32>
    %cst_82 = arith.constant 0.000000e+00 : f32
    %192 = vector.broadcast %cst_82 : f32 to vector<16x128xf32>
    %193 = arith.maximumf %191, %192 : vector<16x128xf32>
    %c0_83 = arith.constant 0 : index
    %c0_84 = arith.constant 0 : index
    %194 = vector.load %arg7[%c0_83, %c0_84] : memref<128x2xf32, #tpu.memory_space<vmem>>, vector<128x2xf32>
    %cst_85 = arith.constant dense<0.000000e+00> : vector<16x2xf32>
    %195 = tpu.matmul %193, %194, %cst_85 {dimension_numbers = #tpu.dot_dimension_numbers<[1], [0], [0], [1], [0, 0, 1, 1], [], []>} : vector<16x128xf32>, vector<128x2xf32>, vector<16x2xf32> -> vector<16x2xf32>
    %c0_86 = arith.constant 0 : index
    %c0_87 = arith.constant 0 : index
    %196 = vector.load %arg8[%c0_86, %c0_87] : memref<1x2xf32, #tpu.memory_space<vmem>>, vector<1x2xf32>
    %197 = vector.broadcast %196 : vector<1x2xf32> to vector<16x2xf32>
    %198 = arith.addf %195, %197 : vector<16x2xf32>
    %cst_88 = arith.constant 1.000000e+00 : f32
    %199 = vector.broadcast %cst_88 : f32 to vector<16x1xf32>
    %200 = arith.subf %199, %186 : vector<16x1xf32>
    %201 = vector.extract_strided_slice %198 {offsets = [0, 0], sizes = [16, 1], strides = [1, 1]} : vector<16x2xf32> to vector<16x1xf32>
    %202 = arith.mulf %200, %201 : vector<16x1xf32>
    %203 = vector.extract_strided_slice %198 {offsets = [0, 1], sizes = [16, 1], strides = [1, 1]} : vector<16x2xf32> to vector<16x1xf32>
    %204 = arith.mulf %186, %203 : vector<16x1xf32>
    %205 = arith.addf %202, %204 : vector<16x1xf32>
    %206 = tpu.concatenate %186, %205 in 1 : vector<16x1xf32>, vector<16x1xf32> -> vector<16x2xf32>
    %c0_89 = arith.constant 0 : index
    %c0_90 = arith.constant 0 : index
    %207 = vector.load %arg15[%c0_89, %c0_90] : memref<16x2xf32, #tpu.memory_space<vmem>>, vector<16x2xf32>
    tpu.vector_store %arg15[%c0_89, %c0_90], %206 {strides = array<i32>} : memref<16x2xf32, #tpu.memory_space<vmem>>, vector<16x2xf32>,
    return
  }
  func.func @transform_0(%arg0: i32) -> (i32, i32) {
    %c0_i32 = arith.constant 0 : i32
    %c0_i32_0 = arith.constant 0 : i32
    return %arg0, %c0_i32 : i32, i32
  }
  func.func @transform_1(%arg0: i32) -> (i32, i32) {
    %c0_i32 = arith.constant 0 : i32
    %c0_i32_0 = arith.constant 0 : i32
    %c0_i32_1 = arith.constant 0 : i32
    return %c0_i32, %c0_i32_0 : i32, i32
  }
  func.func @transform_2(%arg0: i32) -> (i32, i32) {
    %c0_i32 = arith.constant 0 : i32
    %c0_i32_0 = arith.constant 0 : i32
    %c0_i32_1 = arith.constant 0 : i32
    return %c0_i32, %c0_i32_0 : i32, i32
  }
  func.func @transform_3(%arg0: i32) -> (i32, i32) {
    %c0_i32 = arith.constant 0 : i32
    %c0_i32_0 = arith.constant 0 : i32
    %c0_i32_1 = arith.constant 0 : i32
    return %c0_i32, %c0_i32_0 : i32, i32
  }
  func.func @transform_4(%arg0: i32) -> (i32, i32) {
    %c0_i32 = arith.constant 0 : i32
    %c0_i32_0 = arith.constant 0 : i32
    %c0_i32_1 = arith.constant 0 : i32
    return %c0_i32, %c0_i32_0 : i32, i32
  }
  func.func @transform_5(%arg0: i32) -> (i32, i32) {
    %c0_i32 = arith.constant 0 : i32
    %c0_i32_0 = arith.constant 0 : i32
    %c0_i32_1 = arith.constant 0 : i32
    return %c0_i32, %c0_i32_0 : i32, i32
  }
  func.func @transform_6(%arg0: i32) -> (i32, i32) {
    %c0_i32 = arith.constant 0 : i32
    %c0_i32_0 = arith.constant 0 : i32
    %c0_i32_1 = arith.constant 0 : i32
    return %c0_i32, %c0_i32_0 : i32, i32
  }
  func.func @transform_7(%arg0: i32) -> (i32, i32) {
    %c0_i32 = arith.constant 0 : i32
    %c0_i32_0 = arith.constant 0 : i32
    %c0_i32_1 = arith.constant 0 : i32
    return %c0_i32, %c0_i32_0 : i32, i32
  }
  func.func @transform_8(%arg0: i32) -> (i32, i32) {
    %c0_i32 = arith.constant 0 : i32
    %c0_i32_0 = arith.constant 0 : i32
    %c0_i32_1 = arith.constant 0 : i32
    return %c0_i32, %c0_i32_0 : i32, i32
  }
  func.func @transform_9(%arg0: i32) -> (i32, i32) {
    %c0_i32 = arith.constant 0 : i32
    %c0_i32_0 = arith.constant 0 : i32
    %c0_i32_1 = arith.constant 0 : i32
    return %c0_i32, %c0_i32_0 : i32, i32
  }
  func.func @transform_10(%arg0: i32) -> (i32, i32) {
    %c0_i32 = arith.constant 0 : i32
    %c0_i32_0 = arith.constant 0 : i32
    %c0_i32_1 = arith.constant 0 : i32
    return %c0_i32, %c0_i32_0 : i32, i32
  }
  func.func @transform_11(%arg0: i32) -> (i32, i32) {
    %c0_i32 = arith.constant 0 : i32
    %c0_i32_0 = arith.constant 0 : i32
    %c0_i32_1 = arith.constant 0 : i32
    return %c0_i32, %c0_i32_0 : i32, i32
  }
  func.func @transform_12(%arg0: i32) -> (i32, i32) {
    %c0_i32 = arith.constant 0 : i32
    %c0_i32_0 = arith.constant 0 : i32
    %c0_i32_1 = arith.constant 0 : i32
    return %c0_i32, %c0_i32_0 : i32, i32
  }
  func.func @transform_13(%arg0: i32) -> (i32, i32) {
    %c0_i32 = arith.constant 0 : i32
    %c0_i32_0 = arith.constant 0 : i32
    %c0_i32_1 = arith.constant 0 : i32
    return %c0_i32, %c0_i32_0 : i32, i32
  }
  func.func @transform_14(%arg0: i32) -> (i32, i32) {
    %c0_i32 = arith.constant 0 : i32
    %c0_i32_0 = arith.constant 0 : i32
    return %arg0, %c0_i32 : i32, i32
  }
}

</mosaic_0001>

<bundles_post_ra>
// kernel: lstm_joint_grc_forward.1
= control target key start
LH: loop header
LB: loop body
LE: loop exit
PB: predicated region body
PF: predicated region fallthrough
CT: control target
= control target key end

     0   :  { %s6526_s0 = inlined_call_operand.vmem [shape: f32[16,28], index: 0, kind: input, shape index: {}]   ;;  %s6527_s1 = inlined_call_operand.hbm [shape: f32[28,3584], index: 1, kind: input, shape index: {}]   ;;  %s6528_s2 = inlined_call_operand.vmem [shape: f32[1,3584], index: 2, kind: input, shape index: {}]   ;;  %s6529_s3 = inlined_call_operand.vmem [shape: f32[128,512], index: 3, kind: input, shape index: {}]   ;;  %s6530_s4 = inlined_call_operand.hbm [shape: f32[128,128], index: 4, kind: input, shape index: {}]   ;;  %s6531_s5 = inlined_call_operand.vmem [shape: f32[1,128], index: 5, kind: input, shape index: {}]   ;;  %s6532_s6 = inlined_call_operand.vmem [shape: f32[128,2], index: 6, kind: input, shape index: {}]   ;;  %s6533_s7 = inlined_call_operand.vmem [shape: f32[1,2], index: 7, kind: input, shape index: {}]   ;;  %s6534_s8 = inlined_call_operand.hbm [shape: f32[28,128], index: 8, kind: input, shape index: {}]   ;;  %s6535_s9 = inlined_call_operand.vmem [shape: f32[1,128], index: 9, kind: input, shape index: {}]   ;;  %s6536_s10 = inlined_call_operand.hbm [shape: f32[128,128], index: 10, kind: input, shape index: {}]   ;;  %s6537_s11 = inlined_call_operand.hbm [shape: f32[1,128], index: 11, kind: input, shape index: {}]   ;;  %s6538_s12 = inlined_call_operand.vmem [shape: f32[128,1], index: 12, kind: input, shape index: {}]   ;;  %s6539_s13 = inlined_call_operand.<no memory space> [shape: f32[1,1], index: 13, kind: input, shape index: {}]   ;;  %s6540_s14 = inlined_call_operand.vmem [shape: f32[16,2], index: 14, kind: output, shape index: {}]  }
   0x1   :  { %v19_v0 = vstv %s6539_s13 }
   0x2   :  { %20 = vst [vmem:[#allocation3] sm:$0x1] %v19_v0 }
   0x3   :  { %21 = vsyncpa [#allocation5], 0 }
   0x4   :  { %22 = vsyncpa [#allocation7], 0 }
   0x5   :  { %23 = vsyncpa [#allocation10], 0  ;;  %s5421_s15 = smov [#allocation6]   ;;  %s5305_s19 = scalar_lea.hbm %s6530_s4, 2048 }
   0x6   :  { %s47_s16 = sshll.u32 %s5421_s15, 4  ;;  %p5306_p0 = scmp.ne.s32.totalorder %s6530_s4, %s5305_s19  ;;  %s48_s16 = int_to_ptr.vmem [resolvable:$true] %s47_s16 }
   0x7   :  { %p5309_p1 = scmp.lt.u32.totalorder %s5305_s19, %s6530_s4 }
   0x9   :  { %p5311_p2 = pnand %p5309_p1, %p5306_p0 }
   0xb   :  { %5314 = shalt.err (!%p5311_p2)
}
   0xc   :  { %s5315_s13 = scalar_lea.vmem %s48_s16, 2048  ;;  %p5320_p4 = scmp.lt.s32.totalorder %s48_s16, %s48_s16 }
   0xd   :  { %p5316_p3 = scmp.ne.s32.totalorder %s48_s16, %s5315_s13  ;;  %p5321_p5 = scmp.lt.s32.totalorder %s5315_s13, %s5315_s13 }
   0xf   :  { %p5322_p6 = por %p5321_p5, %p5320_p4 }
  0x11   :  { %p5323_p7 = pnand %p5322_p6, %p5316_p3 }
  0x13   :  { %5326 = shalt.err (!%p5323_p7)
}
  0x14   :  { %s5422_s24 = smov 128   ;;  %s5423_s25 = smov 8  }
  0x15   :  { %53 = dma.hbm_to_vmem [thread:$0]  %s6530_s4, 2048, %s48_s16, [#allocation7], %s5422_s24, %s5422_s24, %s5423_s25  }
  0x16   :  { %s5424_s28 = smov [#allocation9]   ;;  %s5425_s30 = smov [#allocation4]  }
  0x17   :  { %s79_s29 = sshll.u32 %s5424_s28, 4  ;;  %s31_s15 = sshll.u32 %s5425_s30, 4  ;;  %s80_s29 = int_to_ptr.vmem [resolvable:$true] %s79_s29  ;;  %s32_s15 = int_to_ptr.vmem [resolvable:$true] %s31_s15 }
  0x18   :  { %s5327_s19 = scalar_lea.hbm %s6536_s10, 2048 }
  0x19   :  { %p5328_p8 = scmp.ne.s32.totalorder %s6536_s10, %s5327_s19  ;;  %p5331_p9 = scmp.lt.u32.totalorder %s5327_s19, %s6536_s10 }
  0x1b   :  { %p5333_p10 = pnand %p5331_p9, %p5328_p8 }
  0x1d   :  { %5336 = shalt.err (!%p5333_p10)
}
  0x1e   :  { %s5337_s4 = scalar_lea.vmem %s80_s29, 2048  ;;  %p5342_p12 = scmp.lt.s32.totalorder %s80_s29, %s80_s29 }
  0x1f   :  { %p5338_p11 = scmp.ne.s32.totalorder %s80_s29, %s5337_s4  ;;  %p5343_p13 = scmp.lt.s32.totalorder %s5337_s4, %s5337_s4 }
  0x21   :  { %p5344_p0 = por %p5343_p13, %p5342_p12 }
  0x23   :  { %p5345_p1 = pnand %p5344_p0, %p5338_p11 }
  0x25   :  { %5348 = shalt.err (!%p5345_p1)
}
  0x26   :  { %85 = dma.hbm_to_vmem [thread:$0]  %s6536_s10, 2048, %s80_s29, [#allocation10], %s5422_s24, %s5422_s24, %s5423_s25  }
  0x27   :  { %s5349_s28 = scalar_lea.hbm %s6527_s1, 14336 }
  0x28   :  { %p5350_p2 = scmp.ne.s32.totalorder %s6527_s1, %s5349_s28  ;;  %p5353_p3 = scmp.lt.u32.totalorder %s5349_s28, %s6527_s1 }
  0x2a   :  { %p5355_p4 = pnand %p5353_p3, %p5350_p2 }
  0x2c   :  { %5358 = shalt.err (!%p5355_p4)
}
  0x2d   :  { %s5359_s20 = scalar_lea.vmem %s32_s15, 14336  ;;  %p5364_p6 = scmp.lt.s32.totalorder %s32_s15, %s32_s15 }
  0x2e   :  { %p5360_p5 = scmp.ne.s32.totalorder %s32_s15, %s5359_s20  ;;  %p5365_p7 = scmp.lt.s32.totalorder %s5359_s20, %s5359_s20 }
  0x30   :  { %p5366_p8 = por %p5365_p7, %p5364_p6 }
  0x32   :  { %p5367_p9 = pnand %p5366_p8, %p5360_p5 }
  0x34   :  { %5370 = shalt.err (!%p5367_p9)
}
  0x35   :  { %s5426_s10 = smov 3584   ;;  %s5427_s29 = smov 224  }
  0x36   :  { %37 = dma.hbm_to_vmem [thread:$0]  %s6527_s1, 14336, %s32_s15, [#allocation5], %s5426_s10, %s5426_s10, %s5427_s29  }
  0x37   :  { %s5428_s23 = smov [#allocation8]   ;;  %s5429_s16 = smov [#allocation11]  }
  0x38   :  { %s65_s4 = sshll.u32 %s5428_s23, 4  ;;  %s92_s13 = sshll.u32 %s5429_s16, 4  ;;  %s66_s4 = int_to_ptr.vmem [resolvable:$true] %s65_s4  ;;  %s93_s13 = int_to_ptr.vmem [resolvable:$true] %s92_s13 }
  0x39   :  { %s5371_s28 = scalar_lea.hbm %s6534_s8, 512 }
  0x3a   :  { %p5372_p10 = scmp.ne.s32.totalorder %s6534_s8, %s5371_s28  ;;  %p5375_p11 = scmp.lt.u32.totalorder %s5371_s28, %s6534_s8 }
  0x3c   :  { %p5377_p12 = pnand %p5375_p11, %p5372_p10 }
  0x3e   :  { %5380 = shalt.err (!%p5377_p12)
}
  0x3f   :  { %s5381_s1 = scalar_lea.vmem %s66_s4, 512  ;;  %p5386_p0 = scmp.lt.s32.totalorder %s66_s4, %s66_s4 }
  0x40   :  { %p5382_p13 = scmp.ne.s32.totalorder %s66_s4, %s5381_s1  ;;  %p5387_p1 = scmp.lt.s32.totalorder %s5381_s1, %s5381_s1 }
  0x42   :  { %p5388_p2 = por %p5387_p1, %p5386_p0 }
  0x44   :  { %p5389_p3 = pnand %p5388_p2, %p5382_p13 }
  0x46   :  { %5392 = shalt.err (!%p5389_p3)
}
  0x47   :  { %71 = dma.hbm_to_vmem [thread:$0]  %s6534_s8, 512, %s66_s4, [#allocation7], %s5422_s24, %s5422_s24, %s5423_s25  }
  0x48   :  { %s5393_s21 = scalar_lea.hbm %s6537_s11, 16 }
  0x49   :  { %p5394_p4 = scmp.ne.s32.totalorder %s6537_s11, %s5393_s21  ;;  %p5397_p5 = scmp.lt.u32.totalorder %s5393_s21, %s6537_s11 }
  0x4b   :  { %p5399_p6 = pnand %p5397_p5, %p5394_p4 }
  0x4d   :  { %5402 = shalt.err (!%p5399_p6)
}
  0x4e   :  { %s5403_s27 = scalar_lea.vmem %s93_s13, 16  ;;  %s5407_s28 = scalar_lea.vmem %s93_s13, 32 }
  0x4f   :  { %p5404_p7 = scmp.ne.s32.totalorder %s93_s13, %s5403_s27  ;;  %p5408_p8 = scmp.lt.s32.totalorder %s93_s13, %s93_s13 }
  0x50   :  { %p5409_p9 = scmp.lt.s32.totalorder %s5407_s28, %s5403_s27 }
  0x52   :  { %p5410_p10 = por %p5409_p9, %p5408_p8 }
  0x54   :  { %p5411_p11 = pnand %p5410_p10, %p5404_p7 }
  0x56   :  { %5414 = shalt.err (!%p5411_p11)
}
  0x57   :  { %95 = dma.hbm_to_vmem [thread:$0]  %s6537_s11, 16, %s93_s13, [#allocation10]  }
  0x58   :  { %5415 = dma.done.wait [#allocation5], 14336  }
  0x59   :  { %5416 = vsyncadd [#allocation5], 4294952960 }
  0x5a   :  { %5417 = dma.done.wait [#allocation7], 2560  }
  0x5b   :  { %5418 = vsyncadd [#allocation7], 4294964736 }
  0x5c   :  { %5419 = dma.done.wait [#allocation10], 2064  }
  0x5d   :  { %5420 = vsyncadd [#allocation10], 4294965232  ;;  %v6541_v1 = vmov 0.0   ;;  %vm384_vm0 = vcmask 1043456   ;;  %vm5431_vm1 = vmmov 1   ;;  %v6549_v2 = vmov 0 }
  0x5e   :  { %533 = vmatprep.mubr.f32.mxu0 %v6541_v1  ;;  %610 = vmatprep.mubr.f32.mxu1 %v6541_v1  ;;  %vm5583_vm2 = vmpackc.low %vm384_vm0, %vm5431_vm1  ;;  %v118_v3 = vld [vmem:[#allocation4 + $0x8] sm:$0xff]  ;;  %v120_v5 = vld [vmem:[#allocation4 + $0x18] sm:$0xff]  ;;  %vm377_vm3 = vcmask 228352   ;;  %s5432_s4 = smov 127   ;;  %vm3814_vm4 = vcmask 7168   ;;  %vm3817_vm5 = vcmask 15360  }
  0x5f   :  { %v6550_v2 = vsel %vm5583_vm2, 4294967295, %v6549_v2  ;;  %v146_v4 = vld [vmem:[#allocation4 + $0xe8] sm:$0xff]  ;;  %v148_v7 = vld [vmem:[#allocation4 + $0xf8] sm:$0xff]  ;;  %v117_v8 = vld [vmem:[#allocation4] sm:$0xff] }
  0x60   :  { %6551 = vst [vmem:[#allocation15_spill] sm:$0xff] %v6550_v2  ;;  %v4192_v6 = vpack.c.bf16 %v146_v4, %v118_v3  ;;  %v145_v9 = vld [vmem:[#allocation4 + $0xe0] sm:$0xff]  ;;  %v4202_v10 = vpack.c.bf16 %v148_v7, %v120_v5  ;;  %v119_v12 = vld [vmem:[#allocation4 + $0x10] sm:$0xff]  ;;  %v174_v14 = vld [vmem:[#allocation4 + $0x1c8] sm:$0xff] }
  0x61   :  { %v4194_v11 = vpack.c.bf16 %v145_v9, %v117_v8  ;;  %v147_v13 = vld [vmem:[#allocation4 + $0xf0] sm:$0xff]  ;;  %v202_v16 = vld [vmem:[#allocation4 + $0x2a8] sm:$0xf]  ;;  %v176_v17 = vld [vmem:[#allocation4 + $0x1d8] sm:$0xff] }
  0x62   :  { %4193 = vmatprep.subr.bf16.mxu0 %v4192_v6  ;;  %v4204_v15 = vpack.c.bf16 %v147_v13, %v119_v12  ;;  %v204_v18 = vld [vmem:[#allocation4 + $0x2b8] sm:$0xf]  ;;  %4203 = vmatprep.subr.bf16.mxu1 %v4202_v10  ;;  %v4196_v19 = vpack.c.bf16 %v202_v16, %v174_v14  ;;  %v173_v21 = vld [vmem:[#allocation4 + $0x1c0] sm:$0xff]  ;;  %v175_v23 = vld [vmem:[#allocation4 + $0x1d0] sm:$0xff] }
  0x63   :  { %4195 = vmatpush1.bf16.msra.mxu0 %v4194_v11  ;;  %v4206_v20 = vpack.c.bf16 %v204_v18, %v176_v17  ;;  %v201_v22 = vld [vmem:[#allocation4 + $0x2a0] sm:$0xf]  ;;  %v203_v25 = vld [vmem:[#allocation4 + $0x2b0] sm:$0xf]  ;;  %v122_v26 = vld [vmem:[#allocation4 + $0x28] sm:$0xff] }
  0x64   :  { %4205 = vmatpush1.bf16.msra.mxu1 %v4204_v15  ;;  %v4199_v24 = vpack.c.bf16 %v201_v22, %v173_v21  ;;  %v150_v27 = vld [vmem:[#allocation4 + $0x108] sm:$0xff]  ;;  %4198 = vmatprep.subr.msk.bf16.mxu0 %vm5583_vm2, %v4196_v19  ;;  %v4209_v28 = vpack.c.bf16 %v203_v25, %v175_v23  ;;  %v124_v30 = vld [vmem:[#allocation4 + $0x38] sm:$0xff]  ;;  %v121_v34 = vld [vmem:[#allocation4 + $0x20] sm:$0xff] }
  0x65   :  { %4208 = vmatprep.subr.msk.bf16.mxu1 %vm5583_vm2, %v4206_v20  ;;  %v4212_v29 = vpack.c.bf16 %v150_v27, %v122_v26  ;;  %v152_v31 = vld [vmem:[#allocation4 + $0x118] sm:$0xff]  ;;  %v149_v35 = vld [vmem:[#allocation4 + $0x100] sm:$0xff]  ;;  %v123_v36 = vld [vmem:[#allocation4 + $0x30] sm:$0xff] }
  0x66   :  { %v5594_v32 = vld [vmem:[%s6526_s0] sm:$0xff]  ;;  %v4222_v33 = vpack.c.bf16 %v152_v31, %v124_v30  ;;  %v4214_v37 = vpack.c.bf16 %v149_v35, %v121_v34  ;;  %v151_v38 = vld [vmem:[#allocation4 + $0x110] sm:$0xff]  ;;  %v178_v39 = vld [vmem:[#allocation4 + $0x1e8] sm:$0xff] }
  0x67   :  { %4201 = vmatpush1.bf16.msk.msra.mxu0 %vm5583_vm2, %v4199_v24  ;;  %v206_v40 = vld [vmem:[#allocation4 + $0x2c8] sm:$0xf]  ;;  %v4224_v41 = vpack.c.bf16 %v151_v38, %v123_v36  ;;  %v180_v42 = vld [vmem:[#allocation4 + $0x1f8] sm:$0xff]  ;;  %v177_v45 = vld [vmem:[#allocation4 + $0x1e0] sm:$0xff] }
  0x68   :  { %4211 = vmatpush1.bf16.msk.msra.mxu1 %vm5583_vm2, %v4209_v28  ;;  %4213 = vmatprep.subr.bf16.mxu0 %v4212_v29  ;;  %v208_v43 = vld [vmem:[#allocation4 + $0x2d8] sm:$0xf]  ;;  %v4216_v44 = vpack.c.bf16 %v206_v40, %v178_v39  ;;  %v205_v46 = vld [vmem:[#allocation4 + $0x2c0] sm:$0xf]  ;;  %v179_v47 = vld [vmem:[#allocation4 + $0x1f0] sm:$0xff] }
  0x69   :  { %4223 = vmatprep.subr.bf16.mxu1 %v4222_v33  ;;  %v4226_v48 = vpack.c.bf16 %v208_v43, %v180_v42  ;;  %v207_v49 = vld [vmem:[#allocation4 + $0x2d0] sm:$0xf]  ;;  %v126_v50 = vld [vmem:[#allocation4 + $0x48] sm:$0xff]  ;;  %v4219_v53 = vpack.c.bf16 %v205_v46, %v177_v45  ;;  %v128_v54 = vld [vmem:[#allocation4 + $0x58] sm:$0xff] }
  0x6a   :  { %3829 = vmatmul.mubr.msk.f32.vlgmr.msra.gmra.mrb[0].mxu0 %vm377_vm3, %v5594_v32  ;;  %v154_v51 = vld [vmem:[#allocation4 + $0x128] sm:$0xff]  ;;  %v156_v55 = vld [vmem:[#allocation4 + $0x138] sm:$0xff]  ;;  %v4229_v56 = vpack.c.bf16 %v207_v49, %v179_v47  ;;  %v125_v57 = vld [vmem:[#allocation4 + $0x40] sm:$0xff] }
  0x6b   :  { %3833 = vmatmul.mubr.msk.f32.vlgmr.msra.gmra.mrb[0].mxu1 %vm377_vm3, %v5594_v32  ;;  %4215 = vmatpush1.bf16.msra.mxu0 %v4214_v37  ;;  %v5607_v52 = vld [vmem:[%s6526_s0 + $0x8] sm:$0xff]  ;;  %v4232_v59 = vpack.c.bf16 %v154_v51, %v126_v50  ;;  %v127_v60 = vld [vmem:[#allocation4 + $0x50] sm:$0xff]  ;;  %v4242_v62 = vpack.c.bf16 %v156_v55, %v128_v54  ;;  %v184_v4 = vld [vmem:[#allocation4 + $0x218] sm:$0xff] }
  0x6c   :  { %4225 = vmatpush1.bf16.msra.mxu1 %v4224_v41  ;;  %539 = vmatprep.mubr.f32.mxu0 %v6541_v1  ;;  %v153_v58 = vld [vmem:[#allocation4 + $0x120] sm:$0xff]  ;;  %v155_v61 = vld [vmem:[#allocation4 + $0x130] sm:$0xff]  ;;  %v182_v63 = vld [vmem:[#allocation4 + $0x208] sm:$0xff] }
  0x6d   :  { %616 = vmatprep.mubr.f32.mxu1 %v6541_v1  ;;  %4218 = vmatprep.subr.msk.bf16.mxu0 %vm5583_vm2, %v4216_v44  ;;  %v210_v0 = vld [vmem:[#allocation4 + $0x2e8] sm:$0xf]  ;;  %v4234_v3 = vpack.c.bf16 %v153_v58, %v125_v57  ;;  %v212_v5 = vld [vmem:[#allocation4 + $0x2f8] sm:$0xf]  ;;  %v4244_v6 = vpack.c.bf16 %v155_v61, %v127_v60  ;;  %v181_v7 = vld [vmem:[#allocation4 + $0x200] sm:$0xff] }
  0x6e   :  { %4228 = vmatprep.subr.msk.bf16.mxu1 %vm5583_vm2, %v4226_v48  ;;  %3830 = vmatmul.mubr.msk.f32.gmra.mrb[2].mxu0 %vm377_vm3, %v5607_v52  ;;  %v209_v8 = vld [vmem:[#allocation4 + $0x2e0] sm:$0xf]  ;;  %v4236_v9 = vpack.c.bf16 %v210_v0, %v182_v63  ;;  %v183_v10 = vld [vmem:[#allocation4 + $0x210] sm:$0xff]  ;;  %v4246_v12 = vpack.c.bf16 %v212_v5, %v184_v4  ;;  %v130_v13 = vld [vmem:[#allocation4 + $0x68] sm:$0xff] }
  0x6f   :  { %3834 = vmatmul.mubr.msk.f32.gmra.mrb[2].mxu1 %vm377_vm3, %v5607_v52  ;;  %4221 = vmatpush1.bf16.msk.msra.mxu0 %vm5583_vm2, %v4219_v53  ;;  %v211_v11 = vld [vmem:[#allocation4 + $0x2f0] sm:$0xf]  ;;  %v158_v14 = vld [vmem:[#allocation4 + $0x148] sm:$0xff]  ;;  %v4239_v15 = vpack.c.bf16 %v209_v8, %v181_v7  ;;  %v132_v16 = vld [vmem:[#allocation4 + $0x78] sm:$0xff] }
  0x70   :  { %4231 = vmatpush1.bf16.msk.msra.mxu1 %vm5583_vm2, %v4229_v56  ;;  %687 = vmatprep.mubr.f32.mxu0 %v6541_v1  ;;  %v160_v17 = vld [vmem:[#allocation4 + $0x158] sm:$0xff]  ;;  %v4249_v18 = vpack.c.bf16 %v211_v11, %v183_v10  ;;  %v129_v19 = vld [vmem:[#allocation4 + $0x60] sm:$0xff]  ;;  %v4252_v21 = vpack.c.bf16 %v158_v14, %v130_v13  ;;  %v131_v22 = vld [vmem:[#allocation4 + $0x70] sm:$0xff] }
  0x71   :  { %764 = vmatprep.mubr.f32.mxu1 %v6541_v1  ;;  %4233 = vmatprep.subr.bf16.mxu0 %v4232_v59  ;;  %v157_v20 = vld [vmem:[#allocation4 + $0x140] sm:$0xff]  ;;  %v159_v23 = vld [vmem:[#allocation4 + $0x150] sm:$0xff]  ;;  %v4262_v24 = vpack.c.bf16 %v160_v17, %v132_v16  ;;  %v186_v25 = vld [vmem:[#allocation4 + $0x228] sm:$0xff] }
  0x72   :  { %4243 = vmatprep.subr.bf16.mxu1 %v4242_v62  ;;  %3837 = vmatmul.mubr.msk.f32.vlgmr.msra.gmra.mrb[4].mxu0 %vm377_vm3, %v5594_v32  ;;  %v214_v26 = vld [vmem:[#allocation4 + $0x308] sm:$0xf]  ;;  %v4254_v27 = vpack.c.bf16 %v157_v20, %v129_v19  ;;  %v188_v28 = vld [vmem:[#allocation4 + $0x238] sm:$0xff]  ;;  %v4264_v30 = vpack.c.bf16 %v159_v23, %v131_v22  ;;  %v185_v31 = vld [vmem:[#allocation4 + $0x220] sm:$0xff] }
  0x73   :  { %3841 = vmatmul.mubr.msk.f32.vlgmr.msra.gmra.mrb[4].mxu1 %vm377_vm3, %v5594_v32  ;;  %4235 = vmatpush1.bf16.msra.mxu0 %v4234_v3  ;;  %v216_v29 = vld [vmem:[#allocation4 + $0x318] sm:$0xf]  ;;  %v213_v33 = vld [vmem:[#allocation4 + $0x300] sm:$0xf]  ;;  %v4256_v34 = vpack.c.bf16 %v214_v26, %v186_v25  ;;  %v187_v35 = vld [vmem:[#allocation4 + $0x230] sm:$0xff] }
  0x74   :  { %4245 = vmatpush1.bf16.msra.mxu1 %v4244_v6  ;;  %693 = vmatprep.mubr.f32.mxu0 %v6541_v1  ;;  %v215_v36 = vld [vmem:[#allocation4 + $0x310] sm:$0xf]  ;;  %v4266_v37 = vpack.c.bf16 %v216_v29, %v188_v28  ;;  %v134_v38 = vld [vmem:[#allocation4 + $0x88] sm:$0xff]  ;;  %v4259_v40 = vpack.c.bf16 %v213_v33, %v185_v31  ;;  %v136_v41 = vld [vmem:[#allocation4 + $0x98] sm:$0xff] }
  0x75   :  { %770 = vmatprep.mubr.f32.mxu1 %v6541_v1  ;;  %4238 = vmatprep.subr.msk.bf16.mxu0 %vm5583_vm2, %v4236_v9  ;;  %v162_v39 = vld [vmem:[#allocation4 + $0x168] sm:$0xff]  ;;  %v164_v42 = vld [vmem:[#allocation4 + $0x178] sm:$0xff]  ;;  %v4269_v43 = vpack.c.bf16 %v215_v36, %v187_v35  ;;  %v133_v44 = vld [vmem:[#allocation4 + $0x80] sm:$0xff] }
  0x76   :  { %4248 = vmatprep.subr.msk.bf16.mxu1 %vm5583_vm2, %v4246_v12  ;;  %3838 = vmatmul.mubr.msk.f32.gmra.mrb[6].mxu0 %vm377_vm3, %v5607_v52  ;;  %v161_v45 = vld [vmem:[#allocation4 + $0x160] sm:$0xff]  ;;  %v4272_v46 = vpack.c.bf16 %v162_v39, %v134_v38  ;;  %v135_v47 = vld [vmem:[#allocation4 + $0x90] sm:$0xff]  ;;  %v4282_v49 = vpack.c.bf16 %v164_v42, %v136_v41  ;;  %v190_v50 = vld [vmem:[#allocation4 + $0x248] sm:$0xff] }
  0x77   :  { %3842 = vmatmul.mubr.msk.f32.gmra.mrb[6].mxu1 %vm377_vm3, %v5607_v52  ;;  %4241 = vmatpush1.bf16.msk.msra.mxu0 %vm5583_vm2, %v4239_v15  ;;  %v163_v48 = vld [vmem:[#allocation4 + $0x170] sm:$0xff]  ;;  %v218_v51 = vld [vmem:[#allocation4 + $0x328] sm:$0xf]  ;;  %v4274_v53 = vpack.c.bf16 %v161_v45, %v133_v44  ;;  %v192_v54 = vld [vmem:[#allocation4 + $0x258] sm:$0xff] }
  0x78   :  { %4251 = vmatpush1.bf16.msk.msra.mxu1 %vm5583_vm2, %v4249_v18  ;;  %841 = vmatprep.mubr.f32.mxu0 %v6541_v1  ;;  %v220_v55 = vld [vmem:[#allocation4 + $0x338] sm:$0xf]  ;;  %v4284_v56 = vpack.c.bf16 %v163_v48, %v135_v47  ;;  %v189_v57 = vld [vmem:[#allocation4 + $0x240] sm:$0xff]  ;;  %v4276_v59 = vpack.c.bf16 %v218_v51, %v190_v50  ;;  %v191_v60 = vld [vmem:[#allocation4 + $0x250] sm:$0xff] }
  0x79   :  { %918 = vmatprep.mubr.f32.mxu1 %v6541_v1  ;;  %4253 = vmatprep.subr.bf16.mxu0 %v4252_v21  ;;  %v217_v58 = vld [vmem:[#allocation4 + $0x320] sm:$0xf]  ;;  %v219_v61 = vld [vmem:[#allocation4 + $0x330] sm:$0xf]  ;;  %v4286_v62 = vpack.c.bf16 %v220_v55, %v192_v54  ;;  %v138_v63 = vld [vmem:[#allocation4 + $0xa8] sm:$0xff] }
  0x7a   :  { %4263 = vmatprep.subr.bf16.mxu1 %v4262_v24  ;;  %3845 = vmatmul.mubr.msk.f32.vlgmr.msra.gmra.mrb[8].mxu0 %vm377_vm3, %v5594_v32  ;;  %v166_v0 = vld [vmem:[#allocation4 + $0x188] sm:$0xff]  ;;  %v4279_v3 = vpack.c.bf16 %v217_v58, %v189_v57  ;;  %v140_v4 = vld [vmem:[#allocation4 + $0xb8] sm:$0xff]  ;;  %v4289_v6 = vpack.c.bf16 %v219_v61, %v191_v60  ;;  %v137_v7 = vld [vmem:[#allocation4 + $0xa0] sm:$0xff] }
  0x7b   :  { %3849 = vmatmul.mubr.msk.f32.vlgmr.msra.gmra.mrb[8].mxu1 %vm377_vm3, %v5594_v32  ;;  %4255 = vmatpush1.bf16.msra.mxu0 %v4254_v27  ;;  %v168_v5 = vld [vmem:[#allocation4 + $0x198] sm:$0xff]  ;;  %v165_v8 = vld [vmem:[#allocation4 + $0x180] sm:$0xff]  ;;  %v4292_v9 = vpack.c.bf16 %v166_v0, %v138_v63  ;;  %v139_v10 = vld [vmem:[#allocation4 + $0xb0] sm:$0xff] }
  0x7c   :  { %4265 = vmatpush1.bf16.msra.mxu1 %v4264_v30  ;;  %847 = vmatprep.mubr.f32.mxu0 %v6541_v1  ;;  %v167_v11 = vld [vmem:[#allocation4 + $0x190] sm:$0xff]  ;;  %v4302_v12 = vpack.c.bf16 %v168_v5, %v140_v4  ;;  %v194_v13 = vld [vmem:[#allocation4 + $0x268] sm:$0xff]  ;;  %v4294_v15 = vpack.c.bf16 %v165_v8, %v137_v7  ;;  %v196_v16 = vld [vmem:[#allocation4 + $0x278] sm:$0xff] }
  0x7d   :  { %924 = vmatprep.mubr.f32.mxu1 %v6541_v1  ;;  %4258 = vmatprep.subr.msk.bf16.mxu0 %vm5583_vm2, %v4256_v34  ;;  %v222_v14 = vld [vmem:[#allocation4 + $0x348] sm:$0xf]  ;;  %v224_v17 = vld [vmem:[#allocation4 + $0x358] sm:$0xf]  ;;  %v4304_v18 = vpack.c.bf16 %v167_v11, %v139_v10  ;;  %v193_v19 = vld [vmem:[#allocation4 + $0x260] sm:$0xff] }
  0x7e   :  { %4268 = vmatprep.subr.msk.bf16.mxu1 %vm5583_vm2, %v4266_v37  ;;  %3846 = vmatmul.mubr.msk.f32.gmra.mrb[10].mxu0 %vm377_vm3, %v5607_v52  ;;  %v221_v20 = vld [vmem:[#allocation4 + $0x340] sm:$0xf]  ;;  %v4296_v21 = vpack.c.bf16 %v222_v14, %v194_v13  ;;  %v195_v22 = vld [vmem:[#allocation4 + $0x270] sm:$0xff]  ;;  %v4306_v24 = vpack.c.bf16 %v224_v17, %v196_v16  ;;  %v142_v25 = vld [vmem:[#allocation4 + $0xc8] sm:$0xff] }
  0x7f   :  { %3850 = vmatmul.mubr.msk.f32.gmra.mrb[10].mxu1 %vm377_vm3, %v5607_v52  ;;  %4261 = vmatpush1.bf16.msk.msra.mxu0 %vm5583_vm2, %v4259_v40  ;;  %v223_v23 = vld [vmem:[#allocation4 + $0x350] sm:$0xf]  ;;  %v170_v26 = vld [vmem:[#allocation4 + $0x1a8] sm:$0xff]  ;;  %v4299_v27 = vpack.c.bf16 %v221_v20, %v193_v19  ;;  %v144_v28 = vld [vmem:[#allocation4 + $0xd8] sm:$0xff] }
  0x80   :  { %4271 = vmatpush1.bf16.msk.msra.mxu1 %vm5583_vm2, %v4269_v43  ;;  %995 = vmatprep.mubr.f32.mxu0 %v6541_v1  ;;  %v172_v29 = vld [vmem:[#allocation4 + $0x1b8] sm:$0xff]  ;;  %v4309_v30 = vpack.c.bf16 %v223_v23, %v195_v22  ;;  %v141_v31 = vld [vmem:[#allocation4 + $0xc0] sm:$0xff]  ;;  %v4312_v34 = vpack.c.bf16 %v170_v26, %v142_v25  ;;  %v143_v35 = vld [vmem:[#allocation4 + $0xd0] sm:$0xff] }
  0x81   :  { %1072 = vmatprep.mubr.f32.mxu1 %v6541_v1  ;;  %4273 = vmatprep.subr.bf16.mxu0 %v4272_v46  ;;  %v169_v33 = vld [vmem:[#allocation4 + $0x1a0] sm:$0xff]  ;;  %v171_v36 = vld [vmem:[#allocation4 + $0x1b0] sm:$0xff]  ;;  %v4322_v37 = vpack.c.bf16 %v172_v29, %v144_v28  ;;  %v198_v38 = vld [vmem:[#allocation4 + $0x288] sm:$0xff] }
  0x82   :  { %4283 = vmatprep.subr.bf16.mxu1 %v4282_v49  ;;  %3853 = vmatmul.mubr.msk.f32.vlgmr.msra.gmra.mrb[12].mxu0 %vm377_vm3, %v5594_v32  ;;  %v226_v39 = vld [vmem:[#allocation4 + $0x368] sm:$0xf]  ;;  %v4314_v40 = vpack.c.bf16 %v169_v33, %v141_v31  ;;  %v200_v41 = vld [vmem:[#allocation4 + $0x298] sm:$0xff]  ;;  %v4324_v43 = vpack.c.bf16 %v171_v36, %v143_v35  ;;  %v197_v44 = vld [vmem:[#allocation4 + $0x280] sm:$0xff] }
  0x83   :  { %3857 = vmatmul.mubr.msk.f32.vlgmr.msra.gmra.mrb[12].mxu1 %vm377_vm3, %v5594_v32  ;;  %4275 = vmatpush1.bf16.msra.mxu0 %v4274_v53  ;;  %v228_v42 = vld [vmem:[#allocation4 + $0x378] sm:$0xf]  ;;  %v225_v45 = vld [vmem:[#allocation4 + $0x360] sm:$0xf]  ;;  %v4316_v46 = vpack.c.bf16 %v226_v39, %v198_v38  ;;  %v199_v47 = vld [vmem:[#allocation4 + $0x290] sm:$0xff] }
  0x84   :  { %4285 = vmatpush1.bf16.msra.mxu1 %v4284_v56  ;;  %1001 = vmatprep.mubr.f32.mxu0 %v6541_v1  ;;  %v227_v48 = vld [vmem:[#allocation4 + $0x370] sm:$0xf]  ;;  %v4326_v49 = vpack.c.bf16 %v228_v42, %v200_v41  ;;  %v1612_v50 = vld [vmem:[%s6529_s3 + $0x8] sm:$0xff]  ;;  %v4319_v53 = vpack.c.bf16 %v225_v45, %v197_v44  ;;  %v1614_v54 = vld [vmem:[%s6529_s3 + $0x18] sm:$0xff] }
  0x85   :  { %1078 = vmatprep.mubr.f32.mxu1 %v6541_v1  ;;  %4278 = vmatprep.subr.msk.bf16.mxu0 %vm5583_vm2, %v4276_v59  ;;  %v1616_v51 = vld [vmem:[%s6529_s3 + $0x28] sm:$0xff]  ;;  %v1618_v55 = vld [vmem:[%s6529_s3 + $0x38] sm:$0xff]  ;;  %v4329_v56 = vpack.c.bf16 %v227_v48, %v199_v47  ;;  %v1611_v57 = vld [vmem:[%s6529_s3] sm:$0xff] }
  0x86   :  { %4288 = vmatprep.subr.msk.bf16.mxu1 %vm5583_vm2, %v4286_v62  ;;  %3854 = vmatmul.mubr.msk.f32.gmra.mrb[14].mxu0 %vm377_vm3, %v5607_v52  ;;  %v1615_v58 = vld [vmem:[%s6529_s3 + $0x20] sm:$0xff]  ;;  %v1613_v59 = vld [vmem:[%s6529_s3 + $0x10] sm:$0xff]  ;;  %v5734_v60 = vpack.c.bf16 %v1616_v51, %v1612_v50  ;;  %v1620_v62 = vld [vmem:[%s6529_s3 + $0x48] sm:$0xff]  ;;  %v5749_v0 = vpack.c.bf16 %v1618_v55, %v1614_v54 }
  0x87   :  { %3858 = vmatmul.mubr.msk.f32.gmra.mrb[14].mxu1 %vm377_vm3, %v5607_v52  ;;  %4281 = vmatpush1.bf16.msk.msra.mxu0 %vm5583_vm2, %v4279_v3  ;;  %v1617_v61 = vld [vmem:[%s6529_s3 + $0x30] sm:$0xff]  ;;  %v1624_v63 = vld [vmem:[%s6529_s3 + $0x68] sm:$0xff]  ;;  %v1622_v3 = vld [vmem:[%s6529_s3 + $0x58] sm:$0xff]  ;;  %v5761_v5 = vpack.c.bf16 %v1615_v58, %v1611_v57 }
  0x88   :  { %4291 = vmatpush1.bf16.msk.msra.mxu1 %vm5583_vm2, %v4289_v6  ;;  %1149 = vmatprep.mubr.f32.mxu0 %v6541_v1  ;;  %v1626_v4 = vld [vmem:[%s6529_s3 + $0x78] sm:$0xff]  ;;  %v5766_v6 = vpack.c.bf16 %v1617_v61, %v1613_v59  ;;  %v5768_v7 = vpack.c.bf16 %v1624_v63, %v1620_v62  ;;  %v1619_v8 = vld [vmem:[%s6529_s3 + $0x40] sm:$0xff]  ;;  %v1621_v10 = vld [vmem:[%s6529_s3 + $0x50] sm:$0xff] }
  0x89   :  { %1226 = vmatprep.mubr.f32.mxu1 %v6541_v1  ;;  %4293 = vmatprep.subr.bf16.mxu0 %v4292_v9  ;;  %v1623_v9 = vld [vmem:[%s6529_s3 + $0x60] sm:$0xff]  ;;  %v5781_v11 = vpack.c.bf16 %v1626_v4, %v1622_v3  ;;  %v1628_v13 = vld [vmem:[%s6529_s3 + $0x88] sm:$0xff]  ;;  %v1634_v16 = vld [vmem:[%s6529_s3 + $0xb8] sm:$0xff] }
  0x8a   :  { %4303 = vmatprep.subr.bf16.mxu1 %v4302_v12  ;;  %3861 = vmatmul.mubr.msk.f32.vlgmr.msra.gmra.mrb[16].mxu0 %vm377_vm3, %v5594_v32  ;;  %v1625_v12 = vld [vmem:[%s6529_s3 + $0x70] sm:$0xff]  ;;  %v1632_v14 = vld [vmem:[%s6529_s3 + $0xa8] sm:$0xff]  ;;  %v5804_v17 = vpack.c.bf16 %v1623_v9, %v1619_v8  ;;  %v1627_v20 = vld [vmem:[%s6529_s3 + $0x80] sm:$0xff] }
  0x8b   :  { %3865 = vmatmul.mubr.msk.f32.vlgmr.msra.gmra.mrb[16].mxu1 %vm377_vm3, %v5594_v32  ;;  %4295 = vmatpush1.bf16.msra.mxu0 %v4294_v15  ;;  %v1630_v15 = vld [vmem:[%s6529_s3 + $0x98] sm:$0xff]  ;;  %v5810_v19 = vpack.c.bf16 %v1632_v14, %v1628_v13  ;;  %v1633_v23 = vld [vmem:[%s6529_s3 + $0xb0] sm:$0xff]  ;;  %v1640_v25 = vld [vmem:[%s6529_s3 + $0xe8] sm:$0xff] }
  0x8c   :  { %4305 = vmatpush1.bf16.msra.mxu1 %v4304_v18  ;;  %1155 = vmatprep.mubr.f32.mxu0 %v6541_v1  ;;  %v5808_v18 = vpack.c.bf16 %v1625_v12, %v1621_v10  ;;  %v5822_v22 = vpack.c.bf16 %v1634_v16, %v1630_v15  ;;  %v1638_v26 = vld [vmem:[%s6529_s3 + $0xd8] sm:$0xff]  ;;  %v1635_v31 = vld [vmem:[%s6529_s3 + $0xc0] sm:$0xff]  ;;  %v1641_v35 = vld [vmem:[%s6529_s3 + $0xf0] sm:$0xff] }
  0x8d   :  { %1232 = vmatprep.mubr.f32.mxu1 %v6541_v1  ;;  %4298 = vmatprep.subr.msk.bf16.mxu0 %vm5583_vm2, %v4296_v21  ;;  %v1629_v21 = vld [vmem:[%s6529_s3 + $0x90] sm:$0xff]  ;;  %v1639_v33 = vld [vmem:[%s6529_s3 + $0xe0] sm:$0xff]  ;;  %v1644_v36 = vld [vmem:[%s6529_s3 + $0x108] sm:$0xff] }
  0x8e   :  { %4308 = vmatprep.subr.msk.bf16.mxu1 %vm5583_vm2, %v4306_v24  ;;  %3862 = vmatmul.mubr.msk.f32.gmra.mrb[18].mxu0 %vm377_vm3, %v5607_v52  ;;  %v1636_v24 = vld [vmem:[%s6529_s3 + $0xc8] sm:$0xff]  ;;  %v5850_v29 = vpack.c.bf16 %v1633_v23, %v1629_v21  ;;  %v1646_v38 = vld [vmem:[%s6529_s3 + $0x118] sm:$0xff]  ;;  %v1647_v44 = vld [vmem:[%s6529_s3 + $0x120] sm:$0xff] }
  0x8f   :  { %3866 = vmatmul.mubr.msk.f32.gmra.mrb[18].mxu1 %vm377_vm3, %v5607_v52  ;;  %4301 = vmatpush1.bf16.msk.msra.mxu0 %vm5583_vm2, %v4299_v27  ;;  %v1642_v27 = vld [vmem:[%s6529_s3 + $0xf8] sm:$0xff]  ;;  %v1645_v45 = vld [vmem:[%s6529_s3 + $0x110] sm:$0xff]  ;;  %v1652_v48 = vld [vmem:[%s6529_s3 + $0x148] sm:$0xff] }
  0x90   :  { %4311 = vmatpush1.bf16.msk.msra.mxu1 %vm5583_vm2, %v4309_v30  ;;  %1303 = vmatprep.mubr.f32.mxu0 %v6541_v1  ;;  %v5852_v30 = vpack.c.bf16 %v1640_v25, %v1636_v24  ;;  %v1650_v39 = vld [vmem:[%s6529_s3 + $0x138] sm:$0xff]  ;;  %v1649_v47 = vld [vmem:[%s6529_s3 + $0x130] sm:$0xff]  ;;  %v1655_v57 = vld [vmem:[%s6529_s3 + $0x160] sm:$0xff] }
  0x91   :  { %1380 = vmatprep.mubr.f32.mxu1 %v6541_v1  ;;  %4313 = vmatprep.subr.bf16.mxu0 %v4312_v34  ;;  %v5864_v34 = vpack.c.bf16 %v1642_v27, %v1638_v26  ;;  %v1654_v50 = vld [vmem:[%s6529_s3 + $0x158] sm:$0xff]  ;;  %v5924_v54 = vpack.c.bf16 %v1649_v47, %v1645_v45  ;;  %v1653_v58 = vld [vmem:[%s6529_s3 + $0x150] sm:$0xff]  ;;  %v1660_v62 = vld [vmem:[%s6529_s3 + $0x188] sm:$0xff] }
  0x92   :  { %4323 = vmatprep.subr.bf16.mxu1 %v4322_v37  ;;  %3869 = vmatmul.mubr.msk.f32.vlgmr.msra.gmra.mrb[20].mxu0 %vm377_vm3, %v5594_v32  ;;  %v1648_v37 = vld [vmem:[%s6529_s3 + $0x128] sm:$0xff]  ;;  %v1658_v51 = vld [vmem:[%s6529_s3 + $0x178] sm:$0xff]  ;;  %v1657_v61 = vld [vmem:[%s6529_s3 + $0x170] sm:$0xff] }
  0x93   :  { %3873 = vmatmul.mubr.msk.f32.vlgmr.msra.gmra.mrb[20].mxu1 %vm377_vm3, %v5594_v32  ;;  %4315 = vmatpush1.bf16.msra.mxu0 %v4314_v40  ;;  %v5884_v40 = vpack.c.bf16 %v1639_v33, %v1635_v31  ;;  %v5890_v42 = vpack.c.bf16 %v1648_v37, %v1644_v36  ;;  %v5938_v59 = vpack.c.bf16 %v1658_v51, %v1654_v50  ;;  %v1664_v63 = vld [vmem:[%s6529_s3 + $0x1a8] sm:$0xff]  ;;  %v1662_v3 = vld [vmem:[%s6529_s3 + $0x198] sm:$0xff]  ;;  %v1659_v12 = vld [vmem:[%s6529_s3 + $0x180] sm:$0xff] }
  0x94   :  { %4325 = vmatpush1.bf16.msra.mxu1 %v4324_v43  ;;  %1309 = vmatprep.mubr.f32.mxu0 %v6541_v1  ;;  %v1643_v43 = vld [vmem:[%s6529_s3 + $0x100] sm:$0xff]  ;;  %v1666_v4 = vld [vmem:[%s6529_s3 + $0x1b8] sm:$0xff]  ;;  %v5960_v9 = vpack.c.bf16 %v1657_v61, %v1653_v58  ;;  %v5962_v10 = vpack.c.bf16 %v1664_v63, %v1660_v62  ;;  %v1661_v14 = vld [vmem:[%s6529_s3 + $0x190] sm:$0xff] }
  0x95   :  { %1386 = vmatprep.mubr.f32.mxu1 %v6541_v1  ;;  %4318 = vmatprep.subr.msk.bf16.mxu0 %vm5583_vm2, %v4316_v46  ;;  %v5902_v46 = vpack.c.bf16 %v1650_v39, %v1646_v38  ;;  %v1663_v13 = vld [vmem:[%s6529_s3 + $0x1a0] sm:$0xff]  ;;  %v5974_v15 = vpack.c.bf16 %v1666_v4, %v1662_v3  ;;  %v1665_v16 = vld [vmem:[%s6529_s3 + $0x1b0] sm:$0xff]  ;;  %v1670_v21 = vld [vmem:[%s6529_s3 + $0x1d8] sm:$0xff]  ;;  %v237_v38 = vlaneseq }
  0x96   :  { %4328 = vmatprep.subr.msk.bf16.mxu1 %vm5583_vm2, %v4326_v49  ;;  %3870 = vmatmul.mubr.msk.f32.gmra.mrb[22].mxu0 %vm377_vm3, %v5607_v52  ;;  %v1656_v49 = vld [vmem:[%s6529_s3 + $0x168] sm:$0xff]  ;;  %v1674_v23 = vld [vmem:[%s6529_s3 + $0x1f8] sm:$0xff]  ;;  %v5992_v24 = vpack.c.bf16 %v1663_v13, %v1659_v12  ;;  %v5996_v25 = vpack.c.bf16 %v1665_v16, %v1661_v14  ;;  %v1667_v27 = vld [vmem:[%s6529_s3 + $0x1c0] sm:$0xff] }
  0x97   :  { %3874 = vmatmul.mubr.msk.f32.gmra.mrb[22].mxu1 %vm377_vm3, %v5607_v52  ;;  %4321 = vmatpush1.bf16.msk.msra.mxu0 %vm5583_vm2, %v4319_v53  ;;  %v5920_v53 = vpack.c.bf16 %v1647_v44, %v1643_v43  ;;  %v5926_v55 = vpack.c.bf16 %v1656_v49, %v1652_v48  ;;  %v1671_v31 = vld [vmem:[%s6529_s3 + $0x1e0] sm:$0xff]  ;;  %v6007_v33 = vpack.c.bf16 %v1674_v23, %v1670_v21  ;;  %v6067_v39 = vshrl.u32 %v237_v38, 7 }
  0x98   :  { %4331 = vmatpush1.bf16.msk.msra.mxu1 %vm5583_vm2, %v4329_v56  ;;  %1457 = vmatprep.mubr.f32.mxu0 %v6541_v1  ;;  %v1651_v56 = vld [vmem:[%s6529_s3 + $0x140] sm:$0xff]  ;;  %v6016_v36 = vpack.c.bf16 %v1671_v31, %v1667_v27 }
  0x99   :  { %1534 = vmatprep.mubr.f32.mxu1 %v6541_v1  ;;  %4333 = vmatprep.subr.bf16.mxu0 %v5734_v60  ;;  %v5956_v8 = vpack.c.bf16 %v1655_v57, %v1651_v56  ;;  %v6070_v43 = vsub.s32 0, %v6067_v39  ;;  %v6075_v44 = vld [vmem:[%s6528_s2] sm:$0xff]  ;;  %v6078_v45 = vsub.s32 2, %v6067_v39  ;;  %v6081_v47 = vsub.s32 1, %v6067_v39 }
  0x9a   :  { %4365 = vmatprep.subr.bf16.mxu1 %v5749_v0  ;;  %3877 = vmatmul.mubr.msk.f32.vlgmr.msra.gmra.mrb[24].mxu0 %vm377_vm3, %v5594_v32  ;;  %v6090_v13 = vsub.s32 3, %v6067_v39 }
  0x9b   :  { %3881 = vmatmul.mubr.msk.f32.vlgmr.msra.gmra.mrb[24].mxu1 %vm377_vm3, %v5594_v32  ;;  %4335 = vmatpush1.bf16.msra.mxu0 %v5761_v5  ;;  %v1631_v32 = vld [vmem:[%s6529_s3 + $0xa0] sm:$0xff]  ;;  %6552 = vst [vmem:[#allocation16_spill] sm:$0xff] %v6078_v45  ;;  %6553 = vst [vmem:[#allocation17_spill] sm:$0xff] %v6081_v47  ;;  %v240_v48 = vrot.slane %v6075_v44, %v6070_v43  ;;  %v248_v49 = vrot.slane %v6075_v44, %v6078_v45 }
  0x9c   :  { %4367 = vmatpush1.bf16.msra.mxu1 %v5766_v6  ;;  %4337 = vmatprep.subr.bf16.mxu0 %v5768_v7  ;;  %v5844_v28 = vpack.c.bf16 %v1631_v32, %v1627_v20  ;;  %v1668_v20 = vld [vmem:[%s6529_s3 + $0x1c8] sm:$0xff]  ;;  %v244_v50 = vrot.slane %v6075_v44, %v6081_v47 }
  0x9d   :  { %4369 = vmatprep.subr.bf16.mxu1 %v5781_v11  ;;  %1463 = vmatprep.mubr.f32.mxu0 %v6541_v1  ;;  %v1672_v32 = vld [vmem:[%s6529_s3 + $0x1e8] sm:$0xff] }
  0x9e   :  { %1540 = vmatprep.mubr.f32.mxu1 %v6541_v1  ;;  %3878 = vmatmul.mubr.msk.f32.gmra.mrb[26].mxu0 %vm377_vm3, %v5607_v52  ;;  %v5998_v26 = vpack.c.bf16 %v1672_v32, %v1668_v20 }
  0x9f   :  { %4339 = vmatpush1.bf16.msra.mxu0 %v5804_v17  ;;  %3882 = vmatmul.mubr.msk.f32.gmra.mrb[26].mxu1 %vm377_vm3, %v5607_v52  ;;  %v1637_v52 = vld [vmem:[%s6529_s3 + $0xd0] sm:$0xff] }
  0xa0   :  { %4371 = vmatpush1.bf16.msra.mxu1 %v5808_v18  ;;  %4341 = vmatprep.subr.bf16.mxu0 %v5810_v19  ;;  %v5888_v41 = vpack.c.bf16 %v1641_v35, %v1637_v52  ;;  %v1669_v52 = vld [vmem:[%s6529_s3 + $0x1d0] sm:$0xff] }
  0xa1   :  { %4373 = vmatprep.subr.bf16.mxu1 %v5822_v22  ;;  %1739 = vmatprep.mubr.f32.mxu0 %v6541_v1  ;;  %v1673_v35 = vld [vmem:[%s6529_s3 + $0x1f0] sm:$0xff] }
  0xa2   :  { %1816 = vmatprep.mubr.f32.mxu1 %v6541_v1  ;;  %v6020_v37 = vpack.c.bf16 %v1673_v35, %v1669_v52  ;;  %v252_v52 = vrot.slane %v6075_v44, %v6090_v13 }
  0xa3   :  { %4343 = vmatpush1.bf16.msra.mxu0 %v5844_v28 }
  0xa4   :  { %4375 = vmatpush1.bf16.msra.mxu1 %v5850_v29  ;;  %4345 = vmatprep.subr.bf16.mxu0 %v5852_v30 }
  0xa5   :  { %4377 = vmatprep.subr.bf16.mxu1 %v5864_v34 }
  0xa7   :  { %4347 = vmatpush1.bf16.msra.mxu0 %v5884_v40 }
  0xa8   :  { %4379 = vmatpush1.bf16.msra.mxu1 %v5888_v41  ;;  %4349 = vmatprep.subr.bf16.mxu0 %v5890_v42 }
  0xa9   :  { %4381 = vmatprep.subr.bf16.mxu1 %v5902_v46 }
  0xab   :  { %4351 = vmatpush1.bf16.msra.mxu0 %v5920_v53 }
  0xac   :  { %4383 = vmatpush1.bf16.msra.mxu1 %v5924_v54  ;;  %4353 = vmatprep.subr.bf16.mxu0 %v5926_v55 }
  0xad   :  { %4385 = vmatprep.subr.bf16.mxu1 %v5938_v59 }
  0xaf   :  { %4355 = vmatpush1.bf16.msra.mxu0 %v5956_v8 }
  0xb0   :  { %4387 = vmatpush1.bf16.msra.mxu1 %v5960_v9  ;;  %4357 = vmatprep.subr.bf16.mxu0 %v5962_v10 }
  0xb1   :  { %4389 = vmatprep.subr.bf16.mxu1 %v5974_v15 }
  0xb3   :  { %4359 = vmatpush1.bf16.msra.mxu0 %v5992_v24 }
  0xb4   :  { %4391 = vmatpush1.bf16.msra.mxu1 %v5996_v25  ;;  %4361 = vmatprep.subr.bf16.mxu0 %v5998_v26 }
  0xb5   :  { %4393 = vmatprep.subr.bf16.mxu1 %v6007_v33 }
  0xb7   :  { %4363 = vmatpush1.bf16.msra.mxu0 %v6016_v36 }
  0xb8   :  { %4395 = vmatpush1.bf16.msra.mxu1 %v6020_v37  ;;  %4397 = vmatprep.subr.bf16.mxu0 %v5734_v60 }
  0xb9   :  { %4429 = vmatprep.subr.bf16.mxu1 %v5749_v0 }
  0xba   :  { %1740 = vmatmul.mubr.f32.vlgmr.msra.gmra.mrb[0].mxu0 %v6541_v1 }
  0xbb   :  { %1817 = vmatmul.mubr.f32.vlgmr.msra.gmra.mrb[0].mxu1 %v6541_v1  ;;  %1745 = vmatprep.mubr.f32.mxu0 %v6541_v1 }
  0xbc   :  { %1822 = vmatprep.mubr.f32.mxu1 %v6541_v1  ;;  %4399 = vmatpush1.bf16.msra.mxu0 %v5761_v5 }
  0xbd   :  { %4431 = vmatpush1.bf16.msra.mxu1 %v5766_v6  ;;  %4401 = vmatprep.subr.bf16.mxu0 %v5768_v7 }
  0xbe   :  { %1746 = vmatmul.mubr.f32.gmra.mrb[2].mxu0 %v6541_v1  ;;  %4433 = vmatprep.subr.bf16.mxu1 %v5781_v11 }
  0xbf   :  { %1823 = vmatmul.mubr.f32.gmra.mrb[2].mxu1 %v6541_v1  ;;  %1971 = vmatprep.mubr.f32.mxu0 %v6541_v1 }
  0xc0   :  { %4403 = vmatpush1.bf16.msra.mxu0 %v5804_v17  ;;  %2048 = vmatprep.mubr.f32.mxu1 %v6541_v1 }
  0xc1   :  { %4435 = vmatpush1.bf16.msra.mxu1 %v5808_v18  ;;  %4405 = vmatprep.subr.bf16.mxu0 %v5810_v19 }
  0xc2   :  { %4437 = vmatprep.subr.bf16.mxu1 %v5822_v22 }
  0xc4   :  { %4407 = vmatpush1.bf16.msra.mxu0 %v5844_v28 }
  0xc5   :  { %4439 = vmatpush1.bf16.msra.mxu1 %v5850_v29  ;;  %4409 = vmatprep.subr.bf16.mxu0 %v5852_v30 }
  0xc6   :  { %4441 = vmatprep.subr.bf16.mxu1 %v5864_v34 }
  0xc8   :  { %4411 = vmatpush1.bf16.msra.mxu0 %v5884_v40 }
  0xc9   :  { %4443 = vmatpush1.bf16.msra.mxu1 %v5888_v41  ;;  %4413 = vmatprep.subr.bf16.mxu0 %v5890_v42 }
  0xca   :  { %4445 = vmatprep.subr.bf16.mxu1 %v5902_v46 }
  0xcc   :  { %4415 = vmatpush1.bf16.msra.mxu0 %v5920_v53 }
  0xcd   :  { %4447 = vmatpush1.bf16.msra.mxu1 %v5924_v54  ;;  %4417 = vmatprep.subr.bf16.mxu0 %v5926_v55 }
  0xce   :  { %4449 = vmatprep.subr.bf16.mxu1 %v5938_v59 }
  0xd0   :  { %4419 = vmatpush1.bf16.msra.mxu0 %v5956_v8 }
  0xd1   :  { %4451 = vmatpush1.bf16.msra.mxu1 %v5960_v9  ;;  %4421 = vmatprep.subr.bf16.mxu0 %v5962_v10 }
  0xd2   :  { %4453 = vmatprep.subr.bf16.mxu1 %v5974_v15 }
  0xd4   :  { %4423 = vmatpush1.bf16.msra.mxu0 %v5992_v24 }
  0xd5   :  { %4455 = vmatpush1.bf16.msra.mxu1 %v5996_v25  ;;  %4425 = vmatprep.subr.bf16.mxu0 %v5998_v26 }
  0xd6   :  { %4457 = vmatprep.subr.bf16.mxu1 %v6007_v33 }
  0xd8   :  { %4427 = vmatpush1.bf16.msra.mxu0 %v6016_v36 }
  0xd9   :  { %4459 = vmatpush1.bf16.msra.mxu1 %v6020_v37  ;;  %4461 = vmatprep.subr.bf16.mxu0 %v5734_v60 }
  0xda   :  { %4493 = vmatprep.subr.bf16.mxu1 %v5749_v0 }
 0x18d   :  { %v1741_v51 = vpop.f32.mrb[0].mxu0 }
 0x18e   :  { %v4918_v56 = vadd.f32 %v1741_v51, %v240_v48  ;;  %v1818_v57 = vpop.f32.mrb[0].mxu1  ;;  %v1743_v58 = vpop.f32.mrb[1].mxu0 }
 0x18f   :  { %v4922_v61 = vadd.f32 %v1818_v57, %v248_v49  ;;  %v4919_v62 = vadd.f32 %v1743_v58, %v244_v50  ;;  %v1820_v63 = vpop.f32.mrb[1].mxu1 }
 0x190   :  { %v3883_v3 = vmul.f32 -1.442695, %v4918_v56  ;;  %v4923_v51 = vadd.f32 %v1820_v63, %v252_v52 }
 0x191   :  { %v3885_v4 = vmul.f32 -1.442695, %v4922_v61  ;;  %v3884_v12 = vmul.f32 -1.442695, %v4919_v62  ;;  %v1747_v14 = vpop.f32.mrb[2].mxu0 }
 0x192   :  { %5043 = vpow2.f32 %v3883_v3  ;;  %v4920_v16 = vadd.f32 %v1747_v14, %v240_v48  ;;  %v1824_v20 = vpop.f32.mrb[2].mxu1  ;;  %v1749_v32 = vpop.f32.mrb[3].mxu0  ;;  %v3886_v48 = vmul.f32 -1.442695, %v4923_v51 }
 0x193   :  { %5045 = vpow2.f32 %v3885_v4  ;;  %v4924_v21 = vadd.f32 %v1824_v20, %v248_v49  ;;  %v4921_v23 = vadd.f32 %v1749_v32, %v244_v50  ;;  %v1826_v27 = vpop.f32.mrb[3].mxu1 }
 0x194   :  { %5047 = vpow2.f32 %v3884_v12  ;;  %v3887_v31 = vmul.f32 -1.442695, %v4920_v16  ;;  %v4925_v58 = vadd.f32 %v1826_v27, %v252_v52 }
 0x195   :  { %v3889_v35 = vmul.f32 -1.442695, %v4924_v21  ;;  %v3888_v38 = vmul.f32 -1.442695, %v4921_v23 }
 0x196   :  { %5049 = vpow2.f32 %v3887_v31  ;;  %v3890_v12 = vmul.f32 -1.442695, %v4925_v58 }
 0x197   :  { %5051 = vpow2.f32 %v3889_v35 }
 0x198   :  { %5053 = vpow2.f32 %v3888_v38 }
 0x19c   :  { %v5044_v56 = vpop.eup %5043 }
 0x19d   :  { %v5046_v57 = vpop.eup %5045  ;;  %v1861_v49 = vadd.f32 1.0, %v5044_v56 }
 0x19e   :  { %v5048_v61 = vpop.eup %5047  ;;  %v1863_v62 = vadd.f32 1.0, %v5046_v57 }
 0x19f   :  { %v1862_v50 = vadd.f32 1.0, %v5048_v61 }
 0x1a0   :  { %v5050_v3 = vpop.eup %5049  ;;  %5055 = vrcp.f32 %v1863_v62 }
 0x1a1   :  { %v5052_v4 = vpop.eup %5051  ;;  %5057 = vpow2.f32 %v3886_v48  ;;  %v1865_v32 = vadd.f32 1.0, %v5050_v3 }
 0x1a2   :  { %v5054_v14 = vpop.eup %5053  ;;  %5059 = vrcp.f32 %v1862_v50  ;;  %v1867_v16 = vadd.f32 1.0, %v5052_v4 }
 0x1a3   :  { %5061 = vrcp.f32 %v1861_v49  ;;  %v1866_v20 = vadd.f32 1.0, %v5054_v14 }
 0x1a4   :  { %5063 = vrcp.f32 %v1867_v16 }
 0x1a5   :  { %5065 = vpow2.f32 %v3890_v12 }
 0x1a6   :  { %5067 = vrcp.f32 %v1866_v20 }
 0x1a7   :  { %5069 = vrcp.f32 %v1865_v32 }
 0x1aa   :  { %v5056_v63 = vpop.eup %5055 }
 0x1ab   :  { %v5058_v21 = vpop.eup %5057  ;;  %v1885_v23 = vmul.f32 2.0, %v5056_v63 }
 0x1ac   :  { %v5060_v27 = vpop.eup %5059  ;;  %v1864_v38 = vadd.f32 1.0, %v5058_v21 }
 0x1ad   :  { %v5062_v31 = vpop.eup %5061  ;;  %v3891_v52 = vadd.f32 -1.0, %v1885_v23  ;;  %v1889_v57 = vmul.f32 0.0, %v5060_v27  ;;  %v6137_v23 = vsub.s32 4, %v6067_v39  ;;  %v6140_v27 = vsub.s32 6, %v6067_v39 }
 0x1ae   :  { %v5064_v35 = vpop.eup %5063  ;;  %5071 = vrcp.f32 %v1864_v38 }
 0x1af   :  { %v5066_v51 = vpop.eup %5065  ;;  %v1891_v56 = vmul.f32 %v5062_v31, %v3891_v52  ;;  %v1886_v48 = vmul.f32 2.0, %v5064_v35  ;;  %v6143_v31 = vsub.s32 5, %v6067_v39  ;;  %v256_v52 = vrot.slane %v6075_v44, %v6137_v23 }
 0x1b0   :  { %v5068_v58 = vpop.eup %5067  ;;  %v1868_v50 = vadd.f32 1.0, %v5066_v51  ;;  %v264_v35 = vrot.slane %v6075_v44, %v6140_v27 }
 0x1b1   :  { %v6094_v61 = vadd.f32 %v1891_v56, %v1889_v57  ;;  %v3892_v62 = vadd.f32 -1.0, %v1886_v48  ;;  %v5070_v49 = vpop.eup %5069  ;;  %v1890_v4 = vmul.f32 0.0, %v5068_v58  ;;  %v260_v38 = vrot.slane %v6075_v44, %v6143_v31 }
 0x1b3   :  { %5073 = vtanh.f32 %v6094_v61  ;;  %v1892_v3 = vmul.f32 %v5070_v49, %v3892_v62 }
 0x1b4   :  { %5075 = vrcp.f32 %v1868_v50 }
 0x1b5   :  { %v6097_v12 = vadd.f32 %v1892_v3, %v1890_v4 }
 0x1b7   :  { %5077 = vtanh.f32 %v6097_v12 }
 0x1b8   :  { %v5072_v14 = vpop.eup %5071 }
 0x1bd   :  { %v5074_v16 = vpop.eup %5073 }
 0x1be   :  { %v1897_v20 = vmul.f32 %v5074_v16, %v5072_v14  ;;  %v5076_v32 = vpop.eup %5075  ;;  %v6152_v14 = vsub.s32 7, %v6067_v39 }
 0x1c0   :  { %1972 = vmatmul.mubr.f32.vlgmr.msra.gmra.mrb[4].mxu0 %v1897_v20  ;;  %2049 = vmatmul.mubr.f32.vlgmr.msra.gmra.mrb[4].mxu1 %v1897_v20 }
 0x1c1   :  { %v5078_v63 = vpop.eup %5077  ;;  %1977 = vmatprep.mubr.f32.mxu0 %v6541_v1  ;;  %2054 = vmatprep.mubr.f32.mxu1 %v6541_v1 }
 0x1c2   :  { %v1898_v21 = vmul.f32 %v5078_v63, %v5076_v32  ;;  %4463 = vmatpush1.bf16.msra.mxu0 %v5761_v5  ;;  %4495 = vmatpush1.bf16.msra.mxu1 %v5766_v6 }
 0x1c3   :  { %4465 = vmatprep.subr.bf16.mxu0 %v5768_v7  ;;  %4497 = vmatprep.subr.bf16.mxu1 %v5781_v11 }
 0x1c4   :  { %1978 = vmatmul.mubr.f32.gmra.mrb[6].mxu0 %v1898_v21  ;;  %2055 = vmatmul.mubr.f32.gmra.mrb[6].mxu1 %v1898_v21 }
 0x1c5   :  { %2203 = vmatprep.mubr.f32.mxu0 %v6541_v1  ;;  %2280 = vmatprep.mubr.f32.mxu1 %v6541_v1 }
 0x1c6   :  { %4467 = vmatpush1.bf16.msra.mxu0 %v5804_v17  ;;  %4499 = vmatpush1.bf16.msra.mxu1 %v5808_v18 }
 0x1c7   :  { %4469 = vmatprep.subr.bf16.mxu0 %v5810_v19  ;;  %4501 = vmatprep.subr.bf16.mxu1 %v5822_v22 }
 0x1ca   :  { %4471 = vmatpush1.bf16.msra.mxu0 %v5844_v28  ;;  %4503 = vmatpush1.bf16.msra.mxu1 %v5850_v29 }
 0x1cb   :  { %4473 = vmatprep.subr.bf16.mxu0 %v5852_v30  ;;  %4505 = vmatprep.subr.bf16.mxu1 %v5864_v34 }
 0x1ce   :  { %4475 = vmatpush1.bf16.msra.mxu0 %v5884_v40  ;;  %4507 = vmatpush1.bf16.msra.mxu1 %v5888_v41 }
 0x1cf   :  { %4477 = vmatprep.subr.bf16.mxu0 %v5890_v42  ;;  %4509 = vmatprep.subr.bf16.mxu1 %v5902_v46 }
 0x1d2   :  { %4479 = vmatpush1.bf16.msra.mxu0 %v5920_v53  ;;  %4511 = vmatpush1.bf16.msra.mxu1 %v5924_v54 }
 0x1d3   :  { %4481 = vmatprep.subr.bf16.mxu0 %v5926_v55  ;;  %4513 = vmatprep.subr.bf16.mxu1 %v5938_v59 }
 0x1d6   :  { %4483 = vmatpush1.bf16.msra.mxu0 %v5956_v8  ;;  %4515 = vmatpush1.bf16.msra.mxu1 %v5960_v9 }
 0x1d7   :  { %4485 = vmatprep.subr.bf16.mxu0 %v5962_v10  ;;  %4517 = vmatprep.subr.bf16.mxu1 %v5974_v15 }
 0x1da   :  { %4487 = vmatpush1.bf16.msra.mxu0 %v5992_v24  ;;  %4519 = vmatpush1.bf16.msra.mxu1 %v5996_v25 }
 0x1db   :  { %4489 = vmatprep.subr.bf16.mxu0 %v5998_v26  ;;  %4521 = vmatprep.subr.bf16.mxu1 %v6007_v33 }
 0x1de   :  { %4491 = vmatpush1.bf16.msra.mxu0 %v6016_v36  ;;  %4523 = vmatpush1.bf16.msra.mxu1 %v6020_v37 }
 0x1df   :  { %4525 = vmatprep.subr.bf16.mxu0 %v5734_v60  ;;  %4557 = vmatprep.subr.bf16.mxu1 %v5749_v0 }
 0x293   :  { %v1973_v51 = vpop.f32.mrb[4].mxu0  ;;  %v2050_v56 = vpop.f32.mrb[4].mxu1 }
 0x294   :  { %v4926_v57 = vadd.f32 %v1973_v51, %v256_v52  ;;  %v4930_v48 = vadd.f32 %v2050_v56, %v264_v35  ;;  %v1975_v58 = vpop.f32.mrb[5].mxu0  ;;  %v2052_v62 = vpop.f32.mrb[5].mxu1 }
 0x295   :  { %v4927_v49 = vadd.f32 %v1975_v58, %v260_v38 }
 0x296   :  { %v3893_v50 = vmul.f32 -1.442695, %v4926_v57  ;;  %v3895_v3 = vmul.f32 -1.442695, %v4930_v48  ;;  %v268_v57 = vrot.slane %v6075_v44, %v6152_v14 }
 0x297   :  { %v3894_v4 = vmul.f32 -1.442695, %v4927_v49  ;;  %v1979_v16 = vpop.f32.mrb[6].mxu0  ;;  %v2056_v20 = vpop.f32.mrb[6].mxu1 }
 0x298   :  { %5079 = vpow2.f32 %v3893_v50  ;;  %v4928_v32 = vadd.f32 %v1979_v16, %v256_v52  ;;  %v4932_v63 = vadd.f32 %v2056_v20, %v264_v35  ;;  %v1981_v21 = vpop.f32.mrb[7].mxu0  ;;  %v2058_v1 = vpop.f32.mrb[7].mxu1  ;;  %v4931_v39 = vadd.f32 %v2052_v62, %v268_v57 }
 0x299   :  { %5081 = vpow2.f32 %v3895_v3  ;;  %v4929_v2 = vadd.f32 %v1981_v21, %v260_v38  ;;  %v4933_v52 = vadd.f32 %v2058_v1, %v268_v57 }
 0x29a   :  { %5083 = vpow2.f32 %v3894_v4  ;;  %v3897_v51 = vmul.f32 -1.442695, %v4928_v32  ;;  %v3899_v56 = vmul.f32 -1.442695, %v4932_v63  ;;  %v3896_v50 = vmul.f32 -1.442695, %v4931_v39 }
 0x29b   :  { %v3898_v48 = vmul.f32 -1.442695, %v4929_v2  ;;  %v3900_v32 = vmul.f32 -1.442695, %v4933_v52 }
 0x29c   :  { %5085 = vpow2.f32 %v3897_v51 }
 0x29d   :  { %5087 = vpow2.f32 %v3899_v56 }
 0x29e   :  { %5089 = vpow2.f32 %v3898_v48 }
 0x2a2   :  { %v5080_v58 = vpop.eup %5079 }
 0x2a3   :  { %v5082_v49 = vpop.eup %5081  ;;  %v2093_v20 = vadd.f32 1.0, %v5080_v58 }
 0x2a4   :  { %v5084_v35 = vpop.eup %5083  ;;  %v2095_v16 = vadd.f32 1.0, %v5082_v49 }
 0x2a5   :  { %v2094_v3 = vadd.f32 1.0, %v5084_v35 }
 0x2a6   :  { %v5086_v38 = vpop.eup %5085  ;;  %5091 = vrcp.f32 %v2095_v16 }
 0x2a7   :  { %v5088_v4 = vpop.eup %5087  ;;  %5093 = vpow2.f32 %v3896_v50  ;;  %v2097_v21 = vadd.f32 1.0, %v5086_v38 }
 0x2a8   :  { %v5090_v63 = vpop.eup %5089  ;;  %5095 = vrcp.f32 %v2094_v3  ;;  %v2099_v2 = vadd.f32 1.0, %v5088_v4 }
 0x2a9   :  { %5097 = vrcp.f32 %v2093_v20  ;;  %v2098_v44 = vadd.f32 1.0, %v5090_v63 }
 0x2aa   :  { %5099 = vrcp.f32 %v2099_v2 }
 0x2ab   :  { %5101 = vpow2.f32 %v3900_v32 }
 0x2ac   :  { %5103 = vrcp.f32 %v2098_v44 }
 0x2ad   :  { %5105 = vrcp.f32 %v2097_v21 }
 0x2b0   :  { %v5092_v1 = vpop.eup %5091 }
 0x2b1   :  { %v5094_v62 = vpop.eup %5093  ;;  %v2117_v51 = vmul.f32 2.0, %v5092_v1 }
 0x2b2   :  { %v5096_v56 = vpop.eup %5095  ;;  %v2096_v58 = vadd.f32 1.0, %v5094_v62 }
 0x2b3   :  { %v5098_v57 = vpop.eup %5097  ;;  %v3901_v48 = vadd.f32 -1.0, %v2117_v51  ;;  %v2121_v52 = vmul.f32 %v5096_v56, %v6094_v61  ;;  %v6554_v51 = vmov 0.0  }
 0x2b4   :  { %v5100_v39 = vpop.eup %5099  ;;  %5107 = vrcp.f32 %v2096_v58 }
 0x2b5   :  { %v5102_v49 = vpop.eup %5101  ;;  %v2123_v50 = vmul.f32 %v5098_v57, %v3901_v48  ;;  %v2118_v35 = vmul.f32 2.0, %v5100_v39 }
 0x2b6   :  { %v5104_v16 = vpop.eup %5103  ;;  %v2100_v4 = vadd.f32 1.0, %v5102_v49 }
 0x2b7   :  { %v6157_v20 = vadd.f32 %v2123_v50, %v2121_v52  ;;  %v3902_v3 = vadd.f32 -1.0, %v2118_v35  ;;  %v5106_v38 = vpop.eup %5105  ;;  %v2122_v63 = vmul.f32 %v5104_v16, %v6097_v12  ;;  %v6203_v12 = vld [vmem:[%s6528_s2 + $0x8] sm:$0xff] }
 0x2b8   :  { %v272_v57 = vrot.slane %v6203_v12, %v6070_v43  ;;  %v280_v48 = vrot.slane %v6203_v12, %v6078_v45  ;;  %v276_v39 = vrot.slane %v6203_v12, %v6081_v47 }
 0x2b9   :  { %5109 = vtanh.f32 %v6157_v20  ;;  %v2124_v32 = vmul.f32 %v5106_v38, %v3902_v3 }
 0x2ba   :  { %5111 = vrcp.f32 %v2100_v4 }
 0x2bb   :  { %v6161_v2 = vadd.f32 %v2124_v32, %v2122_v63 }
 0x2bd   :  { %5113 = vtanh.f32 %v6161_v2 }
 0x2be   :  { %v5108_v44 = vpop.eup %5107 }
 0x2c3   :  { %v5110_v61 = vpop.eup %5109 }
 0x2c4   :  { %v2129_v21 = vmul.f32 %v5110_v61, %v5108_v44  ;;  %v5112_v1 = vpop.eup %5111 }
 0x2c6   :  { %2204 = vmatmul.mubr.f32.vlgmr.msra.gmra.mrb[8].mxu0 %v2129_v21  ;;  %2281 = vmatmul.mubr.f32.vlgmr.msra.gmra.mrb[8].mxu1 %v2129_v21 }
 0x2c7   :  { %v5114_v62 = vpop.eup %5113  ;;  %2209 = vmatprep.mubr.f32.mxu0 %v6554_v51  ;;  %2286 = vmatprep.mubr.f32.mxu1 %v6554_v51 }
 0x2c8   :  { %v2130_v56 = vmul.f32 %v5114_v62, %v5112_v1  ;;  %4527 = vmatpush1.bf16.msra.mxu0 %v5761_v5  ;;  %4559 = vmatpush1.bf16.msra.mxu1 %v5766_v6 }
 0x2c9   :  { %4529 = vmatprep.subr.bf16.mxu0 %v5768_v7  ;;  %4561 = vmatprep.subr.bf16.mxu1 %v5781_v11 }
 0x2ca   :  { %2210 = vmatmul.mubr.f32.gmra.mrb[10].mxu0 %v2130_v56  ;;  %2287 = vmatmul.mubr.f32.gmra.mrb[10].mxu1 %v2130_v56 }
 0x2cb   :  { %2435 = vmatprep.mubr.f32.mxu0 %v6554_v51  ;;  %2512 = vmatprep.mubr.f32.mxu1 %v6554_v51 }
 0x2cc   :  { %4531 = vmatpush1.bf16.msra.mxu0 %v5804_v17  ;;  %4563 = vmatpush1.bf16.msra.mxu1 %v5808_v18 }
 0x2cd   :  { %4533 = vmatprep.subr.bf16.mxu0 %v5810_v19  ;;  %4565 = vmatprep.subr.bf16.mxu1 %v5822_v22 }
 0x2d0   :  { %4535 = vmatpush1.bf16.msra.mxu0 %v5844_v28  ;;  %4567 = vmatpush1.bf16.msra.mxu1 %v5850_v29 }
 0x2d1   :  { %4537 = vmatprep.subr.bf16.mxu0 %v5852_v30  ;;  %4569 = vmatprep.subr.bf16.mxu1 %v5864_v34 }
 0x2d4   :  { %4539 = vmatpush1.bf16.msra.mxu0 %v5884_v40  ;;  %4571 = vmatpush1.bf16.msra.mxu1 %v5888_v41 }
 0x2d5   :  { %4541 = vmatprep.subr.bf16.mxu0 %v5890_v42  ;;  %4573 = vmatprep.subr.bf16.mxu1 %v5902_v46 }
 0x2d8   :  { %4543 = vmatpush1.bf16.msra.mxu0 %v5920_v53  ;;  %4575 = vmatpush1.bf16.msra.mxu1 %v5924_v54 }
 0x2d9   :  { %4545 = vmatprep.subr.bf16.mxu0 %v5926_v55  ;;  %4577 = vmatprep.subr.bf16.mxu1 %v5938_v59 }
 0x2dc   :  { %4547 = vmatpush1.bf16.msra.mxu0 %v5956_v8  ;;  %4579 = vmatpush1.bf16.msra.mxu1 %v5960_v9 }
 0x2dd   :  { %4549 = vmatprep.subr.bf16.mxu0 %v5962_v10  ;;  %4581 = vmatprep.subr.bf16.mxu1 %v5974_v15 }
 0x2e0   :  { %4551 = vmatpush1.bf16.msra.mxu0 %v5992_v24  ;;  %4583 = vmatpush1.bf16.msra.mxu1 %v5996_v25 }
 0x2e1   :  { %4553 = vmatprep.subr.bf16.mxu0 %v5998_v26  ;;  %4585 = vmatprep.subr.bf16.mxu1 %v6007_v33 }
 0x2e4   :  { %4555 = vmatpush1.bf16.msra.mxu0 %v6016_v36  ;;  %4587 = vmatpush1.bf16.msra.mxu1 %v6020_v37 }
 0x2e5   :  { %4589 = vmatprep.subr.bf16.mxu0 %v5734_v60  ;;  %4621 = vmatprep.subr.bf16.mxu1 %v5749_v0 }
 0x399   :  { %v2205_v58 = vpop.f32.mrb[8].mxu0  ;;  %v2282_v49 = vpop.f32.mrb[8].mxu1 }
 0x39a   :  { %v4934_v50 = vadd.f32 %v2205_v58, %v272_v57  ;;  %v4938_v52 = vadd.f32 %v2282_v49, %v280_v48  ;;  %v2207_v35 = vpop.f32.mrb[9].mxu0  ;;  %v2284_v16 = vpop.f32.mrb[9].mxu1  ;;  %v284_v58 = vrot.slane %v6203_v12, %v6090_v13 }
 0x39b   :  { %v4935_v3 = vadd.f32 %v2207_v35, %v276_v39 }
 0x39c   :  { %v3903_v38 = vmul.f32 -1.442695, %v4934_v50  ;;  %v3905_v4 = vmul.f32 -1.442695, %v4938_v52  ;;  %v4939_v50 = vadd.f32 %v2284_v16, %v284_v58 }
 0x39d   :  { %v3904_v32 = vmul.f32 -1.442695, %v4935_v3  ;;  %v2211_v63 = vpop.f32.mrb[10].mxu0  ;;  %v2288_v44 = vpop.f32.mrb[10].mxu1 }
 0x39e   :  { %5115 = vpow2.f32 %v3903_v38  ;;  %v4936_v61 = vadd.f32 %v2211_v63, %v272_v57  ;;  %v4940_v21 = vadd.f32 %v2288_v44, %v280_v48  ;;  %v2213_v1 = vpop.f32.mrb[11].mxu0  ;;  %v2290_v62 = vpop.f32.mrb[11].mxu1  ;;  %v3906_v3 = vmul.f32 -1.442695, %v4939_v50 }
 0x39f   :  { %5117 = vpow2.f32 %v3905_v4  ;;  %v4937_v56 = vadd.f32 %v2213_v1, %v276_v39  ;;  %v4941_v57 = vadd.f32 %v2290_v62, %v284_v58 }
 0x3a0   :  { %5119 = vpow2.f32 %v3904_v32  ;;  %v3907_v47 = vmul.f32 -1.442695, %v4936_v61  ;;  %v3909_v45 = vmul.f32 -1.442695, %v4940_v21 }
 0x3a1   :  { %v3908_v49 = vmul.f32 -1.442695, %v4937_v56  ;;  %v3910_v44 = vmul.f32 -1.442695, %v4941_v57 }
 0x3a2   :  { %5121 = vpow2.f32 %v3907_v47 }
 0x3a3   :  { %5123 = vpow2.f32 %v3909_v45 }
 0x3a4   :  { %5125 = vpow2.f32 %v3908_v49 }
 0x3a8   :  { %v5116_v52 = vpop.eup %5115 }
 0x3a9   :  { %v5118_v35 = vpop.eup %5117  ;;  %v2325_v63 = vadd.f32 1.0, %v5116_v52 }
 0x3aa   :  { %v5120_v48 = vpop.eup %5119  ;;  %v2327_v38 = vadd.f32 1.0, %v5118_v35 }
 0x3ab   :  { %v2326_v4 = vadd.f32 1.0, %v5120_v48 }
 0x3ac   :  { %v5122_v39 = vpop.eup %5121  ;;  %5127 = vrcp.f32 %v2327_v38 }
 0x3ad   :  { %v5124_v32 = vpop.eup %5123  ;;  %5129 = vpow2.f32 %v3906_v3  ;;  %v2329_v47 = vadd.f32 1.0, %v5122_v39 }
 0x3ae   :  { %v5126_v61 = vpop.eup %5125  ;;  %5131 = vrcp.f32 %v2326_v4  ;;  %v2331_v21 = vadd.f32 1.0, %v5124_v32 }
 0x3af   :  { %5133 = vrcp.f32 %v2325_v63  ;;  %v2330_v45 = vadd.f32 1.0, %v5126_v61 }
 0x3b0   :  { %5135 = vrcp.f32 %v2331_v21 }
 0x3b1   :  { %5137 = vpow2.f32 %v3910_v44 }
 0x3b2   :  { %5139 = vrcp.f32 %v2330_v45 }
 0x3b3   :  { %5141 = vrcp.f32 %v2329_v47 }
 0x3b6   :  { %v5128_v16 = vpop.eup %5127 }
 0x3b7   :  { %v5130_v1 = vpop.eup %5129  ;;  %v2349_v62 = vmul.f32 2.0, %v5128_v16 }
 0x3b8   :  { %v5132_v56 = vpop.eup %5131  ;;  %v2328_v52 = vadd.f32 1.0, %v5130_v1 }
 0x3b9   :  { %v5134_v58 = vpop.eup %5133  ;;  %v3911_v49 = vadd.f32 -1.0, %v2349_v62  ;;  %v2353_v57 = vmul.f32 %v5132_v56, %v6157_v20  ;;  %v296_v56 = vrot.slane %v6203_v12, %v6140_v27 }
 0x3ba   :  { %v5136_v50 = vpop.eup %5135  ;;  %5143 = vrcp.f32 %v2328_v52 }
 0x3bb   :  { %v5138_v35 = vpop.eup %5137  ;;  %v2355_v3 = vmul.f32 %v5134_v58, %v3911_v49  ;;  %v2350_v48 = vmul.f32 2.0, %v5136_v50  ;;  %v292_v58 = vrot.slane %v6203_v12, %v6143_v31 }
 0x3bc   :  { %v5140_v38 = vpop.eup %5139  ;;  %v2332_v32 = vadd.f32 1.0, %v5138_v35 }
 0x3bd   :  { %v6214_v63 = vadd.f32 %v2355_v3, %v2353_v57  ;;  %v3912_v4 = vadd.f32 -1.0, %v2350_v48  ;;  %v5142_v39 = vpop.eup %5141  ;;  %v2354_v61 = vmul.f32 %v5140_v38, %v6161_v2  ;;  %v288_v2 = vrot.slane %v6203_v12, %v6137_v23 }
 0x3bf   :  { %5145 = vtanh.f32 %v6214_v63  ;;  %v2356_v44 = vmul.f32 %v5142_v39, %v3912_v4 }
 0x3c0   :  { %5147 = vrcp.f32 %v2332_v32 }
 0x3c1   :  { %v6218_v21 = vadd.f32 %v2356_v44, %v2354_v61 }
 0x3c3   :  { %5149 = vtanh.f32 %v6218_v21 }
 0x3c4   :  { %v5144_v45 = vpop.eup %5143 }
 0x3c9   :  { %v5146_v20 = vpop.eup %5145 }
 0x3ca   :  { %v2361_v47 = vmul.f32 %v5146_v20, %v5144_v45  ;;  %v5148_v16 = vpop.eup %5147 }
 0x3cc   :  { %2436 = vmatmul.mubr.f32.vlgmr.msra.gmra.mrb[12].mxu0 %v2361_v47  ;;  %2513 = vmatmul.mubr.f32.vlgmr.msra.gmra.mrb[12].mxu1 %v2361_v47 }
 0x3cd   :  { %v5150_v1 = vpop.eup %5149  ;;  %2441 = vmatprep.mubr.f32.mxu0 %v6554_v51  ;;  %2518 = vmatprep.mubr.f32.mxu1 %v6554_v51 }
 0x3ce   :  { %v2362_v62 = vmul.f32 %v5150_v1, %v5148_v16  ;;  %4591 = vmatpush1.bf16.msra.mxu0 %v5761_v5  ;;  %4623 = vmatpush1.bf16.msra.mxu1 %v5766_v6 }
 0x3cf   :  { %4593 = vmatprep.subr.bf16.mxu0 %v5768_v7  ;;  %4625 = vmatprep.subr.bf16.mxu1 %v5781_v11 }
 0x3d0   :  { %2442 = vmatmul.mubr.f32.gmra.mrb[14].mxu0 %v2362_v62  ;;  %2519 = vmatmul.mubr.f32.gmra.mrb[14].mxu1 %v2362_v62 }
 0x3d1   :  { %2667 = vmatprep.mubr.f32.mxu0 %v6554_v51  ;;  %2744 = vmatprep.mubr.f32.mxu1 %v6554_v51 }
 0x3d2   :  { %4595 = vmatpush1.bf16.msra.mxu0 %v5804_v17  ;;  %4627 = vmatpush1.bf16.msra.mxu1 %v5808_v18 }
 0x3d3   :  { %4597 = vmatprep.subr.bf16.mxu0 %v5810_v19  ;;  %4629 = vmatprep.subr.bf16.mxu1 %v5822_v22 }
 0x3d6   :  { %4599 = vmatpush1.bf16.msra.mxu0 %v5844_v28  ;;  %4631 = vmatpush1.bf16.msra.mxu1 %v5850_v29 }
 0x3d7   :  { %4601 = vmatprep.subr.bf16.mxu0 %v5852_v30  ;;  %4633 = vmatprep.subr.bf16.mxu1 %v5864_v34 }
 0x3da   :  { %4603 = vmatpush1.bf16.msra.mxu0 %v5884_v40  ;;  %4635 = vmatpush1.bf16.msra.mxu1 %v5888_v41 }
 0x3db   :  { %4605 = vmatprep.subr.bf16.mxu0 %v5890_v42  ;;  %4637 = vmatprep.subr.bf16.mxu1 %v5902_v46 }
 0x3de   :  { %4607 = vmatpush1.bf16.msra.mxu0 %v5920_v53  ;;  %4639 = vmatpush1.bf16.msra.mxu1 %v5924_v54 }
 0x3df   :  { %4609 = vmatprep.subr.bf16.mxu0 %v5926_v55  ;;  %4641 = vmatprep.subr.bf16.mxu1 %v5938_v59 }
 0x3e2   :  { %4611 = vmatpush1.bf16.msra.mxu0 %v5956_v8  ;;  %4643 = vmatpush1.bf16.msra.mxu1 %v5960_v9 }
 0x3e3   :  { %4613 = vmatprep.subr.bf16.mxu0 %v5962_v10  ;;  %4645 = vmatprep.subr.bf16.mxu1 %v5974_v15 }
 0x3e6   :  { %4615 = vmatpush1.bf16.msra.mxu0 %v5992_v24  ;;  %4647 = vmatpush1.bf16.msra.mxu1 %v5996_v25 }
 0x3e7   :  { %4617 = vmatprep.subr.bf16.mxu0 %v5998_v26  ;;  %4649 = vmatprep.subr.bf16.mxu1 %v6007_v33 }
 0x3ea   :  { %4619 = vmatpush1.bf16.msra.mxu0 %v6016_v36  ;;  %4651 = vmatpush1.bf16.msra.mxu1 %v6020_v37 }
 0x3eb   :  { %4653 = vmatprep.subr.bf16.mxu0 %v5734_v60  ;;  %4685 = vmatprep.subr.bf16.mxu1 %v5749_v0 }
 0x49f   :  { %v2437_v49 = vpop.f32.mrb[12].mxu0  ;;  %v2514_v50 = vpop.f32.mrb[12].mxu1 }
 0x4a0   :  { %v4942_v52 = vadd.f32 %v2437_v49, %v288_v2  ;;  %v4946_v35 = vadd.f32 %v2514_v50, %v296_v56  ;;  %v2439_v3 = vpop.f32.mrb[13].mxu0  ;;  %v2516_v57 = vpop.f32.mrb[13].mxu1  ;;  %v300_v49 = vrot.slane %v6203_v12, %v6152_v14 }
 0x4a1   :  { %v4943_v48 = vadd.f32 %v2439_v3, %v292_v58 }
 0x4a2   :  { %v3913_v38 = vmul.f32 -1.442695, %v4942_v52  ;;  %v3915_v4 = vmul.f32 -1.442695, %v4946_v35  ;;  %v4947_v52 = vadd.f32 %v2516_v57, %v300_v49 }
 0x4a3   :  { %v3914_v39 = vmul.f32 -1.442695, %v4943_v48  ;;  %v2443_v32 = vpop.f32.mrb[14].mxu0  ;;  %v2520_v44 = vpop.f32.mrb[14].mxu1 }
 0x4a4   :  { %5151 = vpow2.f32 %v3913_v38  ;;  %v4944_v61 = vadd.f32 %v2443_v32, %v288_v2  ;;  %v4948_v45 = vadd.f32 %v2520_v44, %v296_v56  ;;  %v2445_v20 = vpop.f32.mrb[15].mxu0  ;;  %v2522_v47 = vpop.f32.mrb[15].mxu1  ;;  %v3916_v48 = vmul.f32 -1.442695, %v4947_v52 }
 0x4a5   :  { %5153 = vpow2.f32 %v3915_v4  ;;  %v4945_v16 = vadd.f32 %v2445_v20, %v292_v58  ;;  %v4949_v2 = vadd.f32 %v2522_v47, %v300_v49 }
 0x4a6   :  { %5155 = vpow2.f32 %v3914_v39  ;;  %v3917_v1 = vmul.f32 -1.442695, %v4944_v61  ;;  %v3919_v62 = vmul.f32 -1.442695, %v4948_v45 }
 0x4a7   :  { %v3918_v50 = vmul.f32 -1.442695, %v4945_v16  ;;  %v3920_v44 = vmul.f32 -1.442695, %v4949_v2 }
 0x4a8   :  { %5157 = vpow2.f32 %v3917_v1 }
 0x4a9   :  { %5159 = vpow2.f32 %v3919_v62 }
 0x4aa   :  { %5161 = vpow2.f32 %v3918_v50 }
 0x4ae   :  { %v5152_v35 = vpop.eup %5151 }
 0x4af   :  { %v5154_v3 = vpop.eup %5153  ;;  %v2557_v32 = vadd.f32 1.0, %v5152_v35 }
 0x4b0   :  { %v5156_v56 = vpop.eup %5155  ;;  %v2559_v38 = vadd.f32 1.0, %v5154_v3 }
 0x4b1   :  { %v2558_v4 = vadd.f32 1.0, %v5156_v56 }
 0x4b2   :  { %v5158_v58 = vpop.eup %5157  ;;  %5163 = vrcp.f32 %v2559_v38 }
 0x4b3   :  { %v5160_v39 = vpop.eup %5159  ;;  %5165 = vpow2.f32 %v3916_v48  ;;  %v2561_v20 = vadd.f32 1.0, %v5158_v58 }
 0x4b4   :  { %v5162_v61 = vpop.eup %5161  ;;  %5167 = vrcp.f32 %v2558_v4  ;;  %v2563_v12 = vadd.f32 1.0, %v5160_v39 }
 0x4b5   :  { %5169 = vrcp.f32 %v2557_v32  ;;  %v2562_v45 = vadd.f32 1.0, %v5162_v61 }
 0x4b6   :  { %5171 = vrcp.f32 %v2563_v12 }
 0x4b7   :  { %5173 = vpow2.f32 %v3920_v44 }
 0x4b8   :  { %5175 = vrcp.f32 %v2562_v45 }
 0x4b9   :  { %5177 = vrcp.f32 %v2561_v20 }
 0x4bc   :  { %v5164_v57 = vpop.eup %5163 }
 0x4bd   :  { %v5166_v47 = vpop.eup %5165  ;;  %v2581_v16 = vmul.f32 2.0, %v5164_v57 }
 0x4be   :  { %v5168_v1 = vpop.eup %5167  ;;  %v2560_v52 = vadd.f32 1.0, %v5166_v47 }
 0x4bf   :  { %v5170_v62 = vpop.eup %5169  ;;  %v3921_v49 = vadd.f32 -1.0, %v2581_v16  ;;  %v2585_v48 = vmul.f32 %v5168_v1, %v6214_v63  ;;  %v6555_v1 = vld [vmem:[#allocation16_spill] sm:$0xff] }
 0x4c0   :  { %v5172_v50 = vpop.eup %5171  ;;  %5179 = vrcp.f32 %v2560_v52 }
 0x4c1   :  { %v5174_v35 = vpop.eup %5173  ;;  %v2587_v3 = vmul.f32 %v5170_v62, %v3921_v49  ;;  %v2582_v2 = vmul.f32 2.0, %v5172_v50  ;;  %v6556_v49 = vld [vmem:[#allocation17_spill] sm:$0xff] }
 0x4c2   :  { %v5176_v56 = vpop.eup %5175  ;;  %v2564_v58 = vadd.f32 1.0, %v5174_v35 }
 0x4c3   :  { %v6266_v38 = vadd.f32 %v2587_v3, %v2585_v48  ;;  %v3922_v32 = vadd.f32 -1.0, %v2582_v2  ;;  %v5178_v4 = vpop.eup %5177  ;;  %v2586_v44 = vmul.f32 %v5176_v56, %v6218_v21  ;;  %v6312_v21 = vld [vmem:[%s6528_s2 + $0x10] sm:$0xff] }
 0x4c4   :  { %v304_v16 = vrot.slane %v6312_v21, %v6070_v43  ;;  %v312_v62 = vrot.slane %v6312_v21, %v6555_v1  ;;  %v308_v50 = vrot.slane %v6312_v21, %v6556_v49 }
 0x4c5   :  { %5181 = vtanh.f32 %v6266_v38  ;;  %v2588_v39 = vmul.f32 %v5178_v4, %v3922_v32 }
 0x4c6   :  { %5183 = vrcp.f32 %v2564_v58 }
 0x4c7   :  { %v6270_v61 = vadd.f32 %v2588_v39, %v2586_v44 }
 0x4c9   :  { %5185 = vtanh.f32 %v6270_v61 }
 0x4ca   :  { %v5180_v12 = vpop.eup %5179 }
 0x4cf   :  { %v5182_v63 = vpop.eup %5181 }
 0x4d0   :  { %v2593_v45 = vmul.f32 %v5182_v63, %v5180_v12  ;;  %v5184_v20 = vpop.eup %5183 }
 0x4d2   :  { %2668 = vmatmul.mubr.f32.vlgmr.msra.gmra.mrb[16].mxu0 %v2593_v45  ;;  %2745 = vmatmul.mubr.f32.vlgmr.msra.gmra.mrb[16].mxu1 %v2593_v45 }
 0x4d3   :  { %v5186_v57 = vpop.eup %5185  ;;  %2673 = vmatprep.mubr.f32.mxu0 %v6554_v51  ;;  %2750 = vmatprep.mubr.f32.mxu1 %v6554_v51 }
 0x4d4   :  { %v2594_v47 = vmul.f32 %v5186_v57, %v5184_v20  ;;  %4655 = vmatpush1.bf16.msra.mxu0 %v5761_v5  ;;  %4687 = vmatpush1.bf16.msra.mxu1 %v5766_v6 }
 0x4d5   :  { %4657 = vmatprep.subr.bf16.mxu0 %v5768_v7  ;;  %4689 = vmatprep.subr.bf16.mxu1 %v5781_v11 }
 0x4d6   :  { %2674 = vmatmul.mubr.f32.gmra.mrb[18].mxu0 %v2594_v47  ;;  %2751 = vmatmul.mubr.f32.gmra.mrb[18].mxu1 %v2594_v47 }
 0x4d7   :  { %2899 = vmatprep.mubr.f32.mxu0 %v6554_v51  ;;  %2976 = vmatprep.mubr.f32.mxu1 %v6554_v51 }
 0x4d8   :  { %4659 = vmatpush1.bf16.msra.mxu0 %v5804_v17  ;;  %4691 = vmatpush1.bf16.msra.mxu1 %v5808_v18 }
 0x4d9   :  { %4661 = vmatprep.subr.bf16.mxu0 %v5810_v19  ;;  %4693 = vmatprep.subr.bf16.mxu1 %v5822_v22 }
 0x4dc   :  { %4663 = vmatpush1.bf16.msra.mxu0 %v5844_v28  ;;  %4695 = vmatpush1.bf16.msra.mxu1 %v5850_v29 }
 0x4dd   :  { %4665 = vmatprep.subr.bf16.mxu0 %v5852_v30  ;;  %4697 = vmatprep.subr.bf16.mxu1 %v5864_v34 }
 0x4e0   :  { %4667 = vmatpush1.bf16.msra.mxu0 %v5884_v40  ;;  %4699 = vmatpush1.bf16.msra.mxu1 %v5888_v41 }
 0x4e1   :  { %4669 = vmatprep.subr.bf16.mxu0 %v5890_v42  ;;  %4701 = vmatprep.subr.bf16.mxu1 %v5902_v46 }
 0x4e4   :  { %4671 = vmatpush1.bf16.msra.mxu0 %v5920_v53  ;;  %4703 = vmatpush1.bf16.msra.mxu1 %v5924_v54 }
 0x4e5   :  { %4673 = vmatprep.subr.bf16.mxu0 %v5926_v55  ;;  %4705 = vmatprep.subr.bf16.mxu1 %v5938_v59 }
 0x4e8   :  { %4675 = vmatpush1.bf16.msra.mxu0 %v5956_v8  ;;  %4707 = vmatpush1.bf16.msra.mxu1 %v5960_v9 }
 0x4e9   :  { %4677 = vmatprep.subr.bf16.mxu0 %v5962_v10  ;;  %4709 = vmatprep.subr.bf16.mxu1 %v5974_v15 }
 0x4ec   :  { %4679 = vmatpush1.bf16.msra.mxu0 %v5992_v24  ;;  %4711 = vmatpush1.bf16.msra.mxu1 %v5996_v25 }
 0x4ed   :  { %4681 = vmatprep.subr.bf16.mxu0 %v5998_v26  ;;  %4713 = vmatprep.subr.bf16.mxu1 %v6007_v33 }
 0x4f0   :  { %4683 = vmatpush1.bf16.msra.mxu0 %v6016_v36  ;;  %4715 = vmatpush1.bf16.msra.mxu1 %v6020_v37 }
 0x4f1   :  { %4717 = vmatprep.subr.bf16.mxu0 %v5734_v60  ;;  %4749 = vmatprep.subr.bf16.mxu1 %v5749_v0 }
 0x5a5   :  { %v2669_v52 = vpop.f32.mrb[16].mxu0  ;;  %v2746_v35 = vpop.f32.mrb[16].mxu1 }
 0x5a6   :  { %v4950_v3 = vadd.f32 %v2669_v52, %v304_v16  ;;  %v4954_v60 = vadd.f32 %v2746_v35, %v312_v62  ;;  %v2671_v48 = vpop.f32.mrb[17].mxu0  ;;  %v2748_v0 = vpop.f32.mrb[17].mxu1  ;;  %v316_v52 = vrot.slane %v6312_v21, %v6090_v13 }
 0x5a7   :  { %v4951_v2 = vadd.f32 %v2671_v48, %v308_v50 }
 0x5a8   :  { %v3923_v56 = vmul.f32 -1.442695, %v4950_v3  ;;  %v3925_v32 = vmul.f32 -1.442695, %v4954_v60  ;;  %v4955_v3 = vadd.f32 %v2748_v0, %v316_v52 }
 0x5a9   :  { %v3924_v4 = vmul.f32 -1.442695, %v4951_v2  ;;  %v2675_v58 = vpop.f32.mrb[18].mxu0  ;;  %v2752_v39 = vpop.f32.mrb[18].mxu1 }
 0x5aa   :  { %5187 = vpow2.f32 %v3923_v56  ;;  %v4952_v44 = vadd.f32 %v2675_v58, %v304_v16  ;;  %v4956_v12 = vadd.f32 %v2752_v39, %v312_v62  ;;  %v2677_v63 = vpop.f32.mrb[19].mxu0  ;;  %v2754_v45 = vpop.f32.mrb[19].mxu1  ;;  %v3926_v2 = vmul.f32 -1.442695, %v4955_v3 }
 0x5ab   :  { %5189 = vpow2.f32 %v3925_v32  ;;  %v4953_v20 = vadd.f32 %v2677_v63, %v308_v50  ;;  %v4957_v16 = vadd.f32 %v2754_v45, %v316_v52 }
 0x5ac   :  { %5191 = vpow2.f32 %v3924_v4  ;;  %v3927_v57 = vmul.f32 -1.442695, %v4952_v44  ;;  %v3929_v47 = vmul.f32 -1.442695, %v4956_v12 }
 0x5ad   :  { %v3928_v35 = vmul.f32 -1.442695, %v4953_v20  ;;  %v3930_v39 = vmul.f32 -1.442695, %v4957_v16 }
 0x5ae   :  { %5193 = vpow2.f32 %v3927_v57 }
 0x5af   :  { %5195 = vpow2.f32 %v3929_v47 }
 0x5b0   :  { %5197 = vpow2.f32 %v3928_v35 }
 0x5b4   :  { %v5188_v60 = vpop.eup %5187 }
 0x5b5   :  { %v5190_v48 = vpop.eup %5189  ;;  %v2789_v58 = vadd.f32 1.0, %v5188_v60 }
 0x5b6   :  { %v5192_v62 = vpop.eup %5191  ;;  %v2791_v56 = vadd.f32 1.0, %v5190_v48 }
 0x5b7   :  { %v2790_v32 = vadd.f32 1.0, %v5192_v62 }
 0x5b8   :  { %v5194_v50 = vpop.eup %5193  ;;  %5199 = vrcp.f32 %v2791_v56 }
 0x5b9   :  { %v5196_v4 = vpop.eup %5195  ;;  %5201 = vpow2.f32 %v3926_v2  ;;  %v2793_v20 = vadd.f32 1.0, %v5194_v50 }
 0x5ba   :  { %v5198_v44 = vpop.eup %5197  ;;  %5203 = vrcp.f32 %v2790_v32  ;;  %v2795_v12 = vadd.f32 1.0, %v5196_v4 }
 0x5bb   :  { %5205 = vrcp.f32 %v2789_v58  ;;  %v2794_v63 = vadd.f32 1.0, %v5198_v44 }
 0x5bc   :  { %5207 = vrcp.f32 %v2795_v12 }
 0x5bd   :  { %5209 = vpow2.f32 %v3930_v39 }
 0x5be   :  { %5211 = vrcp.f32 %v2794_v63 }
 0x5bf   :  { %5213 = vrcp.f32 %v2793_v20 }
 0x5c2   :  { %v5200_v0 = vpop.eup %5199 }
 0x5c3   :  { %v5202_v45 = vpop.eup %5201  ;;  %v2813_v57 = vmul.f32 2.0, %v5200_v0 }
 0x5c4   :  { %v5204_v47 = vpop.eup %5203  ;;  %v2792_v60 = vadd.f32 1.0, %v5202_v45 }
 0x5c5   :  { %v5206_v52 = vpop.eup %5205  ;;  %v3931_v35 = vadd.f32 -1.0, %v2813_v57  ;;  %v2817_v16 = vmul.f32 %v5204_v47, %v6266_v38 }
 0x5c6   :  { %v5208_v3 = vpop.eup %5207  ;;  %5215 = vrcp.f32 %v2792_v60 }
 0x5c7   :  { %v5210_v48 = vpop.eup %5209  ;;  %v2819_v2 = vmul.f32 %v5206_v52, %v3931_v35  ;;  %v2814_v62 = vmul.f32 2.0, %v5208_v3 }
 0x5c8   :  { %v5212_v56 = vpop.eup %5211  ;;  %v2796_v4 = vadd.f32 1.0, %v5210_v48 }
 0x5c9   :  { %v6323_v58 = vadd.f32 %v2819_v2, %v2817_v16  ;;  %v3932_v32 = vadd.f32 -1.0, %v2814_v62  ;;  %v5214_v50 = vpop.eup %5213  ;;  %v2818_v44 = vmul.f32 %v5212_v56, %v6270_v61 }
 0x5cb   :  { %5217 = vtanh.f32 %v6323_v58  ;;  %v2820_v39 = vmul.f32 %v5214_v50, %v3932_v32 }
 0x5cc   :  { %5219 = vrcp.f32 %v2796_v4 }
 0x5cd   :  { %v6327_v12 = vadd.f32 %v2820_v39, %v2818_v44 }
 0x5cf   :  { %5221 = vtanh.f32 %v6327_v12 }
 0x5d0   :  { %v5216_v63 = vpop.eup %5215 }
 0x5d5   :  { %v5218_v38 = vpop.eup %5217 }
 0x5d6   :  { %v2825_v20 = vmul.f32 %v5218_v38, %v5216_v63  ;;  %v5220_v0 = vpop.eup %5219 }
 0x5d8   :  { %2900 = vmatmul.mubr.f32.vlgmr.msra.gmra.mrb[20].mxu0 %v2825_v20  ;;  %2977 = vmatmul.mubr.f32.vlgmr.msra.gmra.mrb[20].mxu1 %v2825_v20 }
 0x5d9   :  { %v5222_v45 = vpop.eup %5221  ;;  %2905 = vmatprep.mubr.f32.mxu0 %v6554_v51  ;;  %2982 = vmatprep.mubr.f32.mxu1 %v6554_v51 }
 0x5da   :  { %v2826_v57 = vmul.f32 %v5222_v45, %v5220_v0  ;;  %4719 = vmatpush1.bf16.msra.mxu0 %v5761_v5  ;;  %4751 = vmatpush1.bf16.msra.mxu1 %v5766_v6  ;;  %v3291_v5 = vld [vmem:[#allocation8] sm:$0xff]  ;;  %v3292_v6 = vld [vmem:[#allocation8 + $0x8] sm:$0xff] }
 0x5db   :  { %4721 = vmatprep.subr.bf16.mxu0 %v5768_v7  ;;  %4753 = vmatprep.subr.bf16.mxu1 %v5781_v11  ;;  %v6364_v7 = vpack.c.bf16 %v3292_v6, %v3291_v5  ;;  %v3382_v11 = vld [vmem:[#allocation9] sm:$0xff] }
 0x5dc   :  { %2906 = vmatmul.mubr.f32.gmra.mrb[22].mxu0 %v2826_v57  ;;  %2983 = vmatmul.mubr.f32.gmra.mrb[22].mxu1 %v2826_v57 }
 0x5dd   :  { %3131 = vmatprep.mubr.f32.mxu0 %v6554_v51  ;;  %3208 = vmatprep.mubr.f32.mxu1 %v6554_v51 }
 0x5de   :  { %4723 = vmatpush1.bf16.msra.mxu0 %v5804_v17  ;;  %4755 = vmatpush1.bf16.msra.mxu1 %v5808_v18  ;;  %v3383_v17 = vld [vmem:[#allocation9 + $0x8] sm:$0xff] }
 0x5df   :  { %4725 = vmatprep.subr.bf16.mxu0 %v5810_v19  ;;  %4757 = vmatprep.subr.bf16.mxu1 %v5822_v22  ;;  %v6367_v18 = vpack.c.bf16 %v3383_v17, %v3382_v11  ;;  %v320_v19 = vrot.slane %v6312_v21, %v6137_v23  ;;  %v328_v22 = vrot.slane %v6312_v21, %v6140_v27 }
 0x5e2   :  { %4727 = vmatpush1.bf16.msra.mxu0 %v5844_v28  ;;  %4759 = vmatpush1.bf16.msra.mxu1 %v5850_v29  ;;  %v324_v28 = vrot.slane %v6312_v21, %v6143_v31 }
 0x5e3   :  { %4729 = vmatprep.subr.bf16.mxu0 %v5852_v30  ;;  %4761 = vmatprep.subr.bf16.mxu1 %v5864_v34 }
 0x5e6   :  { %4731 = vmatpush1.bf16.msra.mxu0 %v5884_v40  ;;  %4763 = vmatpush1.bf16.msra.mxu1 %v5888_v41 }
 0x5e7   :  { %4733 = vmatprep.subr.bf16.mxu0 %v5890_v42  ;;  %4765 = vmatprep.subr.bf16.mxu1 %v5902_v46 }
 0x5ea   :  { %4735 = vmatpush1.bf16.msra.mxu0 %v5920_v53  ;;  %4767 = vmatpush1.bf16.msra.mxu1 %v5924_v54 }
 0x5eb   :  { %4737 = vmatprep.subr.bf16.mxu0 %v5926_v55  ;;  %4769 = vmatprep.subr.bf16.mxu1 %v5938_v59 }
 0x5ee   :  { %4739 = vmatpush1.bf16.msra.mxu0 %v5956_v8  ;;  %4771 = vmatpush1.bf16.msra.mxu1 %v5960_v9 }
 0x5ef   :  { %4741 = vmatprep.subr.bf16.mxu0 %v5962_v10  ;;  %4773 = vmatprep.subr.bf16.mxu1 %v5974_v15 }
 0x5f2   :  { %4743 = vmatpush1.bf16.msra.mxu0 %v5992_v24  ;;  %4775 = vmatpush1.bf16.msra.mxu1 %v5996_v25 }
 0x5f3   :  { %4745 = vmatprep.subr.bf16.mxu0 %v5998_v26  ;;  %4777 = vmatprep.subr.bf16.mxu1 %v6007_v33 }
 0x5f6   :  { %4747 = vmatpush1.bf16.msra.mxu0 %v6016_v36  ;;  %4779 = vmatpush1.bf16.msra.mxu1 %v6020_v37  ;;  %v332_v36 = vrot.slane %v6312_v21, %v6152_v14 }
 0x5f7   :  { %4781 = vmatprep.subr.bf16.mxu0 %v6364_v7  ;;  %4791 = vmatprep.subr.bf16.mxu1 %v6367_v18 }
 0x6ab   :  { %v2901_v29 = vpop.f32.mrb[20].mxu0  ;;  %v2978_v30 = vpop.f32.mrb[20].mxu1 }
 0x6ac   :  { %v4958_v34 = vadd.f32 %v2901_v29, %v320_v19  ;;  %v4962_v40 = vadd.f32 %v2978_v30, %v328_v22  ;;  %v2903_v41 = vpop.f32.mrb[21].mxu0  ;;  %v2980_v42 = vpop.f32.mrb[21].mxu1 }
 0x6ad   :  { %v4959_v46 = vadd.f32 %v2903_v41, %v324_v28  ;;  %v4963_v23 = vadd.f32 %v2980_v42, %v332_v36  ;;  %v3384_v41 = vld [vmem:[#allocation9 + $0x10] sm:$0xff]  ;;  %v3385_v42 = vld [vmem:[#allocation9 + $0x18] sm:$0xff] }
 0x6ae   :  { %v3933_v53 = vmul.f32 -1.442695, %v4958_v34  ;;  %v3935_v54 = vmul.f32 -1.442695, %v4962_v40  ;;  %v3293_v34 = vld [vmem:[#allocation8 + $0x10] sm:$0xff] }
 0x6af   :  { %v3934_v55 = vmul.f32 -1.442695, %v4959_v46  ;;  %v2907_v59 = vpop.f32.mrb[22].mxu0  ;;  %v2984_v8 = vpop.f32.mrb[22].mxu1  ;;  %v3936_v61 = vmul.f32 -1.442695, %v4963_v23 }
 0x6b0   :  { %5223 = vpow2.f32 %v3933_v53  ;;  %v4960_v9 = vadd.f32 %v2907_v59, %v320_v19  ;;  %v4964_v10 = vadd.f32 %v2984_v8, %v328_v22  ;;  %v2909_v15 = vpop.f32.mrb[23].mxu0  ;;  %v2986_v24 = vpop.f32.mrb[23].mxu1  ;;  %v3294_v40 = vld [vmem:[#allocation8 + $0x18] sm:$0xf]  ;;  %v3386_v8 = vld [vmem:[#allocation9 + $0x20] sm:$0xff]  ;;  %v3392_v23 = vld [vmem:[#allocation9 + $0x50] sm:$0xff] }
 0x6b1   :  { %5225 = vpow2.f32 %v3935_v54  ;;  %v4961_v25 = vadd.f32 %v2909_v15, %v324_v28  ;;  %v4965_v47 = vadd.f32 %v2986_v24, %v332_v36  ;;  %v4784_v54 = vpack.c.bf16 %v3294_v40, %v3293_v34  ;;  %v3391_v36 = vld [vmem:[#allocation9 + $0x48] sm:$0xff] }
 0x6b2   :  { %5227 = vpow2.f32 %v3934_v55  ;;  %v3937_v26 = vmul.f32 -1.442695, %v4960_v9  ;;  %v3939_v33 = vmul.f32 -1.442695, %v4964_v10  ;;  %v4794_v55 = vpack.c.bf16 %v3385_v42, %v3384_v41  ;;  %v3387_v9 = vld [vmem:[#allocation9 + $0x28] sm:$0xff] }
 0x6b3   :  { %v3938_v37 = vmul.f32 -1.442695, %v4961_v25  ;;  %v3940_v16 = vmul.f32 -1.442695, %v4965_v47  ;;  %v4798_v24 = vpack.c.bf16 %v3387_v9, %v3386_v8  ;;  %v3388_v25 = vld [vmem:[#allocation9 + $0x30] sm:$0xff]  ;;  %v3395_v47 = vld [vmem:[#allocation9 + $0x68] sm:$0xff] }
 0x6b4   :  { %5229 = vpow2.f32 %v3937_v26  ;;  %v3389_v26 = vld [vmem:[#allocation9 + $0x38] sm:$0xff] }
 0x6b5   :  { %5231 = vpow2.f32 %v3939_v33  ;;  %v5303_v33 = vld [vmem:[%s6526_s0] sm:$0xff] }
 0x6b6   :  { %5233 = vpow2.f32 %v3938_v37 }
 0x6ba   :  { %v5224_v27 = vpop.eup %5223 }
 0x6bb   :  { %v5226_v31 = vpop.eup %5225  ;;  %v3021_v3 = vadd.f32 1.0, %v5224_v27  ;;  %v3393_v27 = vld [vmem:[#allocation9 + $0x58] sm:$0xff] }
 0x6bc   :  { %v5228_v52 = vpop.eup %5227  ;;  %v3023_v35 = vadd.f32 1.0, %v5226_v31  ;;  %v4810_v31 = vpack.c.bf16 %v3393_v27, %v3392_v23 }
 0x6bd   :  { %v3022_v60 = vadd.f32 1.0, %v5228_v52 }
 0x6be   :  { %v5230_v48 = vpop.eup %5229  ;;  %5235 = vrcp.f32 %v3023_v35  ;;  %v3396_v35 = vld [vmem:[#allocation9 + $0x70] sm:$0xff] }
 0x6bf   :  { %v5232_v2 = vpop.eup %5231  ;;  %5237 = vpow2.f32 %v3936_v61  ;;  %v3025_v56 = vadd.f32 1.0, %v5230_v48  ;;  %v3394_v61 = vld [vmem:[#allocation9 + $0x60] sm:$0xff] }
 0x6c0   :  { %v5234_v62 = vpop.eup %5233  ;;  %5239 = vrcp.f32 %v3022_v60  ;;  %v3027_v14 = vadd.f32 1.0, %v5232_v2  ;;  %v4814_v52 = vpack.c.bf16 %v3395_v47, %v3394_v61  ;;  %v3592_v48 = vld [vmem:[#allocation6] sm:$0xff]  ;;  %v3593_v2 = vld [vmem:[#allocation6 + $0x8] sm:$0xff]  ;;  %v3595_v61 = vld [vmem:[#allocation6 + $0x18] sm:$0xff] }
 0x6c1   :  { %5241 = vrcp.f32 %v3021_v3  ;;  %v3026_v21 = vadd.f32 1.0, %v5234_v62  ;;  %v3397_v3 = vld [vmem:[#allocation9 + $0x78] sm:$0xff] }
 0x6c2   :  { %5243 = vrcp.f32 %v3027_v14  ;;  %v4818_v60 = vpack.c.bf16 %v3397_v3, %v3396_v35  ;;  %v3482_v62 = vld [vmem:[%s6538_s12] sm:$0xff]  ;;  %v3483_v14 = vld [vmem:[%s6538_s12 + $0x8] sm:$0xff] }
 0x6c3   :  { %5245 = vpow2.f32 %v3940_v16  ;;  %v6402_v16 = vpack.c.bf16 %v3593_v2, %v3592_v48  ;;  %v3596_v48 = vld [vmem:[#allocation6 + $0x20] sm:$0xff]  ;;  %v3597_v2 = vld [vmem:[#allocation6 + $0x28] sm:$0xff] }
 0x6c4   :  { %5247 = vrcp.f32 %v3026_v21  ;;  %v3484_v21 = vld [vmem:[%s6538_s12 + $0x10] sm:$0xff] }
 0x6c5   :  { %5249 = vrcp.f32 %v3025_v56  ;;  %v4822_v56 = vpack.c.bf16 %v3483_v14, %v3482_v62 }
 0x6c8   :  { %v5236_v32 = vpop.eup %5235 }
 0x6c9   :  { %v5238_v50 = vpop.eup %5237  ;;  %v3045_v4 = vmul.f32 2.0, %v5236_v32  ;;  %v3485_v32 = vld [vmem:[%s6538_s12 + $0x18] sm:$0xff] }
 0x6ca   :  { %v5240_v39 = vpop.eup %5239  ;;  %v3024_v20 = vadd.f32 1.0, %v5238_v50  ;;  %v4826_v50 = vpack.c.bf16 %v3485_v32, %v3484_v21 }
 0x6cb   :  { %v5242_v44 = vpop.eup %5241  ;;  %v3941_v63 = vadd.f32 -1.0, %v3045_v4  ;;  %v3049_v57 = vmul.f32 %v5240_v39, %v6323_v58  ;;  %v3486_v4 = vld [vmem:[%s6538_s12 + $0x20] sm:$0xff]  ;;  %v3487_v39 = vld [vmem:[%s6538_s12 + $0x28] sm:$0xff] }
 0x6cc   :  { %v5244_v38 = vpop.eup %5243  ;;  %5251 = vrcp.f32 %v3024_v20 }
 0x6cd   :  { %v5246_v0 = vpop.eup %5245  ;;  %v3051_v45 = vmul.f32 %v5242_v44, %v3941_v63  ;;  %v3046_v5 = vmul.f32 2.0, %v5244_v38  ;;  %v4830_v44 = vpack.c.bf16 %v3487_v39, %v3486_v4  ;;  %v3488_v63 = vld [vmem:[%s6538_s12 + $0x30] sm:$0xff]  ;;  %v3489_v38 = vld [vmem:[%s6538_s12 + $0x38] sm:$0xff]  ;;  %v4862_v4 = vpack.c.bf16 %v3597_v2, %v3596_v48  ;;  %v3957_v48 = vld [vmem:[#allocation11] ss:$0 sm:$0xff] }
 0x6ce   :  { %v5248_v6 = vpop.eup %5247  ;;  %v3028_v22 = vadd.f32 1.0, %v5246_v0  ;;  %v4834_v20 = vpack.c.bf16 %v3489_v38, %v3488_v63  ;;  %v3490_v0 = vld [vmem:[%s6538_s12 + $0x40] sm:$0xff] }
 0x6cf   :  { %v6379_v11 = vadd.f32 %v3051_v45, %v3049_v57  ;;  %v3942_v17 = vadd.f32 -1.0, %v3046_v5  ;;  %v5250_v19 = vpop.eup %5249  ;;  %v3050_v29 = vmul.f32 %v5248_v6, %v6327_v12  ;;  %v3491_v45 = vld [vmem:[%s6538_s12 + $0x48] sm:$0xff]  ;;  %v3492_v5 = vld [vmem:[%s6538_s12 + $0x50] sm:$0xff]  ;;  %v3493_v6 = vld [vmem:[%s6538_s12 + $0x58] sm:$0xff] }
 0x6d0   :  { %v4838_v57 = vpack.c.bf16 %v3491_v45, %v3490_v0  ;;  %v3599_v63 = vld [vmem:[#allocation6 + $0x38] sm:$0xff] }
 0x6d1   :  { %5253 = vtanh.f32 %v6379_v11  ;;  %v3052_v28 = vmul.f32 %v5250_v19, %v3942_v17  ;;  %v4842_v17 = vpack.c.bf16 %v3493_v6, %v3492_v5  ;;  %v3494_v19 = vld [vmem:[%s6538_s12 + $0x60] sm:$0xff] }
 0x6d2   :  { %5255 = vrcp.f32 %v3028_v22  ;;  %v3495_v22 = vld [vmem:[%s6538_s12 + $0x68] sm:$0xff] }
 0x6d3   :  { %v6383_v30 = vadd.f32 %v3052_v28, %v3050_v29  ;;  %v4846_v28 = vpack.c.bf16 %v3495_v22, %v3494_v19  ;;  %v232_v29 = vld [vmem:[%s6528_s2 + $0x18] sm:$0xf]  ;;  %v3600_v6 = vld [vmem:[#allocation6 + $0x40] sm:$0xff] }
 0x6d4   :  { %v336_v34 = vrot.slane %v232_v29, %v6070_v43  ;;  %v340_v40 = vrot.slane %v232_v29, %v6556_v49  ;;  %v3602_v22 = vld [vmem:[#allocation6 + $0x50] sm:$0xff] }
 0x6d5   :  { %5257 = vtanh.f32 %v6383_v30 }
 0x6d6   :  { %v5252_v58 = vpop.eup %5251 }
 0x6db   :  { %v5254_v46 = vpop.eup %5253 }
 0x6dc   :  { %v3057_v53 = vmul.f32 %v5254_v46, %v5252_v58  ;;  %v5256_v59 = vpop.eup %5255  ;;  %v344_v58 = vrot.slane %v232_v29, %v6555_v1 }
 0x6de   :  { %3132 = vmatmul.mubr.f32.vlgmr.msra.gmra.mrb[24].mxu0 %v3057_v53  ;;  %3209 = vmatmul.mubr.f32.vlgmr.msra.gmra.mrb[24].mxu1 %v3057_v53 }
 0x6df   :  { %v5258_v12 = vpop.eup %5257  ;;  %3137 = vmatprep.mubr.f32.mxu0 %v6554_v51  ;;  %3214 = vmatprep.mubr.f32.mxu1 %v6554_v51  ;;  %v4802_v51 = vpack.c.bf16 %v3389_v26, %v3388_v25 }
 0x6e0   :  { %v3058_v10 = vmul.f32 %v5258_v12, %v5256_v59  ;;  %4783 = vmatpush3.bf16.msra.mxu0 %v6364_v7  ;;  %4793 = vmatpush3.bf16.msra.mxu1 %v6367_v18  ;;  %v5304_v7 = vld [vmem:[%s6526_s0 + $0x8] sm:$0xff] }
 0x6e1   :  { %4786 = vmatprep.subr.msk.bf16.mxu0 %vm5583_vm2, %v4784_v54  ;;  %4795 = vmatprep.subr.bf16.mxu1 %v4794_v55  ;;  %v3390_v18 = vld [vmem:[#allocation9 + $0x40] sm:$0xff] }
 0x6e2   :  { %3138 = vmatmul.mubr.f32.gmra.mrb[26].mxu0 %v3058_v10  ;;  %3215 = vmatmul.mubr.f32.gmra.mrb[26].mxu1 %v3058_v10  ;;  %v4806_v37 = vpack.c.bf16 %v3391_v36, %v3390_v18 }
 0x6e3   :  { %4049 = vmatprep.mubr.msk.f32.mxu0 %vm377_vm3, %v5303_v33 }
 0x6e4   :  { %4789 = vmatpush3.bf16.msk.msra.mxu0 %vm5583_vm2, %v4784_v54  ;;  %4797 = vmatpush3.bf16.msra.mxu1 %v4794_v55 }
 0x6e5   :  { %4799 = vmatprep.subr.bf16.mxu1 %v4798_v24  ;;  %4823 = vmatprep.subr.bf16.mxu0 %v4822_v56 }
 0x6e7   :  { %4050 = vmatmul.mubr.msk.f32.vlgmr.msra.gmra.mrb[28].mxu0 %vm377_vm3, %v5304_v7  ;;  %v348_v7 = vrot.slane %v232_v29, %v6090_v13 }
 0x6e8   :  { %4801 = vmatpush3.bf16.msra.mxu1 %v4798_v24  ;;  %4825 = vmatpush3.bf16.msra.mxu0 %v4822_v56 }
 0x6e9   :  { %4803 = vmatprep.subr.bf16.mxu1 %v4802_v51  ;;  %4827 = vmatprep.subr.bf16.mxu0 %v4826_v50 }
 0x6ec   :  { %4805 = vmatpush3.bf16.msra.mxu1 %v4802_v51  ;;  %4829 = vmatpush3.bf16.msra.mxu0 %v4826_v50  ;;  %v3953_v51 = vld [vmem:[%s6535_s9] ss:$0 sm:$0xff] }
 0x6ed   :  { %4807 = vmatprep.subr.bf16.mxu1 %v4806_v37  ;;  %4831 = vmatprep.subr.bf16.mxu0 %v4830_v44 }
 0x6f0   :  { %4809 = vmatpush3.bf16.msra.mxu1 %v4806_v37  ;;  %4833 = vmatpush3.bf16.msra.mxu0 %v4830_v44  ;;  %v3598_v44 = vld [vmem:[#allocation6 + $0x30] sm:$0xff] }
 0x6f1   :  { %4811 = vmatprep.subr.bf16.mxu1 %v4810_v31  ;;  %4835 = vmatprep.subr.bf16.mxu0 %v4834_v20  ;;  %v4866_v5 = vpack.c.bf16 %v3599_v63, %v3598_v44  ;;  %v3697_v44 = vld [vmem:[%s6532_s6 + $0x28] sm:$0xff] }
 0x6f4   :  { %4813 = vmatpush3.bf16.msra.mxu1 %v4810_v31  ;;  %4837 = vmatpush3.bf16.msra.mxu0 %v4834_v20  ;;  %v3594_v31 = vld [vmem:[#allocation6 + $0x10] sm:$0xff] }
 0x6f5   :  { %4815 = vmatprep.subr.bf16.mxu1 %v4814_v52  ;;  %4839 = vmatprep.subr.bf16.mxu0 %v4838_v57  ;;  %v4858_v3 = vpack.c.bf16 %v3595_v61, %v3594_v31 }
 0x6f8   :  { %4817 = vmatpush3.bf16.msra.mxu1 %v4814_v52  ;;  %4841 = vmatpush3.bf16.msra.mxu0 %v4838_v57 }
 0x6f9   :  { %4819 = vmatprep.subr.bf16.mxu1 %v4818_v60  ;;  %4843 = vmatprep.subr.bf16.mxu0 %v4842_v17 }
 0x6fc   :  { %4821 = vmatpush3.bf16.msra.mxu1 %v4818_v60  ;;  %4845 = vmatpush3.bf16.msra.mxu0 %v4842_v17  ;;  %v3601_v17 = vld [vmem:[#allocation6 + $0x48] sm:$0xff] }
 0x6fd   :  { %4855 = vmatprep.subr.bf16.mxu1 %v6402_v16  ;;  %4847 = vmatprep.subr.bf16.mxu0 %v4846_v28  ;;  %v4870_v19 = vpack.c.bf16 %v3601_v17, %v3600_v6  ;;  %v3703_v6 = vld [vmem:[%s6532_s6 + $0x58] sm:$0xff] }
 0x700   :  { %4849 = vmatpush3.bf16.msra.mxu0 %v4846_v28  ;;  %v3603_v28 = vld [vmem:[#allocation6 + $0x58] sm:$0xff] }
 0x7b1   :  { %v3133_v41 = vpop.f32.mrb[24].mxu0  ;;  %v3210_v42 = vpop.f32.mrb[24].mxu1 }
 0x7b2   :  { %v4966_v46 = vadd.f32 %v3133_v41, %v336_v34  ;;  %v4970_v53 = vadd.f32 %v3210_v42, %v344_v58  ;;  %v3135_v54 = vpop.f32.mrb[25].mxu0  ;;  %v3212_v55 = vpop.f32.mrb[25].mxu1  ;;  %v3604_v42 = vld [vmem:[#allocation6 + $0x60] sm:$0xff] }
 0x7b3   :  { %v4967_v59 = vadd.f32 %v3135_v54, %v340_v40  ;;  %v4971_v47 = vadd.f32 %v3212_v55, %v348_v7 }
 0x7b4   :  { %v3943_v8 = vmul.f32 -1.442695, %v4966_v46  ;;  %v3945_v9 = vmul.f32 -1.442695, %v4970_v53  ;;  %v3605_v46 = vld [vmem:[#allocation6 + $0x68] sm:$0xff] }
 0x7b5   :  { %v3944_v12 = vmul.f32 -1.442695, %v4967_v59  ;;  %v3139_v10 = vpop.f32.mrb[26].mxu0  ;;  %v3216_v15 = vpop.f32.mrb[26].mxu1  ;;  %v3946_v13 = vmul.f32 -1.442695, %v4971_v47 }
 0x7b6   :  { %5259 = vpow2.f32 %v3943_v8  ;;  %v4968_v24 = vadd.f32 %v3139_v10, %v336_v34  ;;  %v4972_v25 = vadd.f32 %v3216_v15, %v344_v58  ;;  %v3141_v43 = vpop.f32.mrb[27].mxu0  ;;  %v3218_v26 = vpop.f32.mrb[27].mxu1  ;;  %v4878_v15 = vpack.c.bf16 %v3605_v46, %v3604_v42  ;;  %v3497_v47 = vld [vmem:[%s6538_s12 + $0x78] sm:$0xff] }
 0x7b7   :  { %5261 = vpow2.f32 %v3945_v9  ;;  %v4969_v1 = vadd.f32 %v3141_v43, %v340_v40  ;;  %v4973_v14 = vadd.f32 %v3218_v26, %v348_v7  ;;  %v4874_v40 = vpack.c.bf16 %v3603_v28, %v3602_v22  ;;  %v3607_v43 = vld [vmem:[#allocation6 + $0x78] sm:$0xff]  ;;  %v3705_v22 = vld [vmem:[%s6532_s6 + $0x68] sm:$0xff] }
 0x7b8   :  { %5263 = vpow2.f32 %v3944_v12  ;;  %v3947_v49 = vmul.f32 -1.442695, %v4968_v24  ;;  %v3949_v33 = vmul.f32 -1.442695, %v4972_v25  ;;  %v3606_v25 = vld [vmem:[#allocation6 + $0x70] sm:$0xff] }
 0x7b9   :  { %v3948_v18 = vmul.f32 -1.442695, %v4969_v1  ;;  %v3950_v20 = vmul.f32 -1.442695, %v4973_v14 }
 0x7ba   :  { %5265 = vpow2.f32 %v3947_v49  ;;  %v4051_v36 = vpop.f32.mrb[28].mxu0 }
 0x7bb   :  { %5267 = vpow2.f32 %v3949_v33  ;;  %v3377_v37 = vadd.f32 %v4051_v36, %v3953_v51  ;;  %v3371_v23 = vpop.f32.mrb[29].mxu0 }
 0x7bc   :  { %5269 = vpow2.f32 %v3948_v18  ;;  %v3372_v27 = vadd.f32 %v3953_v51, %v3371_v23  ;;  %v4882_v18 = vpack.c.bf16 %v3607_v43, %v3606_v25  ;;  %v3958_v25 = vld [vmem:[#allocation3] ss:$0 sm:$0xff] }
 0x7bd   :  { %v3381_v52 = vmax.f32 %v3377_v37, 0.0 }
 0x7be   :  { %v3380_v35 = vmax.f32 %v3372_v27, 0.0 }
 0x7c0   :  { %v5260_v60 = vpop.eup %5259  ;;  %4084 = vmatprep.mubr.f32.mxu1 %v3380_v35  ;;  %v3692_v35 = vld [vmem:[%s6532_s6] sm:$0xff] }
 0x7c1   :  { %v5262_v62 = vpop.eup %5261  ;;  %4085 = vmatmul.mubr.f32.vlgmr.msra.gmra.mrb[28].mxu1 %v3381_v52  ;;  %v3253_v32 = vadd.f32 1.0, %v5260_v60 }
 0x7c2   :  { %v5264_v21 = vpop.eup %5263  ;;  %v3255_v56 = vadd.f32 1.0, %v5262_v62  ;;  %4857 = vmatpush3.bf16.msra.mxu1 %v6402_v16 }
 0x7c3   :  { %v3254_v50 = vadd.f32 1.0, %v5264_v21  ;;  %4859 = vmatprep.subr.bf16.mxu1 %v4858_v3  ;;  %v3694_v21 = vld [vmem:[%s6532_s6 + $0x10] sm:$0xff] }
 0x7c4   :  { %v5266_v39 = vpop.eup %5265  ;;  %5271 = vrcp.f32 %v3255_v56  ;;  %v3695_v56 = vld [vmem:[%s6532_s6 + $0x18] sm:$0xff] }
 0x7c5   :  { %v5268_v38 = vpop.eup %5267  ;;  %5273 = vpow2.f32 %v3946_v13  ;;  %v3257_v16 = vadd.f32 1.0, %v5266_v39  ;;  %v3696_v39 = vld [vmem:[%s6532_s6 + $0x20] sm:$0xff] }
 0x7c6   :  { %v5270_v0 = vpop.eup %5269  ;;  %5275 = vrcp.f32 %v3254_v50  ;;  %v3259_v45 = vadd.f32 1.0, %v5268_v38  ;;  %4861 = vmatpush3.bf16.msra.mxu1 %v4858_v3  ;;  %v3693_v3 = vld [vmem:[%s6532_s6 + $0x8] sm:$0xff]  ;;  %v4894_v63 = vpack.c.bf16 %v3697_v44, %v3696_v39  ;;  %v3698_v38 = vld [vmem:[%s6532_s6 + $0x30] sm:$0xff] }
 0x7c7   :  { %5277 = vrcp.f32 %v3253_v32  ;;  %v3258_v57 = vadd.f32 1.0, %v5270_v0  ;;  %4863 = vmatprep.subr.bf16.mxu1 %v4862_v4  ;;  %v4886_v60 = vpack.c.bf16 %v3693_v3, %v3692_v35 }
 0x7c8   :  { %5279 = vrcp.f32 %v3259_v45  ;;  %v3700_v45 = vld [vmem:[%s6532_s6 + $0x40] sm:$0xff] }
 0x7c9   :  { %5281 = vpow2.f32 %v3950_v20  ;;  %v3699_v20 = vld [vmem:[%s6532_s6 + $0x38] sm:$0xff] }
 0x7ca   :  { %5283 = vrcp.f32 %v3258_v57  ;;  %4865 = vmatpush3.bf16.msra.mxu1 %v4862_v4  ;;  %v4890_v4 = vpack.c.bf16 %v3695_v56, %v3694_v21  ;;  %v4898_v0 = vpack.c.bf16 %v3699_v20, %v3698_v38  ;;  %v3701_v57 = vld [vmem:[%s6532_s6 + $0x48] sm:$0xff] }
 0x7cb   :  { %4867 = vmatprep.subr.bf16.mxu1 %v4866_v5  ;;  %5285 = vrcp.f32 %v3257_v16  ;;  %v3702_v16 = vld [vmem:[%s6532_s6 + $0x50] sm:$0xff] }
 0x7cc   :  { %v4906_v17 = vpack.c.bf16 %v3703_v6, %v3702_v16 }
 0x7ce   :  { %v5272_v29 = vpop.eup %5271  ;;  %4869 = vmatpush3.bf16.msra.mxu1 %v4866_v5  ;;  %v4902_v5 = vpack.c.bf16 %v3701_v57, %v3700_v45 }
 0x7cf   :  { %v5274_v34 = vpop.eup %5273  ;;  %v3277_v58 = vmul.f32 2.0, %v5272_v29  ;;  %4871 = vmatprep.subr.bf16.mxu1 %v4870_v19  ;;  %v3706_v29 = vld [vmem:[%s6532_s6 + $0x70] sm:$0xff] }
 0x7d0   :  { %v5276_v41 = vpop.eup %5275  ;;  %v3256_v59 = vadd.f32 1.0, %v5274_v34  ;;  %v3707_v34 = vld [vmem:[%s6532_s6 + $0x78] sm:$0xff] }
 0x7d1   :  { %v5278_v53 = vpop.eup %5277  ;;  %v3951_v54 = vadd.f32 -1.0, %v3277_v58  ;;  %v3281_v12 = vmul.f32 %v5276_v41, %v6379_v11  ;;  %v4914_v58 = vpack.c.bf16 %v3707_v34, %v3706_v29 }
 0x7d2   :  { %v5280_v55 = vpop.eup %5279  ;;  %4873 = vmatpush3.bf16.msra.mxu1 %v4870_v19  ;;  %5287 = vrcp.f32 %v3256_v59  ;;  %v3704_v19 = vld [vmem:[%s6532_s6 + $0x60] sm:$0xff] }
 0x7d3   :  { %v5282_v8 = vpop.eup %5281  ;;  %v3283_v9 = vmul.f32 %v5278_v53, %v3951_v54  ;;  %v3278_v10 = vmul.f32 2.0, %v5280_v55  ;;  %4875 = vmatprep.subr.bf16.mxu1 %v4874_v40  ;;  %v4910_v28 = vpack.c.bf16 %v3705_v22, %v3704_v19 }
 0x7d4   :  { %v5284_v24 = vpop.eup %5283  ;;  %v3260_v33 = vadd.f32 1.0, %v5282_v8 }
 0x7d5   :  { %v3952_v26 = vadd.f32 -1.0, %v3278_v10  ;;  %v3285_v1 = vadd.f32 %v3283_v9, %v3281_v12  ;;  %v5286_v49 = vpop.eup %5285  ;;  %v3282_v7 = vmul.f32 %v5284_v24, %v6383_v30  ;;  %v3496_v30 = vld [vmem:[%s6538_s12 + $0x70] sm:$0xff]  ;;  %v3962_v9 = vld [vmem:[%s6533_s7] ss:$0 sm:$0xff] }
 0x7d6   :  { %4877 = vmatpush3.bf16.msra.mxu1 %v4874_v40  ;;  %v4850_v52 = vpack.c.bf16 %v3497_v47, %v3496_v30  ;;  %v3961_v40 = vld [vmem:[%s6531_s5] ss:$0 sm:$0xff]  ;;  %s5433_s5 = smov 1  }
 0x7d7   :  { %v3284_v51 = vmul.f32 %v5286_v49, %v3952_v26  ;;  %4879 = vmatprep.subr.bf16.mxu1 %v4878_v15  ;;  %5289 = vtanh.f32 %v3285_v1 }
 0x7d8   :  { %5291 = vrcp.f32 %v3260_v33  ;;  %4851 = vmatprep.subr.bf16.mxu0 %v4850_v52 }
 0x7d9   :  { %v3286_v36 = vadd.f32 %v3284_v51, %v3282_v7  ;;  %4853 = vmatpush3.bf16.msra.mxu0 %v4850_v52 }
 0x7da   :  { %4881 = vmatpush3.bf16.msra.mxu1 %v4878_v15  ;;  %4887 = vmatprep.subr.bf16.mxu0 %v4886_v60 }
 0x7db   :  { %5293 = vtanh.f32 %v3286_v36  ;;  %4883 = vmatprep.subr.bf16.mxu1 %v4882_v18 }
 0x7dc   :  { %v5288_v11 = vpop.eup %5287 }
 0x7de   :  { %4885 = vmatpush3.bf16.msra.mxu1 %v4882_v18 }
 0x7e1   :  { %v5290_v37 = vpop.eup %5289 }
 0x7e2   :  { %v3289_v23 = vmul.f32 %v5290_v37, %v5288_v11  ;;  %v5292_v27 = vpop.eup %5291 }
 0x7e4   :  { %4154 = vmatprep.mubr.f32.mxu1 %v3289_v23 }
 0x7e5   :  { %v5294_v31 = vpop.eup %5293 }
 0x7e6   :  { %v3290_v61 = vmul.f32 %v5294_v31, %v5292_v27 }
 0x7e8   :  { %4155 = vmatmul.mubr.f32.vlgmr.msra.gmra.mrb[30].mxu1 %v3290_v61 }
 0x894   :  { %v4086_v2 = vpop.f32.mrb[28].mxu1 }
 0x895   :  { %v3477_v62 = vadd.f32 %v4086_v2, %v3957_v48  ;;  %v3471_v13 = vpop.f32.mrb[29].mxu1 }
 0x896   :  { %v3472_v14 = vadd.f32 %v3957_v48, %v3471_v13 }
 0x897   :  { %v3481_v32 = vmax.f32 %v3477_v62, 0.0 }
 0x898   :  { %v3480_v50 = vmax.f32 %v3472_v14, 0.0 }
 0x89a   :  { %4119 = vmatprep.mubr.f32.mxu0 %v3480_v50 }
 0x89b   :  { %4120 = vmatmul.mubr.f32.vlgmr.msra.gmra.mrb[30].mxu0 %v3481_v32 }
 0x89c   :  { %4889 = vmatpush3.bf16.msra.mxu0 %v4886_v60 }
 0x89d   :  { %4891 = vmatprep.subr.bf16.mxu0 %v4890_v4 }
 0x8a0   :  { %4893 = vmatpush3.bf16.msra.mxu0 %v4890_v4 }
 0x8a1   :  { %4895 = vmatprep.subr.bf16.mxu0 %v4894_v63 }
 0x8a4   :  { %4897 = vmatpush3.bf16.msra.mxu0 %v4894_v63 }
 0x8a5   :  { %4899 = vmatprep.subr.bf16.mxu0 %v4898_v0 }
 0x8a8   :  { %4901 = vmatpush3.bf16.msra.mxu0 %v4898_v0 }
 0x8a9   :  { %4903 = vmatprep.subr.bf16.mxu0 %v4902_v5 }
 0x8ac   :  { %4905 = vmatpush3.bf16.msra.mxu0 %v4902_v5 }
 0x8ad   :  { %4907 = vmatprep.subr.bf16.mxu0 %v4906_v17 }
 0x8b0   :  { %4909 = vmatpush3.bf16.msra.mxu0 %v4906_v17 }
 0x8b1   :  { %4911 = vmatprep.subr.bf16.mxu0 %v4910_v28 }
 0x8b4   :  { %4913 = vmatpush3.bf16.msra.mxu0 %v4910_v28 }
 0x8b5   :  { %4915 = vmatprep.subr.bf16.mxu0 %v4914_v58 }
 0x8b8   :  { %4917 = vmatpush3.bf16.msra.mxu0 %v4914_v58 }
 0x8bb   :  { %v4156_v41 = vpop.f32.mrb[30].mxu1 }
 0x8bc   :  { %v3687_v42 = vadd.f32 %v4156_v41, %v3961_v40  ;;  %v3681_v46 = vpop.f32.mrb[31].mxu1 }
 0x8bd   :  { %v3682_v53 = vadd.f32 %v3961_v40, %v3681_v46 }
 0x8be   :  { %v3691_v55 = vmax.f32 %v3687_v42, 0.0 }
 0x8bf   :  { %v3690_v54 = vmax.f32 %v3682_v53, 0.0 }
 0x8c1   :  { %4189 = vmatprep.mubr.f32.mxu0 %v3690_v54 }
 0x8c2   :  { %4190 = vmatmul.mubr.f32.vlgmr.msra.gmra.mrb[32].mxu0 %v3691_v55 }
 0x96e   :  { %v4121_v59 = vpop.f32.mrb[30].mxu0 }
 0x96f   :  { %v3571_v8 = vpop.f32.mrb[31].mxu0  ;;  %v3577_v26 = vadd.f32 %v4121_v59, %v3958_v25 }
 0x970   :  { %v3572_v43 = vadd.f32 %v3958_v25, %v3571_v8 }
 0x971   :  { %v3960_v49 = vmul.f32 -1.442695, %v3577_v26 }
 0x972   :  { %v3959_v1 = vmul.f32 -1.442695, %v3572_v43 }
 0x974   :  { %5295 = vpow2.f32 %v3959_v1 }
 0x975   :  { %5297 = vpow2.f32 %v3960_v49 }
 0x97e   :  { %v5296_v33 = vpop.eup %5295 }
 0x97f   :  { %v3586_v51 = vadd.f32 1.0, %v5296_v33  ;;  %v5298_v7 = vpop.eup %5297 }
 0x980   :  { %v3587_v18 = vadd.f32 1.0, %v5298_v7 }
 0x981   :  { %5299 = vrcp.f32 %v3586_v51 }
 0x982   :  { %5301 = vrcp.f32 %v3587_v18 }
 0x98b   :  { %v5300_v36 = vpop.eup %5299 }
 0x98c   :  { %v3790_v11 = vsub.f32 1.0, %v5300_v36  ;;  %v5302_v37 = vpop.eup %5301 }
 0x98d   :  { %v3791_v61 = vsub.f32 1.0, %v5302_v37 }
 0x995   :  { %v4191_v12 = vpop.f32.mrb[32].mxu0 }
 0x996   :  { %v3781_v10 = vpop.f32.mrb[33].mxu0  ;;  %v3787_v24 = vadd.f32 %v4191_v12, %v3962_v9 }
 0x997   :  { %v3782_v15 = vadd.f32 %v3962_v9, %v3781_v10 }
 0x998   :  { %v3793_v52 = vmul.f32 %v3791_v61, %v3787_v24 }
 0x999   :  { %3796 = vrot.lane.b32.xlu0 %v3782_v15, %s5432_s4  ;;  %v3792_v27 = vmul.f32 %v3790_v11, %v3782_v15 }
 0x99d   :  { %3798 = vrot.lane.b32.xlu0 %v3787_v24, %s5432_s4 }
 0xa0b   :  { %v3797_v23 = vpop.permute.xlu0 %3796 }
 0xa0c   :  { %v3802_v31 = vmul.f32 %v5300_v36, %v3797_v23 }
 0xa0e   :  { %v3804_v30 = vadd.f32 %v3802_v31, %v3792_v27 }
 0xa0f   :  { %v3799_v47 = vpop.permute.xlu0 %3798 }
 0xa10   :  { %v3803_v35 = vmul.f32 %v5302_v37, %v3799_v47  ;;  %3808 = vrot.lane.b32.xlu1 %v3804_v30, %s5433_s5 }
 0xa12   :  { %v3805_v3 = vadd.f32 %v3803_v35, %v3793_v52 }
 0xa14   :  { %3810 = vrot.lane.b32.xlu1 %v3805_v3, %s5433_s5 }
 0xa82   :  { %v3809_v60 = vpop.permute.xlu1 %3808 }
 0xa83   :  { %v3815_v48 = vsel %vm3814_vm4, %v5300_v36, %v3809_v60 }
 0xa84   :  { %3818 = vst.msk [vmem:[%s6540_s14] sm:$0xff] %vm3817_vm5, %v3815_v48 }
 0xa86   :  { %v3811_v2 = vpop.permute.xlu1 %3810 }
 0xa87   :  { %v3816_v62 = vsel %vm3814_vm4, %v5302_v37, %v3811_v2 }
 0xa88   :  { %3819 = vst.msk [vmem:[%s6540_s14 + $0x8] sm:$0xff] %vm3817_vm5, %v3816_v62 }
 0xa89   :  { %3824 = vsyncpa [#allocation5], 1 }
 0xa8a   :  { %3825 = vsyncpa [#allocation7], 1 }
 0xa8b   :  { %3826 = vsyncpa [#allocation10], 1 }

</bundles_post_ra>
